<compile_context>
chip_gen: v5e
topology: v5e:2x2
jax: 0.10.0
libtpu: 0.0.40
codegen_flags: <defaults>
</compile_context>

<pallas_src>
import jax
import jax.numpy as jnp
import numpy as np
from jax import lax
from jax.experimental import pallas as pl
from jax.experimental.pallas import tpu as pltpu


# --------------------------- wrapper-side helpers ----------------------------


def _toeplitz_bands(w, width):
    """w: (3, 3, cin, cout) conv kernel -> (3, width*cin, width*cout) bands.

    T_dy[u*cin + ci, x*cout + co] = w[dy, u - x + 1, ci, co] for taps inside
    the 3-wide window, else 0.  `rows_dy @ T_dy` (rows_dy = input row-band for
    vertical tap dy, lanes = (x, cin)) gives that tap's contribution to the
    'same' conv; width zero-padding is implicit in the band structure.
    """
    cin, cout = int(w.shape[2]), int(w.shape[3])
    ind = np.zeros((width, width, 3), np.float32)
    for x in range(width):
        for dx in range(3):
            u = x + dx - 1
            if 0 <= u < width:
                ind[u, x, dx] = 1.0
    t = jnp.einsum("uxd,ydic->yuixc", jnp.asarray(ind), w.astype(jnp.float32))
    return t.reshape(3, width * cin, width * cout)


def _split_parity(t, width, cout):
    """Split band columns into even-x / odd-x outputs (width half of maxpool)."""
    k = t.shape[1]
    t4 = t.reshape(3, k, width, cout)
    te = t4[:, :, 0::2, :].reshape(3, k, (width // 2) * cout)
    to = t4[:, :, 1::2, :].reshape(3, k, (width // 2) * cout)
    return te, to


# ------------------------------ kernel helpers --------------------------------


def _conv_relu_maxpool(get_rows, te_ref, to_ref, bias_row, cast_dtype):
    """conv3x3 'same' + ReLU + 2x2 maxpool, in (rows=(b,y), lanes=(x,c)) layout.

    get_rows(dy) -> (M, K) row-band of the vertically-padded input.
    te_ref/to_ref: (3, K, L) even-x / odd-x Toeplitz bands, L = (w//2)*cout.
    Returns pooled activation (M//2, L) in f32.
    """
    ye = yo = None
    for dy in range(3):
        rows = get_rows(dy)
        if cast_dtype is not None:
            rows = rows.astype(cast_dtype)
        pe = jnp.dot(rows, te_ref[dy], preferred_element_type=jnp.float32)
        po = jnp.dot(rows, to_ref[dy], preferred_element_type=jnp.float32)
        ye = pe if ye is None else ye + pe
        yo = po if yo is None else yo + po
    # width pool (even/odd parity max) fused with bias + ReLU
    y = jnp.maximum(jnp.maximum(ye, yo) + bias_row, 0.0)        # (M, L)
    m, l = y.shape
    yr = y.reshape(m // 2, 2, l)                                 # height pool
    return jnp.maximum(yr[:, 0, :], yr[:, 1, :])                 # (M//2, L)


# -------------------------------- fused kernel --------------------------------


def mfcc_fused_kernel(x_ref, t1e_ref, t1o_ref, b1_ref,
                      t2e_ref, t2o_ref, b2_ref,
                      t3_ref, b3_ref, fcw_ref, fcb_ref,
                      o_ref, pad1_ref, pad2_ref):
    tb, ihp, iw = x_ref.shape
    ih = ihp - 2
    ih2, ih4 = ih // 2, ih // 4
    l1 = t1e_ref.shape[-1]            # (iw//2) * 32
    l2 = t2e_ref.shape[-1]            # (iw//4) * 64
    l3 = t3_ref.shape[-1]             # (iw//4) * 128
    c3 = fcw_ref.shape[0]             # 128
    iw4 = l3 // c3

    # ---- stage 1: conv1 (f32 MXU band matmuls) + ReLU + 2x2 maxpool ----------
    p1 = _conv_relu_maxpool(
        lambda dy: x_ref[:, dy:dy + ih, :].reshape(tb * ih, iw),
        t1e_ref, t1o_ref, b1_ref[...], cast_dtype=None)          # (tb*ih2, l1)

    # vertical halo only (width pad folded into T2); zero just the 2 border rows
    zero1 = jnp.zeros((tb, 1, l1), jnp.float32)
    pad1_ref[:, 0:1, :] = zero1
    pad1_ref[:, ih2 + 1:ih2 + 2, :] = zero1
    pad1_ref[:, 1:ih2 + 1, :] = p1.reshape(tb, ih2, l1)

    # ---- stage 2: conv2 (bf16 MXU) + ReLU + 2x2 maxpool ----------------------
    p2 = _conv_relu_maxpool(
        lambda dy: pad1_ref[:, dy:dy + ih2, :].reshape(tb * ih2, l1),
        t2e_ref, t2o_ref, b2_ref[...], cast_dtype=jnp.bfloat16)  # (tb*ih4, l2)

    zero2 = jnp.zeros((tb, 1, l2), jnp.float32)
    pad2_ref[:, 0:1, :] = zero2
    pad2_ref[:, ih4 + 1:ih4 + 2, :] = zero2
    pad2_ref[:, 1:ih4 + 1, :] = p2.reshape(tb, ih4, l2)

    # ---- stage 3: conv3 (bf16 MXU) + ReLU (no maxpool) -----------------------
    y3 = None
    for dy in range(3):
        rows = pad2_ref[:, dy:dy + ih4, :].reshape(tb * ih4, l2)
        rows = rows.astype(jnp.bfloat16)
        part = jnp.dot(rows, t3_ref[dy], preferred_element_type=jnp.float32)
        y3 = part if y3 is None else y3 + part
    y3 = jnp.maximum(y3 + b3_ref[...], 0.0)                      # (tb*ih4, l3)

    # ---- global average pool: sum rows (y) + 128-aligned lane groups (x) -----
    v = y3.reshape(tb, ih4, l3)
    s = v[:, 0, :]
    for r in range(1, ih4):
        s = s + v[:, r, :]
    pooled = s[:, 0:c3]
    for g in range(1, iw4):
        pooled = pooled + s[:, g * c3:(g + 1) * c3]
    pooled = pooled * (1.0 / float(ih4 * iw4))                   # (tb, 128)

    # ---- FC (output padded to 128 lanes) + L2 normalize ----------------------
    emb = jnp.dot(pooled, fcw_ref[...],
                  preferred_element_type=jnp.float32) + fcb_ref[...]
    ss = jnp.sum(emb * emb, axis=-1, keepdims=True)
    o_ref[...] = (emb / jnp.maximum(jnp.sqrt(ss), 1e-12)).astype(o_ref.dtype)


# ----------------------------------- wrapper -----------------------------------


def mfcc_embedding_net(x_nchw, params, *, batch_tile=32):
    n, cin, ih, iw = x_nchw.shape
    assert cin == 1 and ih % 4 == 0 and iw % 4 == 0, (n, cin, ih, iw)
    c1 = params["w1"].shape[-1]
    c2 = params["w2"].shape[-1]
    c3 = params["w3"].shape[-1]
    e = params["fcw"].shape[-1]
    ep = ((e + 127) // 128) * 128            # lane-dense output width
    ih2, iw2, ih4, iw4 = ih // 2, iw // 2, ih // 4, iw // 4

    # batch tile: tb is either the full batch or a multiple of 8 (layout-legal
    # output block); for n > batch_tile the grid has >=2 steps -> both v7x TCs.
    tb = n if n <= batch_tile else batch_tile
    npad = pl.cdiv(n, tb) * tb

    # cin == 1: drop the channel dim with a reshape (no transpose / data copy),
    # add the 1-row top/bottom conv halo once in HBM (tiny, rides the input DMA).
    x = x_nchw.astype(jnp.float32).reshape(n, ih, iw)
    x = jnp.pad(x, ((0, npad - n), (1, 1), (0, 0)))              # (npad, ih+2, iw)

    # Toeplitz band weights (conv-as-matmul), even/odd split = width maxpool.
    t1e, t1o = _split_parity(_toeplitz_bands(params["w1"], iw), iw, c1)
    t2e, t2o = _split_parity(_toeplitz_bands(params["w2"], iw2), iw2, c2)
    t3 = _toeplitz_bands(params["w3"], iw4)
    t2e = t2e.astype(jnp.bfloat16)
    t2o = t2o.astype(jnp.bfloat16)
    t3 = t3.astype(jnp.bfloat16)
    b1t = jnp.tile(params["b1"].astype(jnp.float32), iw2).reshape(1, iw2 * c1)
    b2t = jnp.tile(params["b2"].astype(jnp.float32), iw4).reshape(1, iw4 * c2)
    b3t = jnp.tile(params["b3"].astype(jnp.float32), iw4).reshape(1, iw4 * c3)
    fcw = jnp.pad(params["fcw"].astype(jnp.float32), ((0, 0), (0, ep - e)))
    fcb = jnp.pad(params["fcb"].astype(jnp.float32), (0, ep - e)).reshape(1, ep)

    full3 = lambda i: (0, 0, 0)
    full2 = lambda i: (0, 0)

    out = pl.pallas_call(
        mfcc_fused_kernel,
        out_shape=jax.ShapeDtypeStruct((npad, ep), jnp.float32),
        grid=(npad // tb,),
        in_specs=[
            pl.BlockSpec((tb, ih + 2, iw), lambda i: (i, 0, 0)),
            pl.BlockSpec(t1e.shape, full3),
            pl.BlockSpec(t1o.shape, full3),
            pl.BlockSpec(b1t.shape, full2),
            pl.BlockSpec(t2e.shape, full3),
            pl.BlockSpec(t2o.shape, full3),
            pl.BlockSpec(b2t.shape, full2),
            pl.BlockSpec(t3.shape, full3),
            pl.BlockSpec(b3t.shape, full2),
            pl.BlockSpec(fcw.shape, full2),
            pl.BlockSpec(fcb.shape, full2),
        ],
        out_specs=pl.BlockSpec((tb, ep), lambda i: (i, 0)),
        scratch_shapes=[
            pltpu.VMEM((tb, ih2 + 2, iw2 * c1), jnp.float32),    # pooled conv1
            pltpu.VMEM((tb, ih4 + 2, iw4 * c2), jnp.float32),    # pooled conv2
        ],
        compiler_params=pltpu.CompilerParams(
            dimension_semantics=("parallel",),
            vmem_limit_bytes=32 * 1024 * 1024),
    )(x, t1e, t1o, b1t, t2e, t2o, b2t, t3, b3t, fcw, fcb)
    # Padded batch rows (garbage) and padded embedding lanes are sliced off here.
    return out[:n, :e]


@jax.jit
def forward(x_nchw, params):
    return mfcc_embedding_net(x_nchw, params)


# ---------------------------------- reference ----------------------------------


def reference_forward(x_nchw, params):
    x = jnp.transpose(x_nchw, (0, 2, 3, 1)).astype(jnp.float32)

    def conv(x, w, b):
        y = lax.conv_general_dilated(
            x, w, window_strides=(1, 1), padding="SAME",
            dimension_numbers=("NHWC", "HWIO", "NHWC"))
        return jax.nn.relu(y + b)

    def maxpool(x):
        return lax.reduce_window(x, -jnp.inf, lax.max,
                                 (1, 2, 2, 1), (1, 2, 2, 1), "VALID")

    x = maxpool(conv(x, params["w1"], params["b1"]))
    x = maxpool(conv(x, params["w2"], params["b2"]))
    x = conv(x, params["w3"], params["b3"])
    x = jnp.mean(x, axis=(1, 2))                                 # (N, 128)
    emb = x @ params["fcw"] + params["fcb"]
    nrm = jnp.sqrt(jnp.sum(emb * emb, axis=-1, keepdims=True))
    return emb / jnp.maximum(nrm, 1e-12)


# -------------------------------- params & main ---------------------------------


def init_params(key, embed_dim=64):
    ks = jax.random.split(key, 8)

    def conv_w(k, cin, cout):
        return jax.random.normal(k, (3, 3, cin, cout), jnp.float32) / np.sqrt(9 * cin)

    return {
        "w1": conv_w(ks[0], 1, 32),
        "b1": 0.01 * jax.random.normal(ks[1], (32,), jnp.float32),
        "w2": conv_w(ks[2], 32, 64),
        "b2": 0.01 * jax.random.normal(ks[3], (64,), jnp.float32),
        "w3": conv_w(ks[4], 64, 128),
        "b3": 0.01 * jax.random.normal(ks[5], (128,), jnp.float32),
        "fcw": jax.random.normal(ks[6], (128, embed_dim), jnp.float32) / np.sqrt(128),
        "fcb": 0.01 * jax.random.normal(ks[7], (embed_dim,), jnp.float32),
    }


if __name__ == "__main__":
    key = jax.random.PRNGKey(0)
    pkey, xkey = jax.random.split(key)
    params = init_params(pkey, embed_dim=64)
    # NCHW input, 1-channel MFCC "image" (batch=2, 16x16 spatial).
    x = jax.random.normal(xkey, (2, 1, 16, 16), jnp.float32)

    out = jax.block_until_ready(forward(x, params))
    ref = jax.block_until_ready(reference_forward(x, params))

    assert out.shape == (2, 64), out.shape
    if not np.allclose(np.asarray(out), np.asarray(ref), rtol=3e-2, atol=3e-2):
        raise AssertionError("Pallas output does not match reference")
    print("KERNEL_OK")
</pallas_src>

<mosaic_0001>
module attributes {stable_mosaic.version = 11 : i64} {
  func.func @mfcc_fused_kernel(%arg0: i32, %arg1: memref<2x18x16xf32, #tpu.memory_space<vmem>>, %arg2: memref<3x16x256xf32, #tpu.memory_space<vmem>>, %arg3: memref<3x16x256xf32, #tpu.memory_space<vmem>>, %arg4: memref<1x256xf32, #tpu.memory_space<vmem>>, %arg5: memref<3x256x256xbf16, #tpu.memory_space<vmem>>, %arg6: memref<3x256x256xbf16, #tpu.memory_space<vmem>>, %arg7: memref<1x256xf32, #tpu.memory_space<vmem>>, %arg8: memref<3x256x512xbf16, #tpu.memory_space<vmem>>, %arg9: memref<1x512xf32, #tpu.memory_space<vmem>>, %arg10: memref<128x128xf32, #tpu.memory_space<vmem>>, %arg11: memref<1x128xf32, #tpu.memory_space<vmem>>, %arg12: memref<2x128xf32, #tpu.memory_space<vmem>>, %arg13: memref<2x10x256xf32, #tpu.memory_space<vmem>>, %arg14: memref<2x6x256xf32, #tpu.memory_space<vmem>>) attributes {dimension_semantics = [#tpu.dimension_semantics<parallel>], iteration_bounds = array<i64: 1>, scalar_prefetch = 0 : i64, scratch_operands = 2 : i64, tpu.core_type = #tpu.core_type<tc>, window_params = [{transform_indices = @transform_0, window_bounds = array<i64: 2, 18, 16>}, {pipeline_mode = #tpu.pipeline_mode<synchronous>, transform_indices = @transform_1, window_bounds = array<i64: 3, 16, 256>}, {pipeline_mode = #tpu.pipeline_mode<synchronous>, transform_indices = @transform_2, window_bounds = array<i64: 3, 16, 256>}, {pipeline_mode = #tpu.pipeline_mode<synchronous>, transform_indices = @transform_3, window_bounds = array<i64: 1, 256>}, {pipeline_mode = #tpu.pipeline_mode<synchronous>, transform_indices = @transform_4, window_bounds = array<i64: 3, 256, 256>}, {pipeline_mode = #tpu.pipeline_mode<synchronous>, transform_indices = @transform_5, window_bounds = array<i64: 3, 256, 256>}, {pipeline_mode = #tpu.pipeline_mode<synchronous>, transform_indices = @transform_6, window_bounds = array<i64: 1, 256>}, {pipeline_mode = #tpu.pipeline_mode<synchronous>, transform_indices = @transform_7, window_bounds = array<i64: 3, 256, 512>}, {pipeline_mode = #tpu.pipeline_mode<synchronous>, transform_indices = @transform_8, window_bounds = array<i64: 1, 512>}, {pipeline_mode = #tpu.pipeline_mode<synchronous>, transform_indices = @transform_9, window_bounds = array<i64: 128, 128>}, {pipeline_mode = #tpu.pipeline_mode<synchronous>, transform_indices = @transform_10, window_bounds = array<i64: 1, 128>}, {transform_indices = @transform_11, window_bounds = array<i64: 2, 128>}]} {
    %c0 = arith.constant 0 : index
    %c0_0 = arith.constant 0 : index
    %0 = vector.load %arg4[%c0, %c0_0] : memref<1x256xf32, #tpu.memory_space<vmem>>, vector<1x256xf32>
    %c0_1 = arith.constant 0 : index
    %c0_2 = arith.constant 0 : index
    %c0_3 = arith.constant 0 : index
    %1 = vector.load %arg1[%c0_1, %c0_2, %c0_3] : memref<2x18x16xf32, #tpu.memory_space<vmem>>, vector<2x16x16xf32>
    %2 = vector.shape_cast %1 : vector<2x16x16xf32> to vector<32x16xf32>
    %c0_4 = arith.constant 0 : index
    %c0_5 = arith.constant 0 : index
    %c0_6 = arith.constant 0 : index
    %3 = vector.load %arg2[%c0_4, %c0_5, %c0_6] : memref<3x16x256xf32, #tpu.memory_space<vmem>>, vector<1x16x256xf32>
    %4 = vector.shape_cast %3 : vector<1x16x256xf32> to vector<16x256xf32>
    %cst = arith.constant dense<0.000000e+00> : vector<32x256xf32>
    %5 = tpu.matmul %2, %4, %cst {dimension_numbers = #tpu.dot_dimension_numbers<[1], [0], [0], [1], [0, 0, 1, 1], [], []>} : vector<32x16xf32>, vector<16x256xf32>, vector<32x256xf32> -> vector<32x256xf32>
    %c0_7 = arith.constant 0 : index
    %c0_8 = arith.constant 0 : index
    %c0_9 = arith.constant 0 : index
    %6 = vector.load %arg3[%c0_7, %c0_8, %c0_9] : memref<3x16x256xf32, #tpu.memory_space<vmem>>, vector<1x16x256xf32>
    %7 = vector.shape_cast %6 : vector<1x16x256xf32> to vector<16x256xf32>
    %cst_10 = arith.constant dense<0.000000e+00> : vector<32x256xf32>
    %8 = tpu.matmul %2, %7, %cst_10 {dimension_numbers = #tpu.dot_dimension_numbers<[1], [0], [0], [1], [0, 0, 1, 1], [], []>} : vector<32x16xf32>, vector<16x256xf32>, vector<32x256xf32> -> vector<32x256xf32>
    %c0_11 = arith.constant 0 : index
    %c1 = arith.constant 1 : index
    %c0_12 = arith.constant 0 : index
    %9 = vector.load %arg1[%c0_11, %c1, %c0_12] : memref<2x18x16xf32, #tpu.memory_space<vmem>>, vector<2x16x16xf32>
    %10 = vector.shape_cast %9 : vector<2x16x16xf32> to vector<32x16xf32>
    %c1_13 = arith.constant 1 : index
    %c0_14 = arith.constant 0 : index
    %c0_15 = arith.constant 0 : index
    %11 = vector.load %arg2[%c1_13, %c0_14, %c0_15] : memref<3x16x256xf32, #tpu.memory_space<vmem>>, vector<1x16x256xf32>
    %12 = vector.shape_cast %11 : vector<1x16x256xf32> to vector<16x256xf32>
    %cst_16 = arith.constant dense<0.000000e+00> : vector<32x256xf32>
    %13 = tpu.matmul %10, %12, %cst_16 {dimension_numbers = #tpu.dot_dimension_numbers<[1], [0], [0], [1], [0, 0, 1, 1], [], []>} : vector<32x16xf32>, vector<16x256xf32>, vector<32x256xf32> -> vector<32x256xf32>
    %c1_17 = arith.constant 1 : index
    %c0_18 = arith.constant 0 : index
    %c0_19 = arith.constant 0 : index
    %14 = vector.load %arg3[%c1_17, %c0_18, %c0_19] : memref<3x16x256xf32, #tpu.memory_space<vmem>>, vector<1x16x256xf32>
    %15 = vector.shape_cast %14 : vector<1x16x256xf32> to vector<16x256xf32>
    %cst_20 = arith.constant dense<0.000000e+00> : vector<32x256xf32>
    %16 = tpu.matmul %10, %15, %cst_20 {dimension_numbers = #tpu.dot_dimension_numbers<[1], [0], [0], [1], [0, 0, 1, 1], [], []>} : vector<32x16xf32>, vector<16x256xf32>, vector<32x256xf32> -> vector<32x256xf32>
    %17 = arith.addf %5, %13 : vector<32x256xf32>
    %18 = arith.addf %8, %16 : vector<32x256xf32>
    %c0_21 = arith.constant 0 : index
    %c2 = arith.constant 2 : index
    %c0_22 = arith.constant 0 : index
    %19 = vector.load %arg1[%c0_21, %c2, %c0_22] : memref<2x18x16xf32, #tpu.memory_space<vmem>>, vector<2x16x16xf32>
    %20 = vector.shape_cast %19 : vector<2x16x16xf32> to vector<32x16xf32>
    %c2_23 = arith.constant 2 : index
    %c0_24 = arith.constant 0 : index
    %c0_25 = arith.constant 0 : index
    %21 = vector.load %arg2[%c2_23, %c0_24, %c0_25] : memref<3x16x256xf32, #tpu.memory_space<vmem>>, vector<1x16x256xf32>
    %22 = vector.shape_cast %21 : vector<1x16x256xf32> to vector<16x256xf32>
    %cst_26 = arith.constant dense<0.000000e+00> : vector<32x256xf32>
    %23 = tpu.matmul %20, %22, %cst_26 {dimension_numbers = #tpu.dot_dimension_numbers<[1], [0], [0], [1], [0, 0, 1, 1], [], []>} : vector<32x16xf32>, vector<16x256xf32>, vector<32x256xf32> -> vector<32x256xf32>
    %c2_27 = arith.constant 2 : index
    %c0_28 = arith.constant 0 : index
    %c0_29 = arith.constant 0 : index
    %24 = vector.load %arg3[%c2_27, %c0_28, %c0_29] : memref<3x16x256xf32, #tpu.memory_space<vmem>>, vector<1x16x256xf32>
    %25 = vector.shape_cast %24 : vector<1x16x256xf32> to vector<16x256xf32>
    %cst_30 = arith.constant dense<0.000000e+00> : vector<32x256xf32>
    %26 = tpu.matmul %20, %25, %cst_30 {dimension_numbers = #tpu.dot_dimension_numbers<[1], [0], [0], [1], [0, 0, 1, 1], [], []>} : vector<32x16xf32>, vector<16x256xf32>, vector<32x256xf32> -> vector<32x256xf32>
    %27 = arith.addf %17, %23 : vector<32x256xf32>
    %28 = arith.addf %18, %26 : vector<32x256xf32>
    %29 = arith.maximumf %27, %28 : vector<32x256xf32>
    %30 = vector.broadcast %0 : vector<1x256xf32> to vector<32x256xf32>
    %31 = arith.addf %29, %30 : vector<32x256xf32>
    %cst_31 = arith.constant 0.000000e+00 : f32
    %32 = vector.broadcast %cst_31 : f32 to vector<32x256xf32>
    %33 = arith.maximumf %31, %32 : vector<32x256xf32>
    %34 = vector.shape_cast %33 : vector<32x256xf32> to vector<16x2x256xf32>
    %35 = vector.extract_strided_slice %34 {offsets = [0, 0, 0], sizes = [16, 1, 256], strides = [1, 1, 1]} : vector<16x2x256xf32> to vector<16x1x256xf32>
    %36 = vector.shape_cast %35 : vector<16x1x256xf32> to vector<16x256xf32>
    %37 = vector.extract_strided_slice %34 {offsets = [0, 1, 0], sizes = [16, 1, 256], strides = [1, 1, 1]} : vector<16x2x256xf32> to vector<16x1x256xf32>
    %38 = vector.shape_cast %37 : vector<16x1x256xf32> to vector<16x256xf32>
    %39 = arith.maximumf %36, %38 : vector<16x256xf32>
    %cst_32 = arith.constant 0.000000e+00 : f32
    %40 = vector.broadcast %cst_32 : f32 to vector<2x1x256xf32>
    %c0_33 = arith.constant 0 : index
    %c0_34 = arith.constant 0 : index
    %c0_35 = arith.constant 0 : index
    %41 = vector.load %arg13[%c0_33, %c0_34, %c0_35] : memref<2x10x256xf32, #tpu.memory_space<vmem>>, vector<2x1x256xf32>
    tpu.vector_store %arg13[%c0_33, %c0_34, %c0_35], %40 {strides = array<i32>} : memref<2x10x256xf32, #tpu.memory_space<vmem>>, vector<2x1x256xf32>,
    %c0_36 = arith.constant 0 : index
    %c9 = arith.constant 9 : index
    %c0_37 = arith.constant 0 : index
    %42 = vector.load %arg13[%c0_36, %c9, %c0_37] : memref<2x10x256xf32, #tpu.memory_space<vmem>>, vector<2x1x256xf32>
    tpu.vector_store %arg13[%c0_36, %c9, %c0_37], %40 {strides = array<i32>} : memref<2x10x256xf32, #tpu.memory_space<vmem>>, vector<2x1x256xf32>,
    %43 = vector.shape_cast %39 : vector<16x256xf32> to vector<2x8x256xf32>
    %c0_38 = arith.constant 0 : index
    %c1_39 = arith.constant 1 : index
    %c0_40 = arith.constant 0 : index
    %44 = vector.load %arg13[%c0_38, %c1_39, %c0_40] : memref<2x10x256xf32, #tpu.memory_space<vmem>>, vector<2x8x256xf32>
    tpu.vector_store %arg13[%c0_38, %c1_39, %c0_40], %43 {strides = array<i32>} : memref<2x10x256xf32, #tpu.memory_space<vmem>>, vector<2x8x256xf32>,
    %c0_41 = arith.constant 0 : index
    %c0_42 = arith.constant 0 : index
    %45 = vector.load %arg7[%c0_41, %c0_42] : memref<1x256xf32, #tpu.memory_space<vmem>>, vector<1x256xf32>
    %c0_43 = arith.constant 0 : index
    %c0_44 = arith.constant 0 : index
    %c0_45 = arith.constant 0 : index
    %46 = vector.load %arg13[%c0_43, %c0_44, %c0_45] : memref<2x10x256xf32, #tpu.memory_space<vmem>>, vector<2x8x256xf32>
    %47 = vector.shape_cast %46 : vector<2x8x256xf32> to vector<16x256xf32>
    %48 = arith.truncf %47 : vector<16x256xf32> to vector<16x256xbf16>
    %c0_46 = arith.constant 0 : index
    %c0_47 = arith.constant 0 : index
    %c0_48 = arith.constant 0 : index
    %49 = vector.load %arg5[%c0_46, %c0_47, %c0_48] : memref<3x256x256xbf16, #tpu.memory_space<vmem>>, vector<1x256x256xbf16>
    %50 = vector.shape_cast %49 : vector<1x256x256xbf16> to vector<256x256xbf16>
    %cst_49 = arith.constant dense<0.000000e+00> : vector<16x256xf32>
    %51 = tpu.matmul %48, %50, %cst_49 {dimension_numbers = #tpu.dot_dimension_numbers<[1], [0], [0], [1], [0, 0, 1, 1], [], []>} : vector<16x256xbf16>, vector<256x256xbf16>, vector<16x256xf32> -> vector<16x256xf32>
    %c0_50 = arith.constant 0 : index
    %c0_51 = arith.constant 0 : index
    %c0_52 = arith.constant 0 : index
    %52 = vector.load %arg6[%c0_50, %c0_51, %c0_52] : memref<3x256x256xbf16, #tpu.memory_space<vmem>>, vector<1x256x256xbf16>
    %53 = vector.shape_cast %52 : vector<1x256x256xbf16> to vector<256x256xbf16>
    %cst_53 = arith.constant dense<0.000000e+00> : vector<16x256xf32>
    %54 = tpu.matmul %48, %53, %cst_53 {dimension_numbers = #tpu.dot_dimension_numbers<[1], [0], [0], [1], [0, 0, 1, 1], [], []>} : vector<16x256xbf16>, vector<256x256xbf16>, vector<16x256xf32> -> vector<16x256xf32>
    %c0_54 = arith.constant 0 : index
    %c1_55 = arith.constant 1 : index
    %c0_56 = arith.constant 0 : index
    %55 = vector.load %arg13[%c0_54, %c1_55, %c0_56] : memref<2x10x256xf32, #tpu.memory_space<vmem>>, vector<2x8x256xf32>
    %56 = vector.shape_cast %55 : vector<2x8x256xf32> to vector<16x256xf32>
    %57 = arith.truncf %56 : vector<16x256xf32> to vector<16x256xbf16>
    %c1_57 = arith.constant 1 : index
    %c0_58 = arith.constant 0 : index
    %c0_59 = arith.constant 0 : index
    %58 = vector.load %arg5[%c1_57, %c0_58, %c0_59] : memref<3x256x256xbf16, #tpu.memory_space<vmem>>, vector<1x256x256xbf16>
    %59 = vector.shape_cast %58 : vector<1x256x256xbf16> to vector<256x256xbf16>
    %cst_60 = arith.constant dense<0.000000e+00> : vector<16x256xf32>
    %60 = tpu.matmul %57, %59, %cst_60 {dimension_numbers = #tpu.dot_dimension_numbers<[1], [0], [0], [1], [0, 0, 1, 1], [], []>} : vector<16x256xbf16>, vector<256x256xbf16>, vector<16x256xf32> -> vector<16x256xf32>
    %c1_61 = arith.constant 1 : index
    %c0_62 = arith.constant 0 : index
    %c0_63 = arith.constant 0 : index
    %61 = vector.load %arg6[%c1_61, %c0_62, %c0_63] : memref<3x256x256xbf16, #tpu.memory_space<vmem>>, vector<1x256x256xbf16>
    %62 = vector.shape_cast %61 : vector<1x256x256xbf16> to vector<256x256xbf16>
    %cst_64 = arith.constant dense<0.000000e+00> : vector<16x256xf32>
    %63 = tpu.matmul %57, %62, %cst_64 {dimension_numbers = #tpu.dot_dimension_numbers<[1], [0], [0], [1], [0, 0, 1, 1], [], []>} : vector<16x256xbf16>, vector<256x256xbf16>, vector<16x256xf32> -> vector<16x256xf32>
    %64 = arith.addf %51, %60 : vector<16x256xf32>
    %65 = arith.addf %54, %63 : vector<16x256xf32>
    %c0_65 = arith.constant 0 : index
    %c2_66 = arith.constant 2 : index
    %c0_67 = arith.constant 0 : index
    %66 = vector.load %arg13[%c0_65, %c2_66, %c0_67] : memref<2x10x256xf32, #tpu.memory_space<vmem>>, vector<2x8x256xf32>
    %67 = vector.shape_cast %66 : vector<2x8x256xf32> to vector<16x256xf32>
    %68 = arith.truncf %67 : vector<16x256xf32> to vector<16x256xbf16>
    %c2_68 = arith.constant 2 : index
    %c0_69 = arith.constant 0 : index
    %c0_70 = arith.constant 0 : index
    %69 = vector.load %arg5[%c2_68, %c0_69, %c0_70] : memref<3x256x256xbf16, #tpu.memory_space<vmem>>, vector<1x256x256xbf16>
    %70 = vector.shape_cast %69 : vector<1x256x256xbf16> to vector<256x256xbf16>
    %cst_71 = arith.constant dense<0.000000e+00> : vector<16x256xf32>
    %71 = tpu.matmul %68, %70, %cst_71 {dimension_numbers = #tpu.dot_dimension_numbers<[1], [0], [0], [1], [0, 0, 1, 1], [], []>} : vector<16x256xbf16>, vector<256x256xbf16>, vector<16x256xf32> -> vector<16x256xf32>
    %c2_72 = arith.constant 2 : index
    %c0_73 = arith.constant 0 : index
    %c0_74 = arith.constant 0 : index
    %72 = vector.load %arg6[%c2_72, %c0_73, %c0_74] : memref<3x256x256xbf16, #tpu.memory_space<vmem>>, vector<1x256x256xbf16>
    %73 = vector.shape_cast %72 : vector<1x256x256xbf16> to vector<256x256xbf16>
    %cst_75 = arith.constant dense<0.000000e+00> : vector<16x256xf32>
    %74 = tpu.matmul %68, %73, %cst_75 {dimension_numbers = #tpu.dot_dimension_numbers<[1], [0], [0], [1], [0, 0, 1, 1], [], []>} : vector<16x256xbf16>, vector<256x256xbf16>, vector<16x256xf32> -> vector<16x256xf32>
    %75 = arith.addf %64, %71 : vector<16x256xf32>
    %76 = arith.addf %65, %74 : vector<16x256xf32>
    %77 = arith.maximumf %75, %76 : vector<16x256xf32>
    %78 = vector.broadcast %45 : vector<1x256xf32> to vector<16x256xf32>
    %79 = arith.addf %77, %78 : vector<16x256xf32>
    %cst_76 = arith.constant 0.000000e+00 : f32
    %80 = vector.broadcast %cst_76 : f32 to vector<16x256xf32>
    %81 = arith.maximumf %79, %80 : vector<16x256xf32>
    %82 = vector.shape_cast %81 : vector<16x256xf32> to vector<8x2x256xf32>
    %83 = vector.extract_strided_slice %82 {offsets = [0, 0, 0], sizes = [8, 1, 256], strides = [1, 1, 1]} : vector<8x2x256xf32> to vector<8x1x256xf32>
    %84 = vector.shape_cast %83 : vector<8x1x256xf32> to vector<8x256xf32>
    %85 = vector.extract_strided_slice %82 {offsets = [0, 1, 0], sizes = [8, 1, 256], strides = [1, 1, 1]} : vector<8x2x256xf32> to vector<8x1x256xf32>
    %86 = vector.shape_cast %85 : vector<8x1x256xf32> to vector<8x256xf32>
    %87 = arith.maximumf %84, %86 : vector<8x256xf32>
    %cst_77 = arith.constant 0.000000e+00 : f32
    %88 = vector.broadcast %cst_77 : f32 to vector<2x1x256xf32>
    %c0_78 = arith.constant 0 : index
    %c0_79 = arith.constant 0 : index
    %c0_80 = arith.constant 0 : index
    %89 = vector.load %arg14[%c0_78, %c0_79, %c0_80] : memref<2x6x256xf32, #tpu.memory_space<vmem>>, vector<2x1x256xf32>
    tpu.vector_store %arg14[%c0_78, %c0_79, %c0_80], %88 {strides = array<i32>} : memref<2x6x256xf32, #tpu.memory_space<vmem>>, vector<2x1x256xf32>,
    %c0_81 = arith.constant 0 : index
    %c5 = arith.constant 5 : index
    %c0_82 = arith.constant 0 : index
    %90 = vector.load %arg14[%c0_81, %c5, %c0_82] : memref<2x6x256xf32, #tpu.memory_space<vmem>>, vector<2x1x256xf32>
    tpu.vector_store %arg14[%c0_81, %c5, %c0_82], %88 {strides = array<i32>} : memref<2x6x256xf32, #tpu.memory_space<vmem>>, vector<2x1x256xf32>,
    %91 = vector.shape_cast %87 : vector<8x256xf32> to vector<2x4x256xf32>
    %c0_83 = arith.constant 0 : index
    %c1_84 = arith.constant 1 : index
    %c0_85 = arith.constant 0 : index
    %92 = vector.load %arg14[%c0_83, %c1_84, %c0_85] : memref<2x6x256xf32, #tpu.memory_space<vmem>>, vector<2x4x256xf32>
    tpu.vector_store %arg14[%c0_83, %c1_84, %c0_85], %91 {strides = array<i32>} : memref<2x6x256xf32, #tpu.memory_space<vmem>>, vector<2x4x256xf32>,
    %c0_86 = arith.constant 0 : index
    %c0_87 = arith.constant 0 : index
    %c0_88 = arith.constant 0 : index
    %93 = vector.load %arg14[%c0_86, %c0_87, %c0_88] : memref<2x6x256xf32, #tpu.memory_space<vmem>>, vector<2x4x256xf32>
    %94 = vector.shape_cast %93 : vector<2x4x256xf32> to vector<8x256xf32>
    %95 = arith.truncf %94 : vector<8x256xf32> to vector<8x256xbf16>
    %c0_89 = arith.constant 0 : index
    %c0_90 = arith.constant 0 : index
    %c0_91 = arith.constant 0 : index
    %96 = vector.load %arg8[%c0_89, %c0_90, %c0_91] : memref<3x256x512xbf16, #tpu.memory_space<vmem>>, vector<1x256x512xbf16>
    %97 = vector.shape_cast %96 : vector<1x256x512xbf16> to vector<256x512xbf16>
    %cst_92 = arith.constant dense<0.000000e+00> : vector<8x512xf32>
    %98 = tpu.matmul %95, %97, %cst_92 {dimension_numbers = #tpu.dot_dimension_numbers<[1], [0], [0], [1], [0, 0, 1, 1], [], []>} : vector<8x256xbf16>, vector<256x512xbf16>, vector<8x512xf32> -> vector<8x512xf32>
    %c0_93 = arith.constant 0 : index
    %c1_94 = arith.constant 1 : index
    %c0_95 = arith.constant 0 : index
    %99 = vector.load %arg14[%c0_93, %c1_94, %c0_95] : memref<2x6x256xf32, #tpu.memory_space<vmem>>, vector<2x4x256xf32>
    %100 = vector.shape_cast %99 : vector<2x4x256xf32> to vector<8x256xf32>
    %101 = arith.truncf %100 : vector<8x256xf32> to vector<8x256xbf16>
    %c1_96 = arith.constant 1 : index
    %c0_97 = arith.constant 0 : index
    %c0_98 = arith.constant 0 : index
    %102 = vector.load %arg8[%c1_96, %c0_97, %c0_98] : memref<3x256x512xbf16, #tpu.memory_space<vmem>>, vector<1x256x512xbf16>
    %103 = vector.shape_cast %102 : vector<1x256x512xbf16> to vector<256x512xbf16>
    %cst_99 = arith.constant dense<0.000000e+00> : vector<8x512xf32>
    %104 = tpu.matmul %101, %103, %cst_99 {dimension_numbers = #tpu.dot_dimension_numbers<[1], [0], [0], [1], [0, 0, 1, 1], [], []>} : vector<8x256xbf16>, vector<256x512xbf16>, vector<8x512xf32> -> vector<8x512xf32>
    %105 = arith.addf %98, %104 : vector<8x512xf32>
    %c0_100 = arith.constant 0 : index
    %c2_101 = arith.constant 2 : index
    %c0_102 = arith.constant 0 : index
    %106 = vector.load %arg14[%c0_100, %c2_101, %c0_102] : memref<2x6x256xf32, #tpu.memory_space<vmem>>, vector<2x4x256xf32>
    %107 = vector.shape_cast %106 : vector<2x4x256xf32> to vector<8x256xf32>
    %108 = arith.truncf %107 : vector<8x256xf32> to vector<8x256xbf16>
    %c2_103 = arith.constant 2 : index
    %c0_104 = arith.constant 0 : index
    %c0_105 = arith.constant 0 : index
    %109 = vector.load %arg8[%c2_103, %c0_104, %c0_105] : memref<3x256x512xbf16, #tpu.memory_space<vmem>>, vector<1x256x512xbf16>
    %110 = vector.shape_cast %109 : vector<1x256x512xbf16> to vector<256x512xbf16>
    %cst_106 = arith.constant dense<0.000000e+00> : vector<8x512xf32>
    %111 = tpu.matmul %108, %110, %cst_106 {dimension_numbers = #tpu.dot_dimension_numbers<[1], [0], [0], [1], [0, 0, 1, 1], [], []>} : vector<8x256xbf16>, vector<256x512xbf16>, vector<8x512xf32> -> vector<8x512xf32>
    %112 = arith.addf %105, %111 : vector<8x512xf32>
    %c0_107 = arith.constant 0 : index
    %c0_108 = arith.constant 0 : index
    %113 = vector.load %arg9[%c0_107, %c0_108] : memref<1x512xf32, #tpu.memory_space<vmem>>, vector<1x512xf32>
    %114 = vector.broadcast %113 : vector<1x512xf32> to vector<8x512xf32>
    %115 = arith.addf %112, %114 : vector<8x512xf32>
    %cst_109 = arith.constant 0.000000e+00 : f32
    %116 = vector.broadcast %cst_109 : f32 to vector<8x512xf32>
    %117 = arith.maximumf %115, %116 : vector<8x512xf32>
    %118 = vector.shape_cast %117 : vector<8x512xf32> to vector<2x4x512xf32>
    %119 = vector.extract_strided_slice %118 {offsets = [0, 0, 0], sizes = [2, 1, 512], strides = [1, 1, 1]} : vector<2x4x512xf32> to vector<2x1x512xf32>
    %120 = vector.shape_cast %119 : vector<2x1x512xf32> to vector<2x512xf32>
    %121 = vector.extract_strided_slice %118 {offsets = [0, 1, 0], sizes = [2, 1, 512], strides = [1, 1, 1]} : vector<2x4x512xf32> to vector<2x1x512xf32>
    %122 = vector.shape_cast %121 : vector<2x1x512xf32> to vector<2x512xf32>
    %123 = arith.addf %120, %122 : vector<2x512xf32>
    %124 = vector.extract_strided_slice %118 {offsets = [0, 2, 0], sizes = [2, 1, 512], strides = [1, 1, 1]} : vector<2x4x512xf32> to vector<2x1x512xf32>
    %125 = vector.shape_cast %124 : vector<2x1x512xf32> to vector<2x512xf32>
    %126 = arith.addf %123, %125 : vector<2x512xf32>
    %127 = vector.extract_strided_slice %118 {offsets = [0, 3, 0], sizes = [2, 1, 512], strides = [1, 1, 1]} : vector<2x4x512xf32> to vector<2x1x512xf32>
    %128 = vector.shape_cast %127 : vector<2x1x512xf32> to vector<2x512xf32>
    %129 = arith.addf %126, %128 : vector<2x512xf32>
    %130 = vector.extract_strided_slice %129 {offsets = [0, 0], sizes = [2, 128], strides = [1, 1]} : vector<2x512xf32> to vector<2x128xf32>
    %131 = vector.extract_strided_slice %129 {offsets = [0, 128], sizes = [2, 128], strides = [1, 1]} : vector<2x512xf32> to vector<2x128xf32>
    %132 = arith.addf %130, %131 : vector<2x128xf32>
    %133 = vector.extract_strided_slice %129 {offsets = [0, 256], sizes = [2, 128], strides = [1, 1]} : vector<2x512xf32> to vector<2x128xf32>
    %134 = arith.addf %132, %133 : vector<2x128xf32>
    %135 = vector.extract_strided_slice %129 {offsets = [0, 384], sizes = [2, 128], strides = [1, 1]} : vector<2x512xf32> to vector<2x128xf32>
    %136 = arith.addf %134, %135 : vector<2x128xf32>
    %cst_110 = arith.constant 6.250000e-02 : f32
    %137 = vector.broadcast %cst_110 : f32 to vector<2x128xf32>
    %138 = arith.mulf %136, %137 : vector<2x128xf32>
    %c0_111 = arith.constant 0 : index
    %c0_112 = arith.constant 0 : index
    %139 = vector.load %arg10[%c0_111, %c0_112] : memref<128x128xf32, #tpu.memory_space<vmem>>, vector<128x128xf32>
    %cst_113 = arith.constant dense<0.000000e+00> : vector<2x128xf32>
    %140 = tpu.matmul %138, %139, %cst_113 {dimension_numbers = #tpu.dot_dimension_numbers<[1], [0], [0], [1], [0, 0, 1, 1], [], []>} : vector<2x128xf32>, vector<128x128xf32>, vector<2x128xf32> -> vector<2x128xf32>
    %c0_114 = arith.constant 0 : index
    %c0_115 = arith.constant 0 : index
    %141 = vector.load %arg11[%c0_114, %c0_115] : memref<1x128xf32, #tpu.memory_space<vmem>>, vector<1x128xf32>
    %142 = vector.broadcast %141 : vector<1x128xf32> to vector<2x128xf32>
    %143 = arith.addf %140, %142 : vector<2x128xf32>
    %144 = arith.mulf %143, %143 : vector<2x128xf32>
    %cst_116 = arith.constant dense<0.000000e+00> : vector<2xf32>
    %145 = vector.multi_reduction <add>, %144, %cst_116 [1] : vector<2x128xf32> to vector<2xf32>
    %146 = vector.shape_cast %145 : vector<2xf32> to vector<2x1xf32>
    %147 = math.sqrt %146 : vector<2x1xf32>
    %cst_117 = arith.constant 9.99999996E-13 : f32
    %148 = vector.broadcast %cst_117 : f32 to vector<2x1xf32>
    %149 = arith.maximumf %147, %148 : vector<2x1xf32>
    %150 = vector.broadcast %149 : vector<2x1xf32> to vector<2x128xf32>
    %151 = arith.divf %143, %150 : vector<2x128xf32>
    %c0_118 = arith.constant 0 : index
    %c0_119 = arith.constant 0 : index
    %152 = vector.load %arg12[%c0_118, %c0_119] : memref<2x128xf32, #tpu.memory_space<vmem>>, vector<2x128xf32>
    tpu.vector_store %arg12[%c0_118, %c0_119], %151 {strides = array<i32>} : memref<2x128xf32, #tpu.memory_space<vmem>>, vector<2x128xf32>,
    return
  }
  func.func @transform_0(%arg0: i32) -> (i32, i32, i32) {
    %c0_i32 = arith.constant 0 : i32
    %c0_i32_0 = arith.constant 0 : i32
    %c0_i32_1 = arith.constant 0 : i32
    return %arg0, %c0_i32, %c0_i32_0 : i32, i32, i32
  }
  func.func @transform_1(%arg0: i32) -> (i32, i32, i32) {
    %c0_i32 = arith.constant 0 : i32
    %c0_i32_0 = arith.constant 0 : i32
    %c0_i32_1 = arith.constant 0 : i32
    %c0_i32_2 = arith.constant 0 : i32
    return %c0_i32, %c0_i32_0, %c0_i32_1 : i32, i32, i32
  }
  func.func @transform_2(%arg0: i32) -> (i32, i32, i32) {
    %c0_i32 = arith.constant 0 : i32
    %c0_i32_0 = arith.constant 0 : i32
    %c0_i32_1 = arith.constant 0 : i32
    %c0_i32_2 = arith.constant 0 : i32
    return %c0_i32, %c0_i32_0, %c0_i32_1 : i32, i32, i32
  }
  func.func @transform_3(%arg0: i32) -> (i32, i32) {
    %c0_i32 = arith.constant 0 : i32
    %c0_i32_0 = arith.constant 0 : i32
    %c0_i32_1 = arith.constant 0 : i32
    return %c0_i32, %c0_i32_0 : i32, i32
  }
  func.func @transform_4(%arg0: i32) -> (i32, i32, i32) {
    %c0_i32 = arith.constant 0 : i32
    %c0_i32_0 = arith.constant 0 : i32
    %c0_i32_1 = arith.constant 0 : i32
    %c0_i32_2 = arith.constant 0 : i32
    return %c0_i32, %c0_i32_0, %c0_i32_1 : i32, i32, i32
  }
  func.func @transform_5(%arg0: i32) -> (i32, i32, i32) {
    %c0_i32 = arith.constant 0 : i32
    %c0_i32_0 = arith.constant 0 : i32
    %c0_i32_1 = arith.constant 0 : i32
    %c0_i32_2 = arith.constant 0 : i32
    return %c0_i32, %c0_i32_0, %c0_i32_1 : i32, i32, i32
  }
  func.func @transform_6(%arg0: i32) -> (i32, i32) {
    %c0_i32 = arith.constant 0 : i32
    %c0_i32_0 = arith.constant 0 : i32
    %c0_i32_1 = arith.constant 0 : i32
    return %c0_i32, %c0_i32_0 : i32, i32
  }
  func.func @transform_7(%arg0: i32) -> (i32, i32, i32) {
    %c0_i32 = arith.constant 0 : i32
    %c0_i32_0 = arith.constant 0 : i32
    %c0_i32_1 = arith.constant 0 : i32
    %c0_i32_2 = arith.constant 0 : i32
    return %c0_i32, %c0_i32_0, %c0_i32_1 : i32, i32, i32
  }
  func.func @transform_8(%arg0: i32) -> (i32, i32) {
    %c0_i32 = arith.constant 0 : i32
    %c0_i32_0 = arith.constant 0 : i32
    %c0_i32_1 = arith.constant 0 : i32
    return %c0_i32, %c0_i32_0 : i32, i32
  }
  func.func @transform_9(%arg0: i32) -> (i32, i32) {
    %c0_i32 = arith.constant 0 : i32
    %c0_i32_0 = arith.constant 0 : i32
    %c0_i32_1 = arith.constant 0 : i32
    return %c0_i32, %c0_i32_0 : i32, i32
  }
  func.func @transform_10(%arg0: i32) -> (i32, i32) {
    %c0_i32 = arith.constant 0 : i32
    %c0_i32_0 = arith.constant 0 : i32
    %c0_i32_1 = arith.constant 0 : i32
    return %c0_i32, %c0_i32_0 : i32, i32
  }
  func.func @transform_11(%arg0: i32) -> (i32, i32) {
    %c0_i32 = arith.constant 0 : i32
    %c0_i32_0 = arith.constant 0 : i32
    return %arg0, %c0_i32 : i32, i32
  }
}

</mosaic_0001>

<bundles_post_ra>
// kernel: tile.18
= control target key start
LH: loop header
LB: loop body
LE: loop exit
PB: predicated region body
PF: predicated region fallthrough
CT: control target
= control target key end

     0   :  { %s22_s0 = inlined_call_operand.vmem [shape: f32[32], index: 0, kind: input, shape index: {}]   ;;  %s23_s1 = inlined_call_operand.vmem [shape: f32[8,32], index: 1, kind: output, shape index: {}]  }
   0x1   :  { %v4_v0 = vld [vmem:[%s22_s0] ss:$0 sm:$0xff] }
   0x2   :  { %5 = vst [vmem:[%s23_s1] sm:$0xff] %v4_v0 }

// kernel: tile.19
= control target key start
LH: loop header
LB: loop body
LE: loop exit
PB: predicated region body
PF: predicated region fallthrough
CT: control target
= control target key end

     0   :  { %s7_s6 = smov 3  ;;  %s46_s9 = smov 96   ;;  %vm4_vm0 = vcmask 261120   ;;  %vm11_vm1 = vcmask 1048320   ;;  %vm18_vm2 = vcmask 785920   ;;  %vm25_vm3 = vcmask 523520   ;;  %s77_s0 = inlined_call_operand.vmem [shape: f32[8,32], index: 0, kind: input, shape index: {}]   ;;  %s78_s1 = inlined_call_operand.vmem [shape: f32[1,256], index: 1, kind: output, shape index: {}]  }
   0x1   :  { %v39_v0 = vld [vmem:[%s77_s0 + $0x3] ss:$4 sm:%s7_s6]   ;;  %s21_s10 = smov 3  ;;  %s14_s13 = smov 3 }
   0x2   :  { %9 = vrot.lane.b32.xlu0 %v39_v0, %s46_s9  ;;  %v41_v1 = vld [vmem:[%s77_s0 + $0x1] ss:$4 sm:%s21_s10]   ;;  %s47_s14 = smov 32   ;;  %s48_s17 = smov 64  }
   0x3   :  { %23 = vrot.lane.b32.xlu1 %v41_v1, %s47_s14  ;;  %v40_v2 = vld [vmem:[%s77_s0 + $0x2] ss:$4 sm:%s14_s13]   ;;  %s2_s18 = smov 3 }
   0x4   :  { %v3_v3 = vld [vmem:[%s77_s0] ss:$4 sm:%s2_s18]  }
   0x5   :  { %5 = vst.msk [vmem:[#allocation0] ss:$8 sm:$0x3] %vm4_vm0, %v3_v3  }
   0xa   :  { %16 = vrot.lane.b32.xlu0 %v40_v2, %s48_s17 }
  0x74   :  { %v10_v4 = vpop.permute.xlu0 %9  }
  0x75   :  { %12 = vst.msk [vmem:[#allocation0] ss:$8 sm:$0x3] %vm11_vm1, %v10_v4   ;;  %v24_v5 = vpop.permute.xlu1 %23  }
  0x7c   :  { %v17_v6 = vpop.permute.xlu0 %16  }
  0x7d   :  { %19 = vst.msk [vmem:[#allocation0] ss:$8 sm:$0x3] %vm18_vm2, %v17_v6  }
  0x7e   :  { %26 = vst.msk [vmem:[#allocation0] ss:$8 sm:$0x3] %vm25_vm3, %v24_v5  }
  0x85   :  { %v29_v7 = vld [vmem:[#allocation0] sm:$0x1]  ;;  %v34_v8 = vld [vmem:[#allocation0 + $0x8] sm:$0x1] }
  0x86   :  { %32 = vst [vmem:[%s78_s1] sm:$0x1] %v29_v7 }
  0x87   :  { %42 = vst [vmem:[%s78_s1 + $0x1] sm:$0x1] %v34_v8 }

// kernel: tile.23
= control target key start
LH: loop header
LB: loop body
LE: loop exit
PB: predicated region body
PF: predicated region fallthrough
CT: control target
= control target key end

     0   :  { %s22_s0 = inlined_call_operand.vmem [shape: f32[64], index: 0, kind: input, shape index: {}]   ;;  %s23_s1 = inlined_call_operand.vmem [shape: f32[4,64], index: 1, kind: output, shape index: {}]  }
   0x1   :  { %v4_v0 = vld [vmem:[%s22_s0] ss:$0 sm:$0xff] }
   0x2   :  { %5 = vst [vmem:[%s23_s1] sm:$0xf] %v4_v0 }

// kernel: tile.24
= control target key start
LH: loop header
LB: loop body
LE: loop exit
PB: predicated region body
PF: predicated region fallthrough
CT: control target
= control target key end

     0   :  { %s6_s8 = smov 3  ;;  %vm8_vm0 = vcmask 523264   ;;  %s31_s9 = smov 64   ;;  %vm15_vm1 = vcmask 1048064   ;;  %s51_s0 = inlined_call_operand.vmem [shape: f32[4,64], index: 0, kind: input, shape index: {}]   ;;  %s52_s1 = inlined_call_operand.vmem [shape: f32[1,256], index: 1, kind: output, shape index: {}]  }
   0x1   :  { %v4_v0 = vld [vmem:[%s51_s0] sm:$0xf]  ;;  %s11_s0 = smov 3 }
   0x2   :  { %5 = vst [vmem:[#allocation1] sm:$0xf] %v4_v0 }
   0x9   :  { %v12_v1 = vld [vmem:[#allocation1 + $0x1] ss:$2 sm:%s11_s0]   ;;  %v7_v2 = vld [vmem:[#allocation1] ss:$2 sm:%s6_s8]  }
   0xa   :  { %13 = vrot.lane.b32.xlu0 %v12_v1, %s31_s9  ;;  %9 = vst.msk [vmem:[#allocation0] ss:$8 sm:$0x3] %vm8_vm0, %v7_v2  }
  0x7c   :  { %v14_v3 = vpop.permute.xlu0 %13  }
  0x7d   :  { %16 = vst.msk [vmem:[#allocation0] ss:$8 sm:$0x3] %vm15_vm1, %v14_v3  }
  0x84   :  { %v19_v4 = vld [vmem:[#allocation0] sm:$0x1]  ;;  %v24_v5 = vld [vmem:[#allocation0 + $0x8] sm:$0x1] }
  0x85   :  { %22 = vst [vmem:[%s52_s1] sm:$0x1] %v19_v4 }
  0x86   :  { %29 = vst [vmem:[%s52_s1 + $0x1] sm:$0x1] %v24_v5 }

// kernel: tile.28
= control target key start
LH: loop header
LB: loop body
LE: loop exit
PB: predicated region body
PF: predicated region fallthrough
CT: control target
= control target key end

     0   :  { %s22_s0 = inlined_call_operand.vmem [shape: f32[128], index: 0, kind: input, shape index: {}]   ;;  %s23_s1 = inlined_call_operand.vmem [shape: f32[4,128], index: 1, kind: output, shape index: {}]  }
   0x1   :  { %v4_v0 = vld [vmem:[%s22_s0] ss:$0 sm:$0xff] }
   0x2   :  { %5 = vst [vmem:[%s23_s1] sm:$0xf] %v4_v0 }

// kernel: forward.1
= control target key start
LH: loop header
LB: loop body
LE: loop exit
PB: predicated region body
PF: predicated region fallthrough
CT: control target
= control target key end

     0   :  { %vm61_vm0 = vcmask 130048   ;;  %s9517_s0 = inlined_call_operand.vmem [shape: f32[2,18,16], index: 0, kind: input, shape index: {}]   ;;  %s9518_s1 = inlined_call_operand.vmem [shape: f32[3,16,256], index: 1, kind: input, shape index: {}]   ;;  %s9519_s2 = inlined_call_operand.vmem [shape: f32[3,16,256], index: 2, kind: input, shape index: {}]   ;;  %s9520_s3 = inlined_call_operand.vmem [shape: f32[1,256], index: 3, kind: input, shape index: {}]   ;;  %s9521_s4 = inlined_call_operand.vmem [shape: bf16[3,256,256], index: 4, kind: input, shape index: {}]   ;;  %s9522_s5 = inlined_call_operand.vmem [shape: bf16[3,256,256], index: 5, kind: input, shape index: {}]   ;;  %s9523_s6 = inlined_call_operand.vmem [shape: f32[1,256], index: 6, kind: input, shape index: {}]   ;;  %s9524_s7 = inlined_call_operand.vmem [shape: bf16[3,256,512], index: 7, kind: input, shape index: {}]   ;;  %s9525_s8 = inlined_call_operand.vmem [shape: f32[1,512], index: 8, kind: input, shape index: {}]   ;;  %s9526_s9 = inlined_call_operand.vmem [shape: f32[128,128], index: 9, kind: input, shape index: {}]   ;;  %s9527_s10 = inlined_call_operand.vmem [shape: f32[1,128], index: 10, kind: input, shape index: {}]   ;;  %s9528_s11 = inlined_call_operand.hbm [shape: f32[2,128], index: 11, kind: output, shape index: {}]  }
   0x1   :  { %v4213_v0 = vld [vmem:[%s9518_s1 + $0x30] sm:$0xff]  ;;  %v4226_v1 = vld [vmem:[%s9519_s2 + $0x38] sm:$0xff]  ;;  %v4211_v2 = vld [vmem:[%s9518_s1 + $0x20] sm:$0xff] }
   0x2   :  { %88 = vmatpush.msra.mxu0 %v4213_v0  ;;  %6495 = vmatpush.msra.mxu1 %v4213_v0  ;;  %v4224_v3 = vld [vmem:[%s9519_s2 + $0x28] sm:$0xff]  ;;  %v54_v5 = vld [vmem:[%s9517_s0 + $0x19] sm:$0xff]  ;;  %v4225_v8 = vld [vmem:[%s9519_s2 + $0x30] sm:$0xff] }
   0x3   :  { %6496 = vmatpush.msra.mxu2 %v4213_v0  ;;  %180 = vmatpush.msra.mxu3 %v4226_v1  ;;  %v52_v4 = vld [vmem:[%s9517_s0 + $0x1] sm:$0xff]  ;;  %v4214_v7 = vld [vmem:[%s9518_s1 + $0x38] sm:$0xff]  ;;  %v46_v9 = vld [vmem:[%s9518_s1 + $0x10] sm:$0xff] }
   0x4   :  { %89 = vmatpush.msra.mxu0 %v4211_v2  ;;  %6497 = vmatpush.msra.mxu1 %v4211_v2  ;;  %v55_v6 = vld [vmem:[%s9517_s0 + $0x21] sm:$0xff]  ;;  %v51_v10 = vld [vmem:[%s9519_s2 + $0x18] sm:$0xff]  ;;  %v50_v16 = vld [vmem:[%s9519_s2 + $0x10] sm:$0xff] }
   0x5   :  { %6498 = vmatpush.msra.mxu2 %v4211_v2  ;;  %181 = vmatpush.msra.mxu3 %v4224_v3  ;;  %v4212_v11 = vld [vmem:[%s9518_s1 + $0x28] sm:$0xff]  ;;  %v4223_v12 = vld [vmem:[%s9519_s2 + $0x20] sm:$0xff]  ;;  %v47_v15 = vld [vmem:[%s9518_s1 + $0x18] sm:$0xff] }
   0x6   :  { %4215 = vmatmul.msk.f32.vlgmr.msra.gmra.mxu0 %vm61_vm0, %v52_v4  ;;  %4217 = vmatmul.msk.f32.vlgmr.msra.gmra.mxu1 %vm61_vm0, %v54_v5  ;;  %v44_v13 = vld [vmem:[%s9518_s1] sm:$0xff]  ;;  %v49_v14 = vld [vmem:[%s9519_s2 + $0x8] sm:$0xff] }
   0x7   :  { %4218 = vmatmul.msk.f32.vlgmr.msra.gmra.mxu2 %vm61_vm0, %v55_v6  ;;  %4231 = vmatmul.msk.f32.vlgmr.msra.gmra.mxu3 %vm61_vm0, %v52_v4 }
   0x8   :  { %117 = vmatpush.msrb.mxu1 %v4214_v7  ;;  %151 = vmatpush.msrb.mxu2 %v4225_v8 }
   0x9   :  { %221 = vmatpush.msrb.mxu0 %v46_v9  ;;  %308 = vmatpush.msrb.mxu3 %v51_v10 }
   0xa   :  { %16 = vsyncpa [#allocation5], 0  ;;  %118 = vmatpush.msrb.mxu1 %v4212_v11  ;;  %152 = vmatpush.msrb.mxu2 %v4223_v12  ;;  %v53_v17 = vld [vmem:[%s9517_s0 + $0x9] sm:$0xff]  ;;  %v48_v19 = vld [vmem:[%s9519_s2] sm:$0xff]  ;;  %vm522_vm1 = vcmask 1041408   ;;  %vm524_vm2 = vcmask 1043458  }
   0xb   :  { %222 = vmatpush.msrb.mxu0 %v44_v13  ;;  %309 = vmatpush.msrb.mxu3 %v49_v14  ;;  %v45_v18 = vld [vmem:[%s9518_s1 + $0x8] sm:$0xff]  ;;  %v4253_v20 = vld [vmem:[%s9518_s1 + $0x50] sm:$0xff]  ;;  %v4251_v21 = vld [vmem:[%s9518_s1 + $0x40] sm:$0xff]  ;;  %vm527_vm3 = vcmask 1045508   ;;  %vm530_vm4 = vcmask 1045504   ;;  %vm697_vm5 = vcmask 1042434  }
   0xc   :  { %250 = vmatpush.msra.mxu1 %v47_v15  ;;  %279 = vmatpush.msra.mxu2 %v50_v16  ;;  %v40_v22 = vld [vmem:[%s9517_s0] sm:$0xff]  ;;  %v41_v23 = vld [vmem:[%s9517_s0 + $0x8] sm:$0xff]  ;;  %v4266_v24 = vld [vmem:[%s9519_s2 + $0x58] sm:$0xff]  ;;  %vm699_vm6 = vcmask 1043459   ;;  %vm701_vm7 = vcmask 1044484   ;;  %vm703_vm8 = vcmask 1045509  }
   0xd   :  { %358 = vmatpush.msra.mxu0 %v4253_v20  ;;  %v4264_v25 = vld [vmem:[%s9519_s2 + $0x48] sm:$0xff]  ;;  %450 = vmatpush.msra.mxu3 %v4266_v24  ;;  %v42_v26 = vld [vmem:[%s9517_s0 + $0x18] sm:$0xff]  ;;  %v4265_v28 = vld [vmem:[%s9519_s2 + $0x50] sm:$0xff]  ;;  %vm705_vm9 = vcmask 1046534   ;;  %vm707_vm10 = vcmask 1047559   ;;  %vm830_vm11 = vcmask 1046528  }
   0xe   :  { %4216 = vmatmul.msk.f32.gmra.mxu0 %vm61_vm0, %v53_v17  ;;  %4219 = vmatmul.msk.f32.vlgmr.msrb.gmra.mxu1 %vm61_vm0, %v52_v4  ;;  %v4254_v27 = vld [vmem:[%s9518_s1 + $0x58] sm:$0xff]  ;;  %v4252_v29 = vld [vmem:[%s9518_s1 + $0x48] sm:$0xff]  ;;  %v4263_v30 = vld [vmem:[%s9519_s2 + $0x40] sm:$0xff]  ;;  %vm2461_vm13 = vcmask 1043456   ;;  %vm2553_vm14 = vcmask 1042432   ;;  %vm2554_vm15 = vcmask 1046532  }
   0xf   :  { %4227 = vmatmul.msk.f32.vlgmr.msrb.gmra.mxu2 %vm61_vm0, %v52_v4  ;;  %4232 = vmatmul.msk.f32.gmra.mxu3 %vm61_vm0, %v53_v17  ;;  %v43_v31 = vld [vmem:[%s9517_s0 + $0x20] sm:$0xff]  ;;  %v324_v33 = vld [vmem:[%s9517_s0 + $0xa] sm:$0xff]  ;;  %v6190_v58 = vld [vmem:[%s9521_s4 + $0x174] sm:$0xf0]  ;;  %s4202_s17 = sshll.u32 %s9528_s11, 4  ;;  %s4203_s17 = int_to_ptr.hbm [resolvable:$true] %s4202_s17 }
  0x10   :  { %251 = vmatpush.msra.mxu1 %v45_v18  ;;  %280 = vmatpush.msra.mxu2 %v48_v19  ;;  %v323_v32 = vld [vmem:[%s9517_s0 + $0x2] sm:$0xff]  ;;  %v325_v34 = vld [vmem:[%s9517_s0 + $0x1a] sm:$0xff]  ;;  %v4381_v57 = vld [vmem:[%s9521_s4 + $0x170] sm:$0xf] }
  0x11   :  { %359 = vmatpush.msra.mxu0 %v4251_v21  ;;  %451 = vmatpush.msra.mxu3 %v4264_v25  ;;  %v326_v35 = vld [vmem:[%s9517_s0 + $0x22] sm:$0xff]  ;;  %v4382_v60 = vor.u32 %v6190_v58, %v4381_v57  ;;  %v4445_v61 = vld [vmem:[%s9521_s4 + $0x1f0] sm:$0xf]  ;;  %v6206_v62 = vld [vmem:[%s9521_s4 + $0x1f4] sm:$0xf0] }
  0x12   :  { %387 = vmatpush.msrb.mxu1 %v4254_v27  ;;  %421 = vmatpush.msrb.mxu2 %v4265_v28  ;;  %v6189_v63 = vld [vmem:[%s9521_s4 + $0x174] sm:$0xf]  ;;  %v4446_v0 = vor.u32 %v6206_v62, %v4445_v61  ;;  %v4383_v1 = vld [vmem:[%s9521_s4 + $0x178] sm:$0xf0]  ;;  %v4373_v9 = vld [vmem:[%s9521_s4 + $0x160] sm:$0xf] }
  0x13   :  { %v6205_v2 = vld [vmem:[%s9521_s4 + $0x1f4] sm:$0xf]  ;;  %v4447_v3 = vld [vmem:[%s9521_s4 + $0x1f8] sm:$0xf0]  ;;  %v4386_v4 = vor.u32 %v6189_v63, %v4383_v1  ;;  %v6188_v10 = vld [vmem:[%s9521_s4 + $0x164] sm:$0xf0] }
  0x14   :  { %388 = vmatpush.msrb.mxu1 %v4252_v29  ;;  %422 = vmatpush.msrb.mxu2 %v4263_v30  ;;  %v4437_v11 = vld [vmem:[%s9521_s4 + $0x1e0] sm:$0xf]  ;;  %v4374_v12 = vor.u32 %v6188_v10, %v4373_v9  ;;  %v6204_v13 = vld [vmem:[%s9521_s4 + $0x1e4] sm:$0xf0]  ;;  %v6187_v14 = vld [vmem:[%s9521_s4 + $0x164] sm:$0xf] }
  0x15   :  { %v4375_v15 = vld [vmem:[%s9521_s4 + $0x168] sm:$0xf0]  ;;  %v4438_v16 = vor.u32 %v6204_v13, %v4437_v11  ;;  %v6203_v18 = vld [vmem:[%s9521_s4 + $0x1e4] sm:$0xf]  ;;  %v4365_v21 = vld [vmem:[%s9521_s4 + $0x150] sm:$0xf] }
  0x16   :  { %4220 = vmatmul.msk.f32.gmra.mxu1 %vm61_vm0, %v53_v17  ;;  %4235 = vmatmul.msk.f32.vlgmr.msrb.gmra.mxu0 %vm61_vm0, %v40_v22  ;;  %v4439_v19 = vld [vmem:[%s9521_s4 + $0x1e8] sm:$0xf0]  ;;  %v6202_v25 = vld [vmem:[%s9521_s4 + $0x1d4] sm:$0xf0]  ;;  %v4367_v27 = vld [vmem:[%s9521_s4 + $0x158] sm:$0xf0] }
  0x17   :  { %4228 = vmatmul.msk.f32.gmra.mxu2 %vm61_vm0, %v53_v17  ;;  %4233 = vmatmul.msk.f32.gmra.mxu3 %vm61_vm0, %v54_v5  ;;  %v4378_v17 = vor.u32 %v6187_v14, %v4375_v15  ;;  %v4442_v20 = vor.u32 %v6203_v18, %v4439_v19  ;;  %v4357_v58 = vld [vmem:[%s9521_s4 + $0x140] sm:$0xf]  ;;  %v6200_v1 = vld [vmem:[%s9521_s4 + $0x1c4] sm:$0xf0]  ;;  %v6199_v10 = vld [vmem:[%s9521_s4 + $0x1c4] sm:$0xf] }
  0x18   :  { %1042 = vmatpush.bf16.msrb.mxu0 %v4382_v60  ;;  %v6184_v60 = vld [vmem:[%s9521_s4 + $0x144] sm:$0xf0]  ;;  %v4421_v61 = vld [vmem:[%s9521_s4 + $0x1c0] sm:$0xf]  ;;  %v4423_v11 = vld [vmem:[%s9521_s4 + $0x1c8] sm:$0xf0] }
  0x19   :  { %v4422_v9 = vor.u32 %v6200_v1, %v4421_v61  ;;  %v6915_v13 = vld [vmem:[%s9520_s3] sm:$0x3]  ;;  %v4426_v14 = vor.u32 %v6199_v10, %v4423_v11  ;;  %v4349_v15 = vld [vmem:[%s9521_s4 + $0x130] sm:$0xf]  ;;  %v6198_v19 = vld [vmem:[%s9521_s4 + $0x1b4] sm:$0xf0] }
  0x1a   :  { %v4413_v18 = vld [vmem:[%s9521_s4 + $0x1b0] sm:$0xf]  ;;  %v4343_v61 = vld [vmem:[%s9521_s4 + $0x128] sm:$0xf0] }
  0x1b   :  { %v4407_v10 = vld [vmem:[%s9521_s4 + $0x1a8] sm:$0xf0] }
  0x1c   :  { %1043 = vmatpush.bf16.msrb.mxu0 %v4374_v12 }
  0x1e   :  { %4221 = vmatmul.msk.f32.gmra.mxu1 %vm61_vm0, %v54_v5  ;;  %4236 = vmatmul.msk.f32.gmra.mxu0 %vm61_vm0, %v41_v23 }
  0x1f   :  { %4229 = vmatmul.msk.f32.gmra.mxu2 %vm61_vm0, %v54_v5  ;;  %4234 = vmatmul.msk.f32.gmra.mxu3 %vm61_vm0, %v55_v6  ;;  %v4450_v5 = vor.u32 %v6205_v2, %v4447_v3  ;;  %v6183_v2 = vld [vmem:[%s9521_s4 + $0x144] sm:$0xf]  ;;  %v4359_v3 = vld [vmem:[%s9521_s4 + $0x148] sm:$0xf0] }
  0x20   :  { %v4362_v12 = vor.u32 %v6183_v2, %v4359_v3 }
  0x26   :  { %4222 = vmatmul.msk.f32.gmra.mxu1 %vm61_vm0, %v55_v6  ;;  %4237 = vmatmul.msk.f32.gmra.mxu0 %vm61_vm0, %v42_v26 }
  0x27   :  { %4230 = vmatmul.msk.f32.gmra.mxu2 %vm61_vm0, %v55_v6  ;;  %4247 = vmatmul.msk.f32.vlgmr.msrb.gmra.mxu3 %vm61_vm0, %v40_v22 }
  0x28   :  { %1084 = vmatpush.bf16.msrb.mxu3 %v4450_v5 }
  0x2c   :  { %1085 = vmatpush.bf16.msrb.mxu3 %v4442_v20  ;;  %v6181_v20 = vld [vmem:[%s9521_s4 + $0x134] sm:$0xf] }
  0x2e   :  { %4238 = vmatmul.msk.f32.gmra.mxu0 %vm61_vm0, %v43_v31  ;;  %4239 = vmatmul.msk.f32.vlgmr.msra.gmra.mxu1 %vm61_vm0, %v40_v22 }
  0x2f   :  { %4243 = vmatmul.msk.f32.vlgmr.msra.gmra.mxu2 %vm61_vm0, %v40_v22  ;;  %4248 = vmatmul.msk.f32.gmra.mxu3 %vm61_vm0, %v41_v23  ;;  %v6186_v22 = vld [vmem:[%s9521_s4 + $0x154] sm:$0xf0] }
  0x30   :  { %1056 = vmatpush.bf16.msra.mxu1 %v4446_v0  ;;  %1070 = vmatpush.bf16.msra.mxu2 %v4386_v4  ;;  %v4366_v24 = vor.u32 %v6186_v22, %v4365_v21  ;;  %v4358_v0 = vor.u32 %v6184_v60, %v4357_v58  ;;  %v4414_v21 = vor.u32 %v6198_v19, %v4413_v18  ;;  %v4351_v22 = vld [vmem:[%s9521_s4 + $0x138] sm:$0xf0]  ;;  %v6180_v58 = vld [vmem:[%s9521_s4 + $0x124] sm:$0xf0]  ;;  %v4405_v60 = vld [vmem:[%s9521_s4 + $0x1a0] sm:$0xf] }
  0x32   :  { %1044 = vmatpush.bf16.msrb.mxu0 %v4366_v24  ;;  %v4415_v24 = vld [vmem:[%s9521_s4 + $0x1b8] sm:$0xf0] }
  0x34   :  { %1057 = vmatpush.bf16.msra.mxu1 %v4438_v16  ;;  %1071 = vmatpush.bf16.msra.mxu2 %v4378_v17  ;;  %v6182_v16 = vld [vmem:[%s9521_s4 + $0x134] sm:$0xf0] }
  0x35   :  { %v4350_v17 = vor.u32 %v6182_v16, %v4349_v15  ;;  %v4333_v15 = vld [vmem:[%s9521_s4 + $0x110] sm:$0xf]  ;;  %v6178_v16 = vld [vmem:[%s9521_s4 + $0x114] sm:$0xf0] }
  0x36   :  { %4240 = vmatmul.msk.f32.gmra.mxu1 %vm61_vm0, %v41_v23  ;;  %4255 = vmatmul.msk.f32.vlgmr.msra.gmra.mxu0 %vm61_vm0, %v323_v32  ;;  %v4334_v19 = vor.u32 %v6178_v16, %v4333_v15  ;;  %v6238_v15 = vld [vmem:[%s9522_s5 + $0x1f4] sm:$0xf0]  ;;  %v6221_v16 = vld [vmem:[%s9522_s5 + $0x174] sm:$0xf] }
  0x37   :  { %4244 = vmatmul.msk.f32.gmra.mxu2 %vm61_vm0, %v41_v23  ;;  %4249 = vmatmul.msk.f32.gmra.mxu3 %vm61_vm0, %v42_v26  ;;  %v4429_v23 = vld [vmem:[%s9521_s4 + $0x1d0] sm:$0xf] }
  0x38   :  { %v4430_v29 = vor.u32 %v6202_v25, %v4429_v23  ;;  %1045 = vmatpush.bf16.msrb.mxu0 %v4358_v0  ;;  %v6197_v23 = vld [vmem:[%s9521_s4 + $0x1b4] sm:$0xf]  ;;  %v4354_v25 = vor.u32 %v6181_v20, %v4351_v22  ;;  %v4397_v20 = vld [vmem:[%s9521_s4 + $0x190] sm:$0xf] }
  0x39   :  { %v6177_v22 = vld [vmem:[%s9521_s4 + $0x114] sm:$0xf] }
  0x3a   :  { %1058 = vmatpush.bf16.msra.mxu1 %v4430_v29 }
  0x3c   :  { %1046 = vmatpush.bf16.msrb.mxu0 %v4350_v17 }
  0x3e   :  { %4241 = vmatmul.msk.f32.gmra.mxu1 %vm61_vm0, %v42_v26  ;;  %4256 = vmatmul.msk.f32.gmra.mxu0 %vm61_vm0, %v324_v33 }
  0x3f   :  { %4245 = vmatmul.msk.f32.gmra.mxu2 %vm61_vm0, %v42_v26  ;;  %4250 = vmatmul.msk.f32.gmra.mxu3 %vm61_vm0, %v43_v31  ;;  %v6185_v26 = vld [vmem:[%s9521_s4 + $0x154] sm:$0xf] }
  0x40   :  { %v4370_v30 = vor.u32 %v6185_v26, %v4367_v27  ;;  %1059 = vmatpush.bf16.msra.mxu1 %v4422_v9  ;;  %v4418_v26 = vor.u32 %v6197_v23, %v4415_v24  ;;  %v6942_v27 = vperm.slane %v6915_v13, 1  ;;  %v6195_v9 = vld [vmem:[%s9521_s4 + $0x1a4] sm:$0xf]  ;;  %v4335_v23 = vld [vmem:[%s9521_s4 + $0x118] sm:$0xf0] }
  0x41   :  { %v6193_v24 = vld [vmem:[%s9521_s4 + $0x194] sm:$0xf] }
  0x42   :  { %1072 = vmatpush.bf16.msra.mxu2 %v4370_v30 }
  0x44   :  { %1060 = vmatpush.bf16.msra.mxu1 %v4414_v21  ;;  %v6194_v21 = vld [vmem:[%s9521_s4 + $0x194] sm:$0xf0] }
  0x46   :  { %4242 = vmatmul.msk.f32.gmra.mxu1 %vm61_vm0, %v43_v31  ;;  %4257 = vmatmul.msk.f32.gmra.mxu0 %vm61_vm0, %v325_v34 }
  0x47   :  { %4246 = vmatmul.msk.f32.gmra.mxu2 %vm61_vm0, %v43_v31  ;;  %4271 = vmatmul.msk.f32.vlgmr.msra.gmra.mxu3 %vm61_vm0, %v323_v32  ;;  %v6201_v31 = vld [vmem:[%s9521_s4 + $0x1d4] sm:$0xf] }
  0x48   :  { %1073 = vmatpush.bf16.msra.mxu2 %v4362_v12  ;;  %v4410_v12 = vor.u32 %v6195_v9, %v4407_v10  ;;  %v6222_v9 = vld [vmem:[%s9522_s5 + $0x174] sm:$0xf0]  ;;  %v4605_v10 = vld [vmem:[%s9522_s5 + $0x1f0] sm:$0xf] }
  0x4c   :  { %1074 = vmatpush.bf16.msra.mxu2 %v4354_v25  ;;  %v4399_v25 = vld [vmem:[%s9521_s4 + $0x198] sm:$0xf0] }
  0x4e   :  { %4258 = vmatmul.msk.f32.gmra.mxu0 %vm61_vm0, %v326_v35  ;;  %4259 = vmatmul.msk.f32.vlgmr.msrb.gmra.mxu1 %vm61_vm0, %v323_v32 }
  0x4f   :  { %4267 = vmatmul.msk.f32.vlgmr.msrb.gmra.mxu2 %vm61_vm0, %v323_v32  ;;  %4272 = vmatmul.msk.f32.gmra.mxu3 %vm61_vm0, %v324_v33  ;;  %v4431_v32 = vld [vmem:[%s9521_s4 + $0x1d8] sm:$0xf0] }
  0x56   :  { %4260 = vmatmul.msk.f32.gmra.mxu1 %vm61_vm0, %v324_v33 }
  0x57   :  { %4268 = vmatmul.msk.f32.gmra.mxu2 %vm61_vm0, %v324_v33  ;;  %4273 = vmatmul.msk.f32.gmra.mxu3 %vm61_vm0, %v325_v34 }
  0x5e   :  { %4261 = vmatmul.msk.f32.gmra.mxu1 %vm61_vm0, %v325_v34 }
  0x5f   :  { %4269 = vmatmul.msk.f32.gmra.mxu2 %vm61_vm0, %v325_v34  ;;  %4274 = vmatmul.msk.f32.gmra.mxu3 %vm61_vm0, %v326_v35 }
  0x66   :  { %4262 = vmatmul.msk.f32.gmra.mxu1 %vm61_vm0, %v326_v35 }
  0x67   :  { %4270 = vmatmul.msk.f32.gmra.mxu2 %vm61_vm0, %v326_v35  ;;  %v4434_v35 = vor.u32 %v6201_v31, %v4431_v32  ;;  %vm2555_vm0 = vmor %vm2553_vm14, %vm2554_vm15 }
  0x69   :  { %1086 = vmatpush.bf16.msrb.mxu3 %v4434_v35  ;;  %v4341_v35 = vld [vmem:[%s9521_s4 + $0x120] sm:$0xf] }
  0x6d   :  { %1087 = vmatpush.bf16.msrb.mxu3 %v4426_v14 }
  0x71   :  { %1088 = vmatpush.bf16.msrb.mxu3 %v4418_v26 }
  0x75   :  { %1089 = vmatpush.bf16.msrb.mxu3 %v4410_v12 }
  0x83   :  { %v6750_v36 = vpop.f32.mrf.mxu0  ;;  %v6752_v37 = vpop.f32.mrf.mxu1 }
  0x8a   :  { %v6754_v38 = vpop.f32.mrf.mxu2  ;;  %v6756_v39 = vpop.f32.mrf.mxu3 }
  0x8b   :  { %v6758_v40 = vpop.f32.mrf.mxu0  ;;  %v6760_v41 = vpop.f32.mrf.mxu1 }
  0x92   :  { %v6762_v42 = vpop.f32.mrf.mxu2  ;;  %v6764_v43 = vpop.f32.mrf.mxu3 }
  0x93   :  { %v6766_v44 = vpop.f32.mrf.mxu1  ;;  %v6768_v45 = vpop.f32.mrf.mxu0 }
  0x94   :  { %v225_v17 = vadd.f32 %v6768_v45, %v6750_v36 }
  0x9a   :  { %v6770_v46 = vpop.f32.mrf.mxu2  ;;  %v6772_v47 = vpop.f32.mrf.mxu3 }
  0x9b   :  { %v6774_v48 = vpop.f32.mrf.mxu1  ;;  %v6776_v49 = vpop.f32.mrf.mxu0 }
  0x9c   :  { %v228_v18 = vadd.f32 %v6776_v49, %v6758_v40  ;;  %v4398_v49 = vor.u32 %v6194_v21, %v4397_v20  ;;  %v4607_v20 = vld [vmem:[%s9522_s5 + $0x1f8] sm:$0xf0] }
  0xa2   :  { %v6778_v50 = vpop.f32.mrf.mxu2  ;;  %v6780_v51 = vpop.f32.mrf.mxu3 }
  0xa3   :  { %v6782_v52 = vpop.f32.mrf.mxu1  ;;  %v6784_v53 = vpop.f32.mrf.mxu0 }
  0xa4   :  { %v231_v36 = vadd.f32 %v6784_v53, %v6752_v37  ;;  %v4338_v53 = vor.u32 %v6177_v22, %v4335_v23 }
  0xaa   :  { %v6786_v54 = vpop.f32.mrf.mxu2  ;;  %v6788_v55 = vpop.f32.mrf.mxu3 }
  0xab   :  { %v6790_v56 = vpop.f32.mrf.mxu1  ;;  %v6798_v59 = vpop.f32.mrf.mxu0  ;;  %v312_v29 = vadd.f32 %v6788_v55, %v6756_v39  ;;  %v4342_v55 = vor.u32 %v6180_v58, %v4341_v35 }
  0xac   :  { %v254_v30 = vadd.f32 %v6790_v56, %v6760_v41  ;;  %v6196_v41 = vld [vmem:[%s9521_s4 + $0x1a4] sm:$0xf0]  ;;  %v6179_v56 = vld [vmem:[%s9521_s4 + $0x124] sm:$0xf]  ;;  %v6999_v40 = vadd.f32 %v6798_v59, %v6754_v38  ;;  %v4402_v59 = vor.u32 %v6193_v24, %v4399_v25 }
  0xad   :  { %v4406_v2 = vor.u32 %v6196_v41, %v4405_v60  ;;  %v4346_v3 = vor.u32 %v6179_v56, %v4343_v61  ;;  %1047 = vmatpush.bf16.msrb.mxu0 %v4342_v55  ;;  %v6192_v55 = vld [vmem:[%s9521_s4 + $0x184] sm:$0xf0]  ;;  %v6175_v41 = vld [vmem:[%s9521_s4 + $0x104] sm:$0xf]  ;;  %v4327_v56 = vld [vmem:[%s9521_s4 + $0x108] sm:$0xf0] }
  0xae   :  { %1090 = vmatpush.bf16.msrb.mxu3 %v4402_v59  ;;  %v6191_v61 = vld [vmem:[%s9521_s4 + $0x184] sm:$0xf] }
  0xaf   :  { %1061 = vmatpush.bf16.msra.mxu1 %v4406_v2  ;;  %1075 = vmatpush.bf16.msra.mxu2 %v4346_v3  ;;  %v4541_v3 = vld [vmem:[%s9522_s5 + $0x170] sm:$0xf] }
  0xb1   :  { %1048 = vmatpush.bf16.msrb.mxu0 %v4334_v19  ;;  %v6237_v19 = vld [vmem:[%s9522_s5 + $0x1f4] sm:$0xf] }
  0xb2   :  { %v6818_v6 = vpop.f32.mrf.mxu2  ;;  %v6820_v7 = vpop.f32.mrf.mxu3  ;;  %v4610_v23 = vor.u32 %v6237_v19, %v4607_v20 }
  0xb3   :  { %v6822_v8 = vpop.f32.mrf.mxu1  ;;  %v6866_v28 = vpop.f32.mrf.mxu0  ;;  %v283_v37 = vadd.f32 %v6818_v6, %v6762_v42  ;;  %v315_v38 = vadd.f32 %v6820_v7, %v6764_v43  ;;  %1062 = vmatpush.bf16.msra.mxu1 %v4398_v49  ;;  %1076 = vmatpush.bf16.msra.mxu2 %v4338_v53  ;;  %v4597_v53 = vld [vmem:[%s9522_s5 + $0x1e0] sm:$0xf] }
  0xb4   :  { %v257_v26 = vadd.f32 %v6822_v8, %v6766_v44  ;;  %v4325_v8 = vld [vmem:[%s9521_s4 + $0x100] sm:$0xf] }
  0xba   :  { %v6874_v33 = vpop.f32.mrf.mxu2  ;;  %v6876_v34 = vpop.f32.mrf.mxu3 }
  0xbb   :  { %v6878_v57 = vpop.f32.mrf.mxu1  ;;  %v6902_v4 = vpop.f32.mrf.mxu0  ;;  %v7023_v43 = vadd.f32 %v6874_v33, %v6770_v46 }
  0xbc   :  { %v7037_v60 = vadd.f32 %v6878_v57, %v6774_v48 }
  0xc2   :  { %v6889_v62 = vpop.f32.mrf.mxu2  ;;  %v6891_v63 = vpop.f32.mrf.mxu3 }
  0xc3   :  { %v6904_v5 = vpop.f32.mrf.mxu1  ;;  %v6974_v11 = vpop.f32.mrf.mxu0  ;;  %v7053_v48 = vadd.f32 %v6889_v62, %v6778_v50 }
  0xca   :  { %v6948_v31 = vpop.f32.mrf.mxu2  ;;  %v453_v32 = vpop.f32.mrf.mxu3 }
  0xcb   :  { %v390_v39 = vpop.f32.mrf.mxu1  ;;  %v474_v0 = vadd.f32 %v453_v32, %v312_v29  ;;  %v465_v29 = vadd.f32 %v6866_v28, %v225_v17  ;;  %v7019_v32 = vperm.slane %v6915_v13, 0  ;;  %v6176_v28 = vld [vmem:[%s9521_s4 + $0x104] sm:$0xf0]  ;;  %v7033_v13 = vadd.f32 %v6876_v34, %v6772_v47  ;;  %v370_v50 = vpop.f32.mrf.mxu0 }
  0xcc   :  { %v466_v1 = vadd.f32 %v390_v39, %v254_v30  ;;  %v4326_v33 = vor.u32 %v6176_v28, %v4325_v8  ;;  %v4389_v39 = vld [vmem:[%s9521_s4 + $0x180] sm:$0xf]  ;;  %v7049_v47 = vadd.f32 %v6902_v4, %v228_v18  ;;  %v7066_v4 = vadd.f32 %v6891_v63, %v6780_v51 }
  0xcd   :  { %v4390_v57 = vor.u32 %v6192_v55, %v4389_v39  ;;  %v7080_v51 = vadd.f32 %v6904_v5, %v6782_v52  ;;  %v7083_v63 = vadd.f32 %v6974_v11, %v231_v36  ;;  %v4543_v52 = vld [vmem:[%s9522_s5 + $0x178] sm:$0xf0]  ;;  %v4606_v11 = vor.u32 %v6238_v15, %v4605_v10  ;;  %v4535_v39 = vld [vmem:[%s9522_s5 + $0x168] sm:$0xf0] }
  0xce   :  { %v482_v14 = vmax.f32 %v466_v1, %v474_v0  ;;  %v4391_v0 = vld [vmem:[%s9521_s4 + $0x188] sm:$0xf0]  ;;  %1049 = vmatpush.bf16.msrb.mxu0 %v4326_v33  ;;  %v4330_v1 = vor.u32 %v6175_v41, %v4327_v56  ;;  %v4546_v18 = vor.u32 %v6221_v16, %v4543_v52  ;;  %v7103_v21 = vadd.f32 %v6948_v31, %v6786_v54  ;;  %v4533_v31 = vld [vmem:[%s9522_s5 + $0x160] sm:$0xf] }
  0xcf   :  { %v4394_v2 = vor.u32 %v6191_v61, %v4391_v0  ;;  %1063 = vmatpush.bf16.msra.mxu1 %v4390_v57  ;;  %v7106_v22 = vadd.f32 %v370_v50, %v6999_v40  ;;  %v6220_v40 = vld [vmem:[%s9522_s5 + $0x164] sm:$0xf0] }
  0xd0   :  { %v495_v45 = vadd.f32 %v6942_v27, %v482_v14  ;;  %v4542_v14 = vor.u32 %v6222_v9, %v4541_v3  ;;  %1077 = vmatpush.bf16.msra.mxu2 %v4330_v1 }
  0xd1   :  { %1091 = vmatpush.bf16.msrb.mxu3 %v4394_v2 }
  0xd2   :  { %v424_v30 = vpop.f32.mrf.mxu2  ;;  %v456_v35 = vpop.f32.mrf.mxu3  ;;  %v503_v44 = vmax.f32 %v495_v45, 0.0  ;;  %1291 = vmatpush.bf16.msra.mxu0 %v4542_v14 }
  0xd3   :  { %v473_v58 = vadd.f32 %v424_v30, %v283_v37  ;;  %v393_v42 = vpop.f32.mrf.mxu1  ;;  %v476_v6 = vadd.f32 %v456_v35, %v315_v38  ;;  %1305 = vmatpush.bf16.msrb.mxu1 %v4606_v11  ;;  %v6236_v35 = vld [vmem:[%s9522_s5 + $0x1e4] sm:$0xf0] }
  0xd4   :  { %v468_v7 = vadd.f32 %v393_v42, %v257_v26  ;;  %v518_v5 = vrot.slane %v503_v44, 6  ;;  %1319 = vmatpush.bf16.msrb.mxu2 %v4546_v18 }
  0xd5   :  { %v481_v46 = vmax.f32 %v465_v29, %v473_v58  ;;  %1333 = vmatpush.bf16.msra.mxu3 %v4610_v23 }
  0xd6   :  { %v484_v34 = vmax.f32 %v468_v7, %v476_v6  ;;  %v6219_v7 = vld [vmem:[%s9522_s5 + $0x164] sm:$0xf] }
  0xd7   :  { %v494_v62 = vadd.f32 %v7019_v32, %v481_v46 }
  0xd8   :  { %v497_v12 = vadd.f32 %v6942_v27, %v484_v34  ;;  %v4598_v34 = vor.u32 %v6236_v35, %v4597_v53 }
  0xd9   :  { %v502_v17 = vmax.f32 %v494_v62, 0.0  ;;  %v4538_v62 = vor.u32 %v6219_v7, %v4535_v39 }
  0xda   :  { %v505_v36 = vmax.f32 %v497_v12, 0.0  ;;  %v427_v45 = vpop.f32.mrf.mxu2  ;;  %v459_v49 = vpop.f32.mrf.mxu3  ;;  %1306 = vmatpush.bf16.msrb.mxu1 %v4598_v34 }
  0xdb   :  { %v523_v24 = vsel %vm522_vm1, %v502_v17, %v518_v5  ;;  %v525_v25 = vsel %vm524_vm2, %v502_v17, %v518_v5  ;;  %v528_v37 = vsel %vm527_vm3, %v502_v17, %v518_v5  ;;  %v531_v38 = vsel %vm530_vm4, %v518_v5, %v502_v17  ;;  %v396_v54 = vpop.f32.mrf.mxu1  ;;  %1320 = vmatpush.bf16.msrb.mxu2 %v4538_v62 }
  0xdc   :  { %v526_v59 = vrot.slane %v525_v25, 2  ;;  %v529_v26 = vrot.slane %v528_v37, 4  ;;  %v532_v29 = vrot.slane %v531_v38, 6  ;;  %v4275_v30 = vrot.slane %v523_v24, 9  ;;  %v4525_v37 = vld [vmem:[%s9522_s5 + $0x150] sm:$0xf] }
  0xdd   :  { %v519_v58 = vrot.slane %v505_v36, 6  ;;  %v475_v42 = vadd.f32 %v427_v45, %v7023_v43  ;;  %v478_v44 = vadd.f32 %v459_v49, %v7033_v13  ;;  %v470_v6 = vadd.f32 %v396_v54, %v7037_v60  ;;  %v6235_v49 = vld [vmem:[%s9522_s5 + $0x1e4] sm:$0xf]  ;;  %v6218_v38 = vld [vmem:[%s9522_s5 + $0x154] sm:$0xf0] }
  0xde   :  { %v4276_v8 = vrot.slane %v526_v59, 9  ;;  %v4277_v28 = vrot.slane %v529_v26, 9  ;;  %v4278_v46 = vrot.slane %v532_v29, 9  ;;  %v618_v33 = vmax.f32 %v523_v24, %v4275_v30 }
  0xdf   :  { %v483_v55 = vmax.f32 %v7049_v47, %v475_v42  ;;  %v486_v41 = vmax.f32 %v470_v6, %v478_v44  ;;  %v4534_v43 = vor.u32 %v6220_v40, %v4533_v31  ;;  %v4526_v6 = vor.u32 %v6218_v38, %v4525_v37 }
  0xe0   :  { %v619_v13 = vmax.f32 %v526_v59, %v4276_v8  ;;  %v620_v57 = vmax.f32 %v529_v26, %v4277_v28  ;;  %v621_v60 = vmax.f32 %v532_v29, %v4278_v46  ;;  %v665_v56 = vperm.slane %v618_v33, 0 }
  0xe1   :  { %v666_v61 = vperm.slane %v618_v33, 2  ;;  %v496_v0 = vadd.f32 %v7019_v32, %v483_v55  ;;  %v499_v50 = vadd.f32 %v6942_v27, %v486_v41  ;;  %1292 = vmatpush.bf16.msra.mxu0 %v4534_v43 }
  0xe2   :  { %v667_v1 = vperm.slane %v619_v13, 0  ;;  %v668_v2 = vperm.slane %v619_v13, 2  ;;  %v669_v3 = vperm.slane %v620_v57, 0  ;;  %v670_v9 = vperm.slane %v620_v57, 2  ;;  %v430_v47 = vpop.f32.mrf.mxu2  ;;  %v462_v10 = vpop.f32.mrf.mxu3 }
  0xe3   :  { %v671_v12 = vperm.slane %v621_v60, 0  ;;  %v672_v14 = vperm.slane %v621_v60, 2  ;;  %v504_v15 = vmax.f32 %v496_v0, 0.0  ;;  %v507_v16 = vmax.f32 %v499_v50, 0.0  ;;  %v399_v45 = vpop.f32.mrf.mxu1 }
  0xe4   :  { %v698_v52 = vsel %vm697_vm5, %v667_v1, %v665_v56  ;;  %v709_v5 = vsel %vm697_vm5, %v668_v2, %v666_v61  ;;  %v477_v17 = vadd.f32 %v430_v47, %v7053_v48  ;;  %v7140_v11 = vadd.f32 %v462_v10, %v7066_v4  ;;  %v4599_v48 = vld [vmem:[%s9522_s5 + $0x1e8] sm:$0xf0]  ;;  %v6234_v1 = vld [vmem:[%s9522_s5 + $0x1d4] sm:$0xf0]  ;;  %v6217_v10 = vld [vmem:[%s9522_s5 + $0x154] sm:$0xf] }
  0xe5   :  { %v700_v18 = vsel %vm699_vm6, %v669_v3, %v698_v52  ;;  %v710_v19 = vsel %vm699_vm6, %v670_v9, %v709_v5  ;;  %v533_v20 = vsel %vm522_vm1, %v504_v15, %v519_v58  ;;  %v534_v36 = vsel %vm524_vm2, %v504_v15, %v519_v58  ;;  %1293 = vmatpush.bf16.msra.mxu0 %v4526_v6 }
  0xe6   :  { %v702_v4 = vsel %vm701_vm7, %v671_v12, %v700_v18  ;;  %v711_v23 = vsel %vm701_vm7, %v672_v14, %v710_v19  ;;  %v535_v24 = vrot.slane %v534_v36, 2  ;;  %v536_v25 = vsel %vm527_vm3, %v504_v15, %v519_v58  ;;  %v4527_v12 = vld [vmem:[%s9522_s5 + $0x158] sm:$0xf0]  ;;  %v6233_v14 = vld [vmem:[%s9522_s5 + $0x1d4] sm:$0xf] }
  0xe7   :  { %v537_v54 = vrot.slane %v536_v25, 4  ;;  %v538_v31 = vsel %vm530_vm4, %v519_v58, %v504_v15  ;;  %v4279_v40 = vrot.slane %v533_v20, 9  ;;  %v520_v53 = vrot.slane %v507_v16, 6  ;;  %v4517_v36 = vld [vmem:[%s9522_s5 + $0x140] sm:$0xf] }
  0xe8   :  { %v539_v59 = vrot.slane %v538_v31, 6  ;;  %v4280_v26 = vrot.slane %v535_v24, 9  ;;  %v485_v29 = vmax.f32 %v7083_v63, %v477_v17  ;;  %v472_v30 = vadd.f32 %v399_v45, %v7080_v51  ;;  %v4591_v17 = vld [vmem:[%s9522_s5 + $0x1d8] sm:$0xf0]  ;;  %v6216_v45 = vld [vmem:[%s9522_s5 + $0x144] sm:$0xf0] }
  0xe9   :  { %v4281_v35 = vrot.slane %v537_v54, 9  ;;  %v622_v42 = vmax.f32 %v533_v20, %v4279_v40  ;;  %v4602_v44 = vor.u32 %v6235_v49, %v4599_v48  ;;  %v4581_v49 = vld [vmem:[%s9522_s5 + $0x1c0] sm:$0xf] }
  0xea   :  { %v4282_v7 = vrot.slane %v539_v59, 9  ;;  %v623_v8 = vmax.f32 %v535_v24, %v4280_v26  ;;  %v498_v28 = vadd.f32 %v7019_v32, %v485_v29  ;;  %v488_v46 = vmax.f32 %v472_v30, %v7140_v11  ;;  %v433_v33 = vpop.f32.mrf.mxu2 }
  0xeb   :  { %v624_v58 = vmax.f32 %v537_v54, %v4281_v35  ;;  %v673_v39 = vperm.slane %v622_v42, 0  ;;  %v674_v55 = vperm.slane %v622_v42, 2  ;;  %v479_v41 = vadd.f32 %v433_v33, %v7103_v21  ;;  %1334 = vmatpush.bf16.msra.mxu3 %v4602_v44  ;;  %v4589_v21 = vld [vmem:[%s9522_s5 + $0x1d0] sm:$0xf] }
  0xec   :  { %v625_v63 = vmax.f32 %v539_v59, %v4282_v7  ;;  %v675_v51 = vperm.slane %v623_v8, 0  ;;  %v676_v43 = vperm.slane %v623_v8, 2  ;;  %v506_v34 = vmax.f32 %v498_v28, 0.0  ;;  %v6215_v7 = vld [vmem:[%s9522_s5 + $0x144] sm:$0xf] }
  0xed   :  { %v677_v13 = vperm.slane %v624_v58, 0  ;;  %v678_v57 = vperm.slane %v624_v58, 2  ;;  %v704_v60 = vsel %vm703_vm8, %v673_v39, %v702_v4  ;;  %v712_v56 = vsel %vm703_vm8, %v674_v55, %v711_v23  ;;  %v6231_v58 = vld [vmem:[%s9522_s5 + $0x1c4] sm:$0xf]  ;;  %v4583_v39 = vld [vmem:[%s9522_s5 + $0x1c8] sm:$0xf0] }
  0xee   :  { %v679_v61 = vperm.slane %v625_v63, 0  ;;  %v680_v0 = vperm.slane %v625_v63, 2  ;;  %v706_v50 = vsel %vm705_vm9, %v675_v51, %v704_v60  ;;  %v713_v62 = vsel %vm705_vm9, %v676_v43, %v712_v56  ;;  %v4509_v55 = vld [vmem:[%s9522_s5 + $0x130] sm:$0xf]  ;;  %v6213_v60 = vld [vmem:[%s9522_s5 + $0x134] sm:$0xf] }
  0xef   :  { %v708_v2 = vsel %vm707_vm10, %v677_v13, %v706_v50  ;;  %v714_v3 = vsel %vm707_vm10, %v678_v57, %v713_v62  ;;  %v540_v9 = vsel %vm522_vm1, %v506_v34, %v520_v53  ;;  %v541_v47 = vsel %vm524_vm2, %v506_v34, %v520_v53  ;;  %v4573_v13 = vld [vmem:[%s9522_s5 + $0x1b0] sm:$0xf]  ;;  %v6230_v57 = vld [vmem:[%s9522_s5 + $0x1b4] sm:$0xf0]  ;;  %v4511_v62 = vld [vmem:[%s9522_s5 + $0x138] sm:$0xf0] }
  0xf0   :  { %735 = vst [vmem:[#allocation2] sm:$0xfe] %v708_v2  ;;  %v542_v15 = vrot.slane %v541_v47, 2  ;;  %v543_v16 = vsel %vm527_vm3, %v506_v34, %v520_v53  ;;  %v545_v52 = vsel %vm530_vm4, %v520_v53, %v506_v34  ;;  %v4283_v5 = vrot.slane %v540_v9, 9  ;;  %v4575_v47 = vld [vmem:[%s9522_s5 + $0x1b8] sm:$0xf0] }
  0xf1   :  { %736 = vst [vmem:[#allocation2 + $0x8] sm:$0xfe] %v714_v3  ;;  %v544_v11 = vrot.slane %v543_v16, 4  ;;  %v546_v18 = vrot.slane %v545_v52, 6  ;;  %v501_v19 = vadd.f32 %v6942_v27, %v488_v46  ;;  %v487_v20 = vmax.f32 %v7106_v22, %v479_v41  ;;  %v6232_v27 = vld [vmem:[%s9522_s5 + $0x1c4] sm:$0xf0] }
  0xf2   :  { %737 = vst [vmem:[#allocation2 + $0x10] sm:$0x1] %v679_v61  ;;  %v4284_v48 = vrot.slane %v542_v15, 9  ;;  %v626_v4 = vmax.f32 %v540_v9, %v4283_v5  ;;  %v4590_v23 = vor.u32 %v6234_v1, %v4589_v21  ;;  %v4530_v24 = vor.u32 %v6217_v10, %v4527_v12  ;;  %v6214_v41 = vld [vmem:[%s9522_s5 + $0x134] sm:$0xf0] }
  0xf3   :  { %738 = vst [vmem:[#allocation2 + $0x18] sm:$0x1] %v680_v0  ;;  %v4285_v22 = vrot.slane %v544_v11, 9  ;;  %v4286_v25 = vrot.slane %v546_v18, 9  ;;  %v509_v37 = vmax.f32 %v501_v19, 0.0  ;;  %v500_v38 = vadd.f32 %v7019_v32, %v487_v20 }
  0xf4   :  { %v627_v54 = vmax.f32 %v542_v15, %v4284_v48  ;;  %v681_v31 = vperm.slane %v626_v4, 0  ;;  %v682_v40 = vperm.slane %v626_v4, 2  ;;  %1307 = vmatpush.bf16.msrb.mxu1 %v4590_v23  ;;  %1321 = vmatpush.bf16.msrb.mxu2 %v4530_v24  ;;  %v4594_v53 = vor.u32 %v6233_v14, %v4591_v17  ;;  %v4519_v32 = vld [vmem:[%s9522_s5 + $0x148] sm:$0xf0]  ;;  %v6229_v21 = vld [vmem:[%s9522_s5 + $0x1b4] sm:$0xf] }
  0xf5   :  { %v628_v59 = vmax.f32 %v544_v11, %v4285_v22  ;;  %v629_v26 = vmax.f32 %v546_v18, %v4286_v25  ;;  %v521_v29 = vrot.slane %v509_v37, 6  ;;  %v508_v30 = vmax.f32 %v500_v38, 0.0  ;;  %v4501_v10 = vld [vmem:[%s9522_s5 + $0x120] sm:$0xf]  ;;  %v6212_v52 = vld [vmem:[%s9522_s5 + $0x124] sm:$0xf0] }
  0xf6   :  { %v683_v35 = vperm.slane %v627_v54, 0  ;;  %v684_v42 = vperm.slane %v627_v54, 2  ;;  %1335 = vmatpush.bf16.msra.mxu3 %v4594_v53  ;;  %v4518_v44 = vor.u32 %v6216_v45, %v4517_v36  ;;  %v4582_v6 = vor.u32 %v6232_v27, %v4581_v49  ;;  %v4565_v19 = vld [vmem:[%s9522_s5 + $0x1a0] sm:$0xf]  ;;  %v6228_v48 = vld [vmem:[%s9522_s5 + $0x1a4] sm:$0xf0] }
  0xf7   :  { %v685_v8 = vperm.slane %v628_v59, 0  ;;  %v686_v28 = vperm.slane %v628_v59, 2  ;;  %v687_v46 = vperm.slane %v629_v26, 0  ;;  %v688_v33 = vperm.slane %v629_v26, 2  ;;  %v6211_v4 = vld [vmem:[%s9522_s5 + $0x124] sm:$0xf] }
  0xf8   :  { %v715_v63 = vsel %vm697_vm5, %v683_v35, %v681_v31  ;;  %v721_v51 = vsel %vm697_vm5, %v684_v42, %v682_v40  ;;  %v547_v43 = vsel %vm522_vm1, %v508_v30, %v521_v29  ;;  %v548_v34 = vsel %vm524_vm2, %v508_v30, %v521_v29  ;;  %1294 = vmatpush.bf16.msra.mxu0 %v4518_v44  ;;  %v4503_v22 = vld [vmem:[%s9522_s5 + $0x128] sm:$0xf0]  ;;  %v6227_v25 = vld [vmem:[%s9522_s5 + $0x1a4] sm:$0xf]  ;;  %v4493_v53 = vld [vmem:[%s9522_s5 + $0x110] sm:$0xf] }
  0xf9   :  { %v716_v56 = vsel %vm699_vm6, %v685_v8, %v715_v63  ;;  %v722_v61 = vsel %vm699_vm6, %v686_v28, %v721_v51  ;;  %v549_v0 = vrot.slane %v548_v34, 2  ;;  %v550_v50 = vsel %vm527_vm3, %v508_v30, %v521_v29  ;;  %1308 = vmatpush.bf16.msrb.mxu1 %v4582_v6  ;;  %v4567_v37 = vld [vmem:[%s9522_s5 + $0x1a8] sm:$0xf0]  ;;  %v6210_v59 = vld [vmem:[%s9522_s5 + $0x114] sm:$0xf0] }
  0xfa   :  { %v717_v1 = vsel %vm701_vm7, %v687_v46, %v716_v56  ;;  %v723_v2 = vsel %vm701_vm7, %v688_v33, %v722_v61  ;;  %v551_v3 = vrot.slane %v550_v50, 4  ;;  %v552_v9 = vsel %vm530_vm4, %v521_v29, %v508_v30  ;;  %v4557_v26 = vld [vmem:[%s9522_s5 + $0x190] sm:$0xf]  ;;  %v6226_v44 = vld [vmem:[%s9522_s5 + $0x194] sm:$0xf0] }
  0xfb   :  { %v553_v12 = vrot.slane %v552_v9, 6  ;;  %v4287_v14 = vrot.slane %v547_v43, 9  ;;  %v4288_v15 = vrot.slane %v549_v0, 9  ;;  %v4522_v16 = vor.u32 %v6215_v7, %v4519_v32  ;;  %v6209_v8 = vld [vmem:[%s9522_s5 + $0x114] sm:$0xf] }
  0xfc   :  { %v4289_v5 = vrot.slane %v551_v3, 9  ;;  %v4586_v17 = vor.u32 %v6231_v58, %v4583_v39  ;;  %v4510_v11 = vor.u32 %v6214_v41, %v4509_v55  ;;  %v4574_v18 = vor.u32 %v6230_v57, %v4573_v13  ;;  %v4495_v28 = vld [vmem:[%s9522_s5 + $0x118] sm:$0xf0]  ;;  %v6225_v55 = vld [vmem:[%s9522_s5 + $0x194] sm:$0xf] }
  0xfd   :  { %v4290_v20 = vrot.slane %v553_v12, 9  ;;  %v630_v36 = vmax.f32 %v547_v43, %v4287_v14  ;;  %v631_v45 = vmax.f32 %v549_v0, %v4288_v15  ;;  %1322 = vmatpush.bf16.msrb.mxu2 %v4522_v16  ;;  %v4514_v49 = vor.u32 %v6213_v60, %v4511_v62  ;;  %v4559_v41 = vld [vmem:[%s9522_s5 + $0x198] sm:$0xf0]  ;;  %v4485_v34 = vld [vmem:[%s9522_s5 + $0x100] sm:$0xf] }
  0xfe   :  { %v632_v23 = vmax.f32 %v551_v3, %v4289_v5  ;;  %1336 = vmatpush.bf16.msra.mxu3 %v4586_v17  ;;  %1295 = vmatpush.bf16.msra.mxu0 %v4510_v11  ;;  %v4578_v24 = vor.u32 %v6229_v21, %v4575_v47  ;;  %v4502_v27 = vor.u32 %v6212_v52, %v4501_v10  ;;  %v6208_v13 = vld [vmem:[%s9522_s5 + $0x104] sm:$0xf0]  ;;  %v4549_v56 = vld [vmem:[%s9522_s5 + $0x180] sm:$0xf]  ;;  %v6207_v50 = vld [vmem:[%s9522_s5 + $0x104] sm:$0xf] }
  0xff   :  { %v633_v38 = vmax.f32 %v553_v12, %v4290_v20  ;;  %v689_v54 = vperm.slane %v630_v36, 0  ;;  %v690_v31 = vperm.slane %v630_v36, 2  ;;  %v691_v40 = vperm.slane %v631_v45, 0  ;;  %1309 = vmatpush.bf16.msrb.mxu1 %v4574_v18  ;;  %v6224_v61 = vld [vmem:[%s9522_s5 + $0x184] sm:$0xf0] }
 0x100   :  { %v692_v29 = vperm.slane %v631_v45, 2  ;;  %v693_v30 = vperm.slane %v632_v23, 0  ;;  %v694_v35 = vperm.slane %v632_v23, 2  ;;  %v4566_v42 = vor.u32 %v6228_v48, %v4565_v19  ;;  %v6223_v9 = vld [vmem:[%s9522_s5 + $0x184] sm:$0xf] }
 0x101   :  { %v695_v6 = vperm.slane %v633_v38, 0  ;;  %v718_v7 = vsel %vm703_vm8, %v689_v54, %v717_v1  ;;  %v724_v32 = vsel %vm703_vm8, %v690_v31, %v723_v2  ;;  %1323 = vmatpush.bf16.msrb.mxu2 %v4514_v49  ;;  %v696_v46 = vperm.slane %v633_v38, 2  ;;  %v4487_v1 = vld [vmem:[%s9522_s5 + $0x108] sm:$0xf0]  ;;  %v816_v10 = vld [vmem:[#allocation2 + $0x10] sm:$0x1] }
 0x102   :  { %v719_v33 = vsel %vm705_vm9, %v691_v40, %v718_v7  ;;  %v725_v58 = vsel %vm705_vm9, %v692_v29, %v724_v32  ;;  %1337 = vmatpush.bf16.msra.mxu3 %v4578_v24  ;;  %1296 = vmatpush.bf16.msra.mxu0 %v4502_v27  ;;  %v4506_v39 = vor.u32 %v6211_v4, %v4503_v22  ;;  %v814_v2 = vld [vmem:[#allocation2] sm:$0xfe]  ;;  %v815_v12 = vld [vmem:[#allocation2 + $0x8] sm:$0xfe]  ;;  %v817_v14 = vld [vmem:[#allocation2 + $0x18] sm:$0x1] }
 0x103   :  { %v720_v63 = vsel %vm707_vm10, %v693_v30, %v719_v33  ;;  %v726_v51 = vsel %vm707_vm10, %v694_v35, %v725_v58  ;;  %741 = vst [vmem:[#allocation2 + $0x30] sm:$0x1] %v695_v6  ;;  %1310 = vmatpush.bf16.msrb.mxu1 %v4566_v42  ;;  %v4570_v43 = vor.u32 %v6227_v25, %v4567_v37  ;;  %v4551_v47 = vld [vmem:[%s9522_s5 + $0x188] sm:$0xf0]  ;;  %v831_v16 = vrot.slane %v814_v2, 1 }
 0x104   :  { %739 = vst [vmem:[#allocation2 + $0x20] sm:$0xfe] %v720_v63  ;;  %v4494_v57 = vor.u32 %v6210_v59, %v4493_v53  ;;  %v4558_v60 = vor.u32 %v6226_v44, %v4557_v26  ;;  %v4498_v0 = vor.u32 %v6209_v8, %v4495_v28  ;;  %v4562_v62 = vor.u32 %v6225_v55, %v4559_v41  ;;  %v4669_v52 = vld [vmem:[%s9521_s4 + $0x70] sm:$0xf]  ;;  %v6126_v5 = vld [vmem:[%s9521_s4 + $0x74] sm:$0xf0] }
 0x105   :  { %740 = vst [vmem:[#allocation2 + $0x28] sm:$0xfe] %v726_v51  ;;  %1324 = vmatpush.bf16.msrb.mxu2 %v4506_v39  ;;  %v4486_v21 = vor.u32 %v6208_v13, %v4485_v34  ;;  %v4550_v3 = vor.u32 %v6224_v61, %v4549_v56  ;;  %v4490_v15 = vor.u32 %v6207_v50, %v4487_v1  ;;  %v6125_v17 = vld [vmem:[%s9521_s4 + $0x74] sm:$0xf]  ;;  %v4671_v19 = vld [vmem:[%s9521_s4 + $0x78] sm:$0xf0] }
 0x106   :  { %742 = vst [vmem:[#allocation2 + $0x38] sm:$0x1] %v696_v46  ;;  %1338 = vmatpush.bf16.msra.mxu3 %v4570_v43  ;;  %1297 = vmatpush.bf16.msra.mxu0 %v4494_v57  ;;  %v4554_v11 = vor.u32 %v6223_v9, %v4551_v47  ;;  %v832_v36 = vrot.slane %v816_v10, 1  ;;  %v4733_v45 = vld [vmem:[%s9521_s4 + $0xf0] sm:$0xf]  ;;  %v834_v27 = vrot.slane %v815_v12, 1  ;;  %v4670_v53 = vor.u32 %v6126_v5, %v4669_v52 }
 0x107   :  { %1311 = vmatpush.bf16.msrb.mxu1 %v4558_v60  ;;  %v6142_v49 = vld [vmem:[%s9521_s4 + $0xf4] sm:$0xf0]  ;;  %v6141_v48 = vld [vmem:[%s9521_s4 + $0xf4] sm:$0xf]  ;;  %v835_v37 = vrot.slane %v817_v14, 1  ;;  %v4674_v59 = vor.u32 %v6125_v17, %v4671_v19 }
 0x108   :  { %v833_v22 = vsel %vm830_vm11, %v831_v16, %v832_v36  ;;  %v4735_v54 = vld [vmem:[%s9521_s4 + $0xf8] sm:$0xf0]  ;;  %v4661_v26 = vld [vmem:[%s9521_s4 + $0x60] sm:$0xf]  ;;  %v6124_v30 = vld [vmem:[%s9521_s4 + $0x64] sm:$0xf0]  ;;  %v4734_v7 = vor.u32 %v6142_v49, %v4733_v45 }
 0x109   :  { %1325 = vmatpush.bf16.msrb.mxu2 %v4498_v0  ;;  %v6123_v35 = vld [vmem:[%s9521_s4 + $0x64] sm:$0xf]  ;;  %v4663_v42 = vld [vmem:[%s9521_s4 + $0x68] sm:$0xf0]  ;;  %v836_v44 = vsel %vm830_vm11, %v834_v27, %v835_v37  ;;  %v4738_v32 = vor.u32 %v6141_v48, %v4735_v54  ;;  %v4725_v8 = vld [vmem:[%s9521_s4 + $0xe0] sm:$0xf]  ;;  %v4662_v39 = vor.u32 %v6124_v30, %v4661_v26 }
 0x10a   :  { %1339 = vmatpush.bf16.msra.mxu3 %v4562_v62  ;;  %1298 = vmatpush.bf16.msra.mxu0 %v4486_v21  ;;  %v820_v18 = vld [vmem:[#allocation2 + $0x30] sm:$0x1]  ;;  %v6140_v46 = vld [vmem:[%s9521_s4 + $0xe4] sm:$0xf0]  ;;  %v6139_v33 = vld [vmem:[%s9521_s4 + $0xe4] sm:$0xf]  ;;  %v4666_v55 = vor.u32 %v6123_v35, %v4663_v42  ;;  %v634_v21 = vlaneseq }
 0x10b   :  { %1312 = vmatpush.bf16.msrb.mxu1 %v4550_v3  ;;  %v818_v20 = vld [vmem:[#allocation2 + $0x20] sm:$0xfe]  ;;  %v838_v23 = vrot.slane %v820_v18, 1  ;;  %v4653_v41 = vld [vmem:[%s9521_s4 + $0x50] sm:$0xf]  ;;  %v4726_v34 = vor.u32 %v6140_v46, %v4725_v8 }
 0x10c   :  { %v837_v4 = vrot.slane %v818_v20, 1  ;;  %v819_v24 = vld [vmem:[#allocation2 + $0x28] sm:$0xfe]  ;;  %v4727_v58 = vld [vmem:[%s9521_s4 + $0xe8] sm:$0xf0]  ;;  %vm7448_vm12 = vcmp.lt.s32.totalorder %v634_v21, 256 }
 0x10d   :  { %1326 = vmatpush.bf16.msrb.mxu2 %v4490_v15  ;;  %v821_v25 = vld [vmem:[#allocation2 + $0x38] sm:$0x1]  ;;  %v840_v38 = vrot.slane %v819_v24, 1  ;;  %v6122_v63 = vld [vmem:[%s9521_s4 + $0x54] sm:$0xf0]  ;;  %v4730_v13 = vor.u32 %v6139_v33, %v4727_v58 }
 0x10e   :  { %1340 = vmatpush.bf16.msra.mxu3 %v4554_v11  ;;  %v839_v31 = vsel %vm830_vm11, %v837_v4, %v838_v23  ;;  %v841_v40 = vrot.slane %v821_v25, 1  ;;  %v6121_v51 = vld [vmem:[%s9521_s4 + $0x54] sm:$0xf]  ;;  %v4655_v43 = vld [vmem:[%s9521_s4 + $0x58] sm:$0xf0]  ;;  %v4654_v0 = vor.u32 %v6122_v63, %v4653_v41  ;;  %v6532_v23 = vmov 0.0  }
 0x10f   :  { %v7363_v29 = vpack.c.bf16 %v839_v31, %v833_v22  ;;  %v4717_v57 = vld [vmem:[%s9521_s4 + $0xd0] sm:$0xf]  ;;  %v6138_v60 = vld [vmem:[%s9521_s4 + $0xd4] sm:$0xf0]  ;;  %v6137_v56 = vld [vmem:[%s9521_s4 + $0xd4] sm:$0xf]  ;;  %v4658_v50 = vor.u32 %v6121_v51, %v4655_v43 }
 0x110   :  { %v842_v6 = vsel %vm830_vm11, %v840_v38, %v841_v40  ;;  %v4719_v61 = vld [vmem:[%s9521_s4 + $0xd8] sm:$0xf0]  ;;  %v4645_v62 = vld [vmem:[%s9521_s4 + $0x40] sm:$0xf]  ;;  %v6120_v1 = vld [vmem:[%s9521_s4 + $0x44] sm:$0xf0]  ;;  %v4718_v9 = vor.u32 %v6138_v60, %v4717_v57 }
 0x111   :  { %1050 = vmatmul.bf16.vlgmr.msrb.gmra.mxu0 %v7363_v29  ;;  %v7380_v28 = vpack.c.bf16 %v842_v6, %v836_v44  ;;  %1078 = vmatmul.bf16.vlgmr.msra.gmra.mxu2 %v7363_v29  ;;  %v6119_v2 = vld [vmem:[%s9521_s4 + $0x44] sm:$0xf]  ;;  %v4647_v3 = vld [vmem:[%s9521_s4 + $0x48] sm:$0xf0]  ;;  %v4722_v47 = vor.u32 %v6137_v56, %v4719_v61  ;;  %v4709_v10 = vld [vmem:[%s9521_s4 + $0xc0] sm:$0xf]  ;;  %v4646_v16 = vor.u32 %v6120_v1, %v4645_v62 }
 0x112   :  { %1507 = vmatpush.bf16.msrb.mxu0 %v4670_v53  ;;  %1535 = vmatpush.bf16.msra.mxu2 %v4674_v59  ;;  %v6136_v12 = vld [vmem:[%s9521_s4 + $0xc4] sm:$0xf0]  ;;  %v6135_v14 = vld [vmem:[%s9521_s4 + $0xc4] sm:$0xf]  ;;  %v4711_v15 = vld [vmem:[%s9521_s4 + $0xc8] sm:$0xf0]  ;;  %v4650_v52 = vor.u32 %v6119_v2, %v4647_v3 }
 0x113   :  { %1064 = vmatmul.bf16.vlgmr.msra.gmra.mxu1 %v7380_v28  ;;  %1092 = vmatmul.bf16.vlgmr.msrb.gmra.mxu3 %v7380_v28  ;;  %v4637_v5 = vld [vmem:[%s9521_s4 + $0x30] sm:$0xf]  ;;  %v6118_v17 = vld [vmem:[%s9521_s4 + $0x34] sm:$0xf0]  ;;  %v6117_v20 = vld [vmem:[%s9521_s4 + $0x34] sm:$0xf]  ;;  %v4710_v49 = vor.u32 %v6136_v12, %v4709_v10  ;;  %v4714_v48 = vor.u32 %v6135_v14, %v4711_v15 }
 0x114   :  { %1521 = vmatpush.bf16.msra.mxu1 %v4734_v7  ;;  %1549 = vmatpush.bf16.msrb.mxu3 %v4738_v32  ;;  %v4701_v18 = vld [vmem:[%s9521_s4 + $0xb0] sm:$0xf]  ;;  %v6134_v19 = vld [vmem:[%s9521_s4 + $0xb4] sm:$0xf0]  ;;  %v4639_v36 = vld [vmem:[%s9521_s4 + $0x38] sm:$0xf0]  ;;  %v4638_v25 = vor.u32 %v6118_v17, %v4637_v5 }
 0x115   :  { %v6133_v45 = vld [vmem:[%s9521_s4 + $0xb4] sm:$0xf]  ;;  %v4703_v4 = vld [vmem:[%s9521_s4 + $0xb8] sm:$0xf0]  ;;  %v4629_v24 = vld [vmem:[%s9521_s4 + $0x20] sm:$0xf]  ;;  %v4642_v37 = vor.u32 %v6117_v20, %v4639_v36  ;;  %v4702_v53 = vor.u32 %v6134_v19, %v4701_v18 }
 0x116   :  { %1508 = vmatpush.bf16.msrb.mxu0 %v4662_v39  ;;  %1536 = vmatpush.bf16.msra.mxu2 %v4666_v55  ;;  %638 = vst.msk [vmem:[#allocation2] ss:$8 sm:$0x3] %vm7448_vm12, %v6532_v23  ;;  %v6116_v27 = vld [vmem:[%s9521_s4 + $0x24] sm:$0xf0]  ;;  %v4706_v59 = vor.u32 %v6133_v45, %v4703_v4 }
 0x117   :  { %v6115_v22 = vld [vmem:[%s9521_s4 + $0x24] sm:$0xf]  ;;  %641 = vst.msk [vmem:[#allocation2 + $0x20] ss:$8 sm:$0x3] %vm7448_vm12, %v6532_v23  ;;  %v4630_v42 = vor.u32 %v6116_v27, %v4629_v24 }
 0x118   :  { %1522 = vmatpush.bf16.msra.mxu1 %v4726_v34  ;;  %1550 = vmatpush.bf16.msrb.mxu3 %v4730_v13  ;;  %v4631_v38 = vld [vmem:[%s9521_s4 + $0x28] sm:$0xf0]  ;;  %2396 = vst.msk [vmem:[#allocation3] ss:$8 sm:$0x3] %vm7448_vm12, %v6532_v23 }
 0x119   :  { %v4693_v54 = vld [vmem:[%s9521_s4 + $0xa0] sm:$0xf]  ;;  %v6132_v31 = vld [vmem:[%s9521_s4 + $0xa4] sm:$0xf0]  ;;  %v6131_v40 = vld [vmem:[%s9521_s4 + $0xa4] sm:$0xf]  ;;  %v4634_v44 = vor.u32 %v6115_v22, %v4631_v38 }
 0x11a   :  { %1509 = vmatpush.bf16.msrb.mxu0 %v4654_v0  ;;  %1537 = vmatpush.bf16.msra.mxu2 %v4658_v50  ;;  %2399 = vst.msk [vmem:[#allocation3 + $0x10] ss:$8 sm:$0x3] %vm7448_vm12, %v6532_v23  ;;  %v4695_v26 = vld [vmem:[%s9521_s4 + $0xa8] sm:$0xf0]  ;;  %v4694_v7 = vor.u32 %v6132_v31, %v4693_v54 }
 0x11b   :  { %644 = vst.msk [vmem:[#allocation2 + $0x11] ss:$8 sm:$0x3] %vm7448_vm12, %v6532_v23  ;;  %v4621_v30 = vld [vmem:[%s9521_s4 + $0x10] sm:$0xf]  ;;  %v4698_v32 = vor.u32 %v6131_v40, %v4695_v26 }
 0x11c   :  { %1523 = vmatpush.bf16.msra.mxu1 %v4718_v9  ;;  %1551 = vmatpush.bf16.msrb.mxu3 %v4722_v47  ;;  %v6114_v35 = vld [vmem:[%s9521_s4 + $0x14] sm:$0xf0]  ;;  %647 = vst.msk [vmem:[#allocation2 + $0x31] ss:$8 sm:$0x3] %vm7448_vm12, %v6532_v23 }
 0x11d   :  { %v6113_v6 = vld [vmem:[%s9521_s4 + $0x14] sm:$0xf]  ;;  %2402 = vst.msk [vmem:[#allocation3 + $0x5] ss:$8 sm:$0x3] %vm7448_vm12, %v6532_v23  ;;  %v4622_v58 = vor.u32 %v6114_v35, %v4621_v30  ;;  %v744_v4 = vld [vmem:[#allocation2] sm:$0xff] }
 0x11e   :  { %1510 = vmatpush.bf16.msrb.mxu0 %v4646_v16  ;;  %1538 = vmatpush.bf16.msra.mxu2 %v4650_v52  ;;  %2405 = vst.msk [vmem:[#allocation3 + $0x15] ss:$8 sm:$0x3] %vm7448_vm12, %v6532_v23  ;;  %v4685_v8 = vld [vmem:[%s9521_s4 + $0x90] sm:$0xf]  ;;  %v746_v19 = vld [vmem:[#allocation2 + $0x20] sm:$0xff] }
 0x11f   :  { %v6130_v46 = vld [vmem:[%s9521_s4 + $0x94] sm:$0xf0]  ;;  %v4687_v33 = vld [vmem:[%s9521_s4 + $0x98] sm:$0xf0]  ;;  %v4613_v55 = vld [vmem:[%s9521_s4] sm:$0xf]  ;;  %v7610_v23 = vpack.c.bf16 %v746_v19, %v744_v4 }
 0x120   :  { %1524 = vmatpush.bf16.msra.mxu1 %v4710_v49  ;;  %1552 = vmatpush.bf16.msrb.mxu3 %v4714_v48  ;;  %v6112_v41 = vld [vmem:[%s9521_s4 + $0x4] sm:$0xf0]  ;;  %v4677_v63 = vld [vmem:[%s9521_s4 + $0x80] sm:$0xf]  ;;  %v6111_v43 = vld [vmem:[%s9521_s4 + $0x4] sm:$0xf]  ;;  %v4686_v57 = vor.u32 %v6130_v46, %v4685_v8 }
 0x121   :  { %1299 = vmatmul.bf16.vlgmr.msra.gmra.mxu0 %v7363_v29  ;;  %1327 = vmatmul.bf16.vlgmr.msrb.gmra.mxu2 %v7363_v29  ;;  %v4623_v29 = vld [vmem:[%s9521_s4 + $0x18] sm:$0xf0]  ;;  %v6128_v51 = vld [vmem:[%s9521_s4 + $0x84] sm:$0xf0]  ;;  %v4615_v34 = vld [vmem:[%s9521_s4 + $0x8] sm:$0xf0]  ;;  %v4614_v1 = vor.u32 %v6112_v41, %v4613_v55 }
 0x122   :  { %1511 = vmatpush.bf16.msrb.mxu0 %v4638_v25  ;;  %1539 = vmatpush.bf16.msra.mxu2 %v4642_v37  ;;  %v4626_v39 = vor.u32 %v6113_v6, %v4623_v29  ;;  %v4797_v13 = vld [vmem:[%s9522_s5 + $0x70] sm:$0xf]  ;;  %v6158_v56 = vld [vmem:[%s9522_s5 + $0x74] sm:$0xf0]  ;;  %v6157_v61 = vld [vmem:[%s9522_s5 + $0x74] sm:$0xf]  ;;  %v4618_v2 = vor.u32 %v6111_v43, %v4615_v34  ;;  %v4678_v15 = vor.u32 %v6128_v51, %v4677_v63 }
 0x123   :  { %1313 = vmatmul.bf16.vlgmr.msrb.gmra.mxu1 %v7380_v28  ;;  %1341 = vmatmul.bf16.vlgmr.msra.gmra.mxu3 %v7380_v28  ;;  %v6129_v28 = vld [vmem:[%s9521_s4 + $0x94] sm:$0xf]  ;;  %v4799_v0 = vld [vmem:[%s9522_s5 + $0x78] sm:$0xf0]  ;;  %v6127_v50 = vld [vmem:[%s9521_s4 + $0x84] sm:$0xf]  ;;  %v4798_v10 = vor.u32 %v6158_v56, %v4797_v13 }
 0x124   :  { %1525 = vmatpush.bf16.msra.mxu1 %v4702_v53  ;;  %1553 = vmatpush.bf16.msrb.mxu3 %v4706_v59  ;;  %v4690_v60 = vor.u32 %v6129_v28, %v4687_v33  ;;  %v4679_v62 = vld [vmem:[%s9521_s4 + $0x88] sm:$0xf0]  ;;  %v4861_v21 = vld [vmem:[%s9522_s5 + $0xf0] sm:$0xf]  ;;  %v6174_v3 = vld [vmem:[%s9522_s5 + $0xf4] sm:$0xf0]  ;;  %v4802_v12 = vor.u32 %v6157_v61, %v4799_v0 }
 0x125   :  { %v6173_v9 = vld [vmem:[%s9522_s5 + $0xf4] sm:$0xf]  ;;  %v4863_v47 = vld [vmem:[%s9522_s5 + $0xf8] sm:$0xf0]  ;;  %v4789_v14 = vld [vmem:[%s9522_s5 + $0x60] sm:$0xf]  ;;  %v4682_v16 = vor.u32 %v6127_v50, %v4679_v62  ;;  %v4862_v11 = vor.u32 %v6174_v3, %v4861_v21 }
 0x126   :  { %1512 = vmatpush.bf16.msrb.mxu0 %v4630_v42  ;;  %1540 = vmatpush.bf16.msra.mxu2 %v4634_v44  ;;  %v6156_v52 = vld [vmem:[%s9522_s5 + $0x64] sm:$0xf0]  ;;  %v4853_v5 = vld [vmem:[%s9522_s5 + $0xe0] sm:$0xf]  ;;  %v4866_v18 = vor.u32 %v6173_v9, %v4863_v47  ;;  %v6155_v20 = vld [vmem:[%s9522_s5 + $0x64] sm:$0xf] }
 0x127   :  { %v6172_v17 = vld [vmem:[%s9522_s5 + $0xe4] sm:$0xf0]  ;;  %v4791_v36 = vld [vmem:[%s9522_s5 + $0x68] sm:$0xf0]  ;;  %v747_v45 = vld [vmem:[#allocation2 + $0x28] sm:$0xff]  ;;  %v4790_v27 = vor.u32 %v6156_v52, %v4789_v14 }
 0x128   :  { %1526 = vmatpush.bf16.msra.mxu1 %v4694_v7  ;;  %1554 = vmatpush.bf16.msrb.mxu3 %v4698_v32  ;;  %v6171_v49 = vld [vmem:[%s9522_s5 + $0xe4] sm:$0xf]  ;;  %v4855_v48 = vld [vmem:[%s9522_s5 + $0xe8] sm:$0xf0]  ;;  %v745_v24 = vld [vmem:[#allocation2 + $0x8] sm:$0xff]  ;;  %v4794_v22 = vor.u32 %v6155_v20, %v4791_v36  ;;  %v4854_v54 = vor.u32 %v6172_v17, %v4853_v5 }
 0x129   :  { %v4781_v25 = vld [vmem:[%s9522_s5 + $0x50] sm:$0xf]  ;;  %v6154_v37 = vld [vmem:[%s9522_s5 + $0x54] sm:$0xf0]  ;;  %v7618_v38 = vpack.c.bf16 %v747_v45, %v745_v24  ;;  %v4858_v31 = vor.u32 %v6171_v49, %v4855_v48  ;;  %v6153_v53 = vld [vmem:[%s9522_s5 + $0x54] sm:$0xf] }
 0x12a   :  { %1513 = vmatpush.bf16.msrb.mxu0 %v4622_v58  ;;  %1541 = vmatpush.bf16.msra.mxu2 %v4626_v39  ;;  %v4845_v40 = vld [vmem:[%s9522_s5 + $0xd0] sm:$0xf]  ;;  %v4783_v59 = vld [vmem:[%s9522_s5 + $0x58] sm:$0xf0]  ;;  %v6170_v26 = vld [vmem:[%s9522_s5 + $0xd4] sm:$0xf0]  ;;  %v4782_v42 = vor.u32 %v6154_v37, %v4781_v25 }
 0x12b   :  { %v6169_v30 = vld [vmem:[%s9522_s5 + $0xd4] sm:$0xf]  ;;  %v4847_v35 = vld [vmem:[%s9522_s5 + $0xd8] sm:$0xf0]  ;;  %v4786_v44 = vor.u32 %v6153_v53, %v4783_v59  ;;  %v4773_v6 = vld [vmem:[%s9522_s5 + $0x40] sm:$0xf]  ;;  %v4846_v7 = vor.u32 %v6170_v26, %v4845_v40 }
 0x12c   :  { %1527 = vmatpush.bf16.msra.mxu1 %v4686_v57  ;;  %1555 = vmatpush.bf16.msrb.mxu3 %v4690_v60  ;;  %v6152_v29 = vld [vmem:[%s9522_s5 + $0x44] sm:$0xf0]  ;;  %v4850_v32 = vor.u32 %v6169_v30, %v4847_v35  ;;  %v4837_v8 = vld [vmem:[%s9522_s5 + $0xc0] sm:$0xf]  ;;  %v6151_v46 = vld [vmem:[%s9522_s5 + $0x44] sm:$0xf] }
 0x12d   :  { %v4775_v28 = vld [vmem:[%s9522_s5 + $0x48] sm:$0xf0]  ;;  %v6168_v33 = vld [vmem:[%s9522_s5 + $0xc4] sm:$0xf0]  ;;  %v6167_v58 = vld [vmem:[%s9522_s5 + $0xc4] sm:$0xf]  ;;  %v4774_v55 = vor.u32 %v6152_v29, %v4773_v6 }
 0x12e   :  { %1514 = vmatpush.bf16.msrb.mxu0 %v4614_v1  ;;  %1542 = vmatpush.bf16.msra.mxu2 %v4618_v2  ;;  %v4839_v39 = vld [vmem:[%s9522_s5 + $0xc8] sm:$0xf0]  ;;  %v4778_v41 = vor.u32 %v6151_v46, %v4775_v28  ;;  %v4765_v63 = vld [vmem:[%s9522_s5 + $0x30] sm:$0xf]  ;;  %v6150_v51 = vld [vmem:[%s9522_s5 + $0x34] sm:$0xf0]  ;;  %v4838_v43 = vor.u32 %v6168_v33, %v4837_v8 }
 0x12f   :  { %v4842_v34 = vor.u32 %v6167_v58, %v4839_v39  ;;  %v4829_v13 = vld [vmem:[%s9522_s5 + $0xb0] sm:$0xf]  ;;  %v6149_v57 = vld [vmem:[%s9522_s5 + $0x34] sm:$0xf]  ;;  %v4767_v60 = vld [vmem:[%s9522_s5 + $0x38] sm:$0xf0]  ;;  %v4766_v50 = vor.u32 %v6150_v51, %v4765_v63 }
 0x130   :  { %1528 = vmatpush.bf16.msra.mxu1 %v4678_v15  ;;  %1556 = vmatpush.bf16.msrb.mxu3 %v4682_v16  ;;  %v6166_v56 = vld [vmem:[%s9522_s5 + $0xb4] sm:$0xf0]  ;;  %v6165_v61 = vld [vmem:[%s9522_s5 + $0xb4] sm:$0xf]  ;;  %v4831_v0 = vld [vmem:[%s9522_s5 + $0xb8] sm:$0xf0]  ;;  %v4770_v62 = vor.u32 %v6149_v57, %v4767_v60 }
 0x131   :  { %1515 = vmatmul.bf16.vlgmr.msrb.gmra.mxu0 %v7610_v23  ;;  %1543 = vmatmul.bf16.vlgmr.msra.gmra.mxu2 %v7610_v23  ;;  %v4757_v21 = vld [vmem:[%s9522_s5 + $0x20] sm:$0xf]  ;;  %v6148_v1 = vld [vmem:[%s9522_s5 + $0x24] sm:$0xf0]  ;;  %v4830_v2 = vor.u32 %v6166_v56, %v4829_v13  ;;  %v4834_v3 = vor.u32 %v6165_v61, %v4831_v0  ;;  %v6147_v47 = vld [vmem:[%s9522_s5 + $0x24] sm:$0xf] }
 0x132   :  { %1723 = vmatpush.bf16.msra.mxu0 %v4798_v10  ;;  %1751 = vmatpush.bf16.msrb.mxu2 %v4802_v12  ;;  %v4821_v9 = vld [vmem:[%s9522_s5 + $0xa0] sm:$0xf]  ;;  %v4759_v10 = vld [vmem:[%s9522_s5 + $0x28] sm:$0xf0]  ;;  %v6164_v12 = vld [vmem:[%s9522_s5 + $0xa4] sm:$0xf0]  ;;  %v4758_v16 = vor.u32 %v6148_v1, %v4757_v21 }
 0x133   :  { %1529 = vmatmul.bf16.vlgmr.msra.gmra.mxu1 %v7618_v38  ;;  %1557 = vmatmul.bf16.vlgmr.msrb.gmra.mxu3 %v7618_v38  ;;  %v6163_v14 = vld [vmem:[%s9522_s5 + $0xa4] sm:$0xf]  ;;  %v4823_v15 = vld [vmem:[%s9522_s5 + $0xa8] sm:$0xf0]  ;;  %v4762_v52 = vor.u32 %v6147_v47, %v4759_v10  ;;  %v4749_v5 = vld [vmem:[%s9522_s5 + $0x10] sm:$0xf] }
 0x134   :  { %1737 = vmatpush.bf16.msrb.mxu1 %v4862_v11  ;;  %1765 = vmatpush.bf16.msra.mxu3 %v4866_v18  ;;  %v6146_v17 = vld [vmem:[%s9522_s5 + $0x14] sm:$0xf0]  ;;  %v4822_v11 = vor.u32 %v6164_v12, %v4821_v9  ;;  %v4826_v18 = vor.u32 %v6163_v14, %v4823_v15  ;;  %v4813_v19 = vld [vmem:[%s9522_s5 + $0x90] sm:$0xf]  ;;  %v6145_v20 = vld [vmem:[%s9522_s5 + $0x14] sm:$0xf] }
 0x135   :  { %v4751_v36 = vld [vmem:[%s9522_s5 + $0x18] sm:$0xf0]  ;;  %v6162_v45 = vld [vmem:[%s9522_s5 + $0x94] sm:$0xf0]  ;;  %v6161_v49 = vld [vmem:[%s9522_s5 + $0x94] sm:$0xf]  ;;  %v4750_v24 = vor.u32 %v6146_v17, %v4749_v5 }
 0x136   :  { %1724 = vmatpush.bf16.msra.mxu0 %v4790_v27  ;;  %1752 = vmatpush.bf16.msrb.mxu2 %v4794_v22  ;;  %v4815_v48 = vld [vmem:[%s9522_s5 + $0x98] sm:$0xf0]  ;;  %v4741_v4 = vld [vmem:[%s9522_s5] sm:$0xf]  ;;  %v4754_v27 = vor.u32 %v6145_v20, %v4751_v36  ;;  %v6144_v22 = vld [vmem:[%s9522_s5 + $0x4] sm:$0xf0] }
 0x137   :  { %v4805_v25 = vld [vmem:[%s9522_s5 + $0x80] sm:$0xf]  ;;  %v6160_v37 = vld [vmem:[%s9522_s5 + $0x84] sm:$0xf0]  ;;  %v6143_v40 = vld [vmem:[%s9522_s5 + $0x4] sm:$0xf]  ;;  %v4742_v29 = vor.u32 %v6144_v22, %v4741_v4 }
 0x138   :  { %1738 = vmatpush.bf16.msrb.mxu1 %v4854_v54  ;;  %1766 = vmatpush.bf16.msra.mxu3 %v4858_v31  ;;  %v4814_v54 = vor.u32 %v6162_v45, %v4813_v19  ;;  %v4818_v31 = vor.u32 %v6161_v49, %v4815_v48  ;;  %v4743_v53 = vld [vmem:[%s9522_s5 + $0x8] sm:$0xf0]  ;;  %v6159_v59 = vld [vmem:[%s9522_s5 + $0x84] sm:$0xf]  ;;  %v4957_v30 = vld [vmem:[%s9521_s4 + $0x270] sm:$0xf]  ;;  %v4806_v28 = vor.u32 %v6160_v37, %v4805_v25 }
 0x139   :  { %v4807_v26 = vld [vmem:[%s9522_s5 + $0x88] sm:$0xf0]  ;;  %v6254_v35 = vld [vmem:[%s9521_s4 + $0x274] sm:$0xf0]  ;;  %v6253_v6 = vld [vmem:[%s9521_s4 + $0x274] sm:$0xf] }
 0x13a   :  { %1725 = vmatpush.bf16.msra.mxu0 %v4782_v42  ;;  %1753 = vmatpush.bf16.msrb.mxu2 %v4786_v44  ;;  %v5021_v42 = vld [vmem:[%s9521_s4 + $0x2f0] sm:$0xf]  ;;  %v6270_v44 = vld [vmem:[%s9521_s4 + $0x2f4] sm:$0xf0]  ;;  %v6269_v8 = vld [vmem:[%s9521_s4 + $0x2f4] sm:$0xf]  ;;  %v4810_v33 = vor.u32 %v6159_v59, %v4807_v26  ;;  %v4958_v58 = vor.u32 %v6254_v35, %v4957_v30 }
 0x13b   :  { %v5023_v46 = vld [vmem:[%s9521_s4 + $0x2f8] sm:$0xf0]  ;;  %v5022_v39 = vor.u32 %v6270_v44, %v5021_v42  ;;  %v6251_v13 = vld [vmem:[%s9521_s4 + $0x264] sm:$0xf]  ;;  %v4951_v57 = vld [vmem:[%s9521_s4 + $0x268] sm:$0xf0] }
 0x13c   :  { %1739 = vmatpush.bf16.msrb.mxu1 %v4846_v7  ;;  %1767 = vmatpush.bf16.msra.mxu3 %v4850_v32  ;;  %v4746_v7 = vor.u32 %v6143_v40, %v4743_v53  ;;  %v4959_v32 = vld [vmem:[%s9521_s4 + $0x278] sm:$0xf0]  ;;  %v5026_v51 = vor.u32 %v6269_v8, %v5023_v46  ;;  %v6267_v60 = vld [vmem:[%s9521_s4 + $0x2e4] sm:$0xf]  ;;  %v5015_v56 = vld [vmem:[%s9521_s4 + $0x2e8] sm:$0xf0]  ;;  %v4954_v21 = vor.u32 %v6251_v13, %v4951_v57 }
 0x13d   :  { %v4962_v63 = vor.u32 %v6253_v6, %v4959_v32  ;;  %v5018_v1 = vor.u32 %v6267_v60, %v5015_v56  ;;  %v6249_v9 = vld [vmem:[%s9521_s4 + $0x254] sm:$0xf]  ;;  %v4943_v47 = vld [vmem:[%s9521_s4 + $0x258] sm:$0xf0]  ;;  %v6263_v19 = vld [vmem:[%s9521_s4 + $0x2c4] sm:$0xf] }
 0x13e   :  { %1726 = vmatpush.bf16.msra.mxu0 %v4774_v55  ;;  %1754 = vmatpush.bf16.msrb.mxu2 %v4778_v41  ;;  %v4949_v55 = vld [vmem:[%s9521_s4 + $0x260] sm:$0xf]  ;;  %v6252_v41 = vld [vmem:[%s9521_s4 + $0x264] sm:$0xf0]  ;;  %v6265_v10 = vld [vmem:[%s9521_s4 + $0x2d4] sm:$0xf]  ;;  %v4946_v5 = vor.u32 %v6249_v9, %v4943_v47 }
 0x13f   :  { %v4950_v61 = vor.u32 %v6252_v41, %v4949_v55  ;;  %v5007_v12 = vld [vmem:[%s9521_s4 + $0x2d8] sm:$0xf0]  ;;  %v4999_v20 = vld [vmem:[%s9521_s4 + $0x2c8] sm:$0xf0]  ;;  %v4925_v49 = vld [vmem:[%s9521_s4 + $0x230] sm:$0xf] }
 0x140   :  { %1740 = vmatpush.bf16.msrb.mxu1 %v4838_v43  ;;  %1768 = vmatpush.bf16.msra.mxu3 %v4842_v34  ;;  %v5013_v43 = vld [vmem:[%s9521_s4 + $0x2e0] sm:$0xf]  ;;  %v6268_v34 = vld [vmem:[%s9521_s4 + $0x2e4] sm:$0xf0]  ;;  %v5010_v17 = vor.u32 %v6265_v10, %v5007_v12  ;;  %v6246_v48 = vld [vmem:[%s9521_s4 + $0x234] sm:$0xf0] }
 0x141   :  { %v5014_v0 = vor.u32 %v6268_v34, %v5013_v43  ;;  %v6262_v22 = vld [vmem:[%s9521_s4 + $0x2b4] sm:$0xf0]  ;;  %v6245_v25 = vld [vmem:[%s9521_s4 + $0x234] sm:$0xf]  ;;  %v4927_v37 = vld [vmem:[%s9521_s4 + $0x238] sm:$0xf0]  ;;  %v4926_v40 = vor.u32 %v6246_v48, %v4925_v49 }
 0x142   :  { %1727 = vmatpush.bf16.msra.mxu0 %v4766_v50  ;;  %1755 = vmatpush.bf16.msrb.mxu2 %v4770_v62  ;;  %v4941_v50 = vld [vmem:[%s9521_s4 + $0x250] sm:$0xf]  ;;  %v6250_v62 = vld [vmem:[%s9521_s4 + $0x254] sm:$0xf0]  ;;  %v4917_v59 = vld [vmem:[%s9521_s4 + $0x220] sm:$0xf]  ;;  %v4930_v30 = vor.u32 %v6245_v25, %v4927_v37 }
 0x143   :  { %v4942_v14 = vor.u32 %v6250_v62, %v4941_v50  ;;  %v6244_v26 = vld [vmem:[%s9521_s4 + $0x224] sm:$0xf0]  ;;  %v4981_v42 = vld [vmem:[%s9521_s4 + $0x2a0] sm:$0xf]  ;;  %v6243_v6 = vld [vmem:[%s9521_s4 + $0x224] sm:$0xf] }
 0x144   :  { %1741 = vmatpush.bf16.msrb.mxu1 %v4830_v2  ;;  %1769 = vmatpush.bf16.msra.mxu3 %v4834_v3  ;;  %v5005_v2 = vld [vmem:[%s9521_s4 + $0x2d0] sm:$0xf]  ;;  %v6266_v3 = vld [vmem:[%s9521_s4 + $0x2d4] sm:$0xf0]  ;;  %v6260_v44 = vld [vmem:[%s9521_s4 + $0x2a4] sm:$0xf0]  ;;  %v4918_v8 = vor.u32 %v6244_v26, %v4917_v59 }
 0x145   :  { %v5006_v15 = vor.u32 %v6266_v3, %v5005_v2  ;;  %v4983_v32 = vld [vmem:[%s9521_s4 + $0x2a8] sm:$0xf0]  ;;  %v4982_v46 = vor.u32 %v6260_v44, %v4981_v42  ;;  %v4973_v41 = vld [vmem:[%s9521_s4 + $0x290] sm:$0xf]  ;;  %v4911_v43 = vld [vmem:[%s9521_s4 + $0x218] sm:$0xf0] }
 0x146   :  { %1728 = vmatpush.bf16.msra.mxu0 %v4758_v16  ;;  %1756 = vmatpush.bf16.msrb.mxu2 %v4762_v52  ;;  %v4933_v16 = vld [vmem:[%s9521_s4 + $0x240] sm:$0xf]  ;;  %v6248_v52 = vld [vmem:[%s9521_s4 + $0x244] sm:$0xf0]  ;;  %v6257_v34 = vld [vmem:[%s9521_s4 + $0x294] sm:$0xf] }
 0x147   :  { %v4934_v36 = vor.u32 %v6248_v52, %v4933_v16  ;;  %v4975_v13 = vld [vmem:[%s9521_s4 + $0x298] sm:$0xf0]  ;;  %v1779_v57 = vld [vmem:[#allocation2] sm:$0xfc]  ;;  %v4901_v60 = vld [vmem:[%s9521_s4 + $0x200] sm:$0xf] }
 0x148   :  { %1742 = vmatpush.bf16.msrb.mxu1 %v4822_v11  ;;  %1770 = vmatpush.bf16.msra.mxu3 %v4826_v18  ;;  %v6247_v11 = vld [vmem:[%s9521_s4 + $0x244] sm:$0xf]  ;;  %v4935_v18 = vld [vmem:[%s9521_s4 + $0x248] sm:$0xf0]  ;;  %v6240_v56 = vld [vmem:[%s9521_s4 + $0x204] sm:$0xf0] }
 0x149   :  { %v4938_v4 = vor.u32 %v6247_v11, %v4935_v18  ;;  %v1781_v50 = vld [vmem:[#allocation2 + $0x10] sm:$0x3]  ;;  %v6239_v3 = vld [vmem:[%s9521_s4 + $0x204] sm:$0xf]  ;;  %v4903_v9 = vld [vmem:[%s9521_s4 + $0x208] sm:$0xf0] }
 0x14a   :  { %1729 = vmatpush.bf16.msra.mxu0 %v4750_v24  ;;  %1757 = vmatpush.bf16.msrb.mxu2 %v4754_v27  ;;  %v5002_v24 = vor.u32 %v6263_v19, %v4999_v20  ;;  %v4989_v27 = vld [vmem:[%s9521_s4 + $0x2b0] sm:$0xf]  ;;  %v1785_v62 = vld [vmem:[#allocation2 + $0x30] sm:$0x3]  ;;  %v6255_v47 = vld [vmem:[%s9521_s4 + $0x284] sm:$0xf] }
 0x14b   :  { %v4990_v53 = vor.u32 %v6262_v22, %v4989_v27  ;;  %v4967_v10 = vld [vmem:[%s9521_s4 + $0x288] sm:$0xf0]  ;;  %v1784_v12 = vld [vmem:[#allocation2 + $0x28] sm:$0xfc]  ;;  %v6286_v52 = vld [vmem:[%s9522_s5 + $0x274] sm:$0xf0]  ;;  %v4906_v22 = vor.u32 %v6239_v3, %v4903_v9 }
 0x14c   :  { %1743 = vmatpush.bf16.msrb.mxu1 %v4814_v54  ;;  %1771 = vmatpush.bf16.msra.mxu3 %v4818_v31  ;;  %v6261_v54 = vld [vmem:[%s9521_s4 + $0x2b4] sm:$0xf]  ;;  %v4991_v31 = vld [vmem:[%s9521_s4 + $0x2b8] sm:$0xf0]  ;;  %v5117_v16 = vld [vmem:[%s9522_s5 + $0x270] sm:$0xf]  ;;  %v4970_v25 = vor.u32 %v6255_v47, %v4967_v10 }
 0x14d   :  { %v4994_v35 = vor.u32 %v6261_v54, %v4991_v31  ;;  %v1786_v11 = vld [vmem:[#allocation2 + $0x38] sm:$0x3]  ;;  %v5119_v18 = vld [vmem:[%s9522_s5 + $0x278] sm:$0xf0]  ;;  %v1795_v19 = vrot.slane %v1779_v57, 2  ;;  %v1802_v27 = vrot.slane %v1785_v62, 2  ;;  %v5118_v31 = vor.u32 %v6286_v52, %v5117_v16 }
 0x14e   :  { %1730 = vmatpush.bf16.msra.mxu0 %v4742_v29  ;;  %1758 = vmatpush.bf16.msrb.mxu2 %v4746_v7  ;;  %v4919_v29 = vld [vmem:[%s9521_s4 + $0x228] sm:$0xf0]  ;;  %v6259_v7 = vld [vmem:[%s9521_s4 + $0x2a4] sm:$0xf]  ;;  %v1782_v20 = vld [vmem:[#allocation2 + $0x18] sm:$0x3] }
 0x14f   :  { %v4986_v55 = vor.u32 %v6259_v7, %v4983_v32  ;;  %v6301_v48 = vld [vmem:[%s9522_s5 + $0x2f4] sm:$0xf]  ;;  %v1805_v54 = vrot.slane %v1786_v11, 2  ;;  %v1799_v59 = vrot.slane %v1782_v20, 2  ;;  %v5109_v26 = vld [vmem:[%s9522_s5 + $0x260] sm:$0xf] }
 0x150   :  { %1744 = vmatpush.bf16.msrb.mxu1 %v4806_v28  ;;  %1772 = vmatpush.bf16.msra.mxu3 %v4810_v33  ;;  %v4909_v28 = vld [vmem:[%s9521_s4 + $0x210] sm:$0xf]  ;;  %v6242_v33 = vld [vmem:[%s9521_s4 + $0x214] sm:$0xf0]  ;;  %v6283_v7 = vld [vmem:[%s9522_s5 + $0x264] sm:$0xf] }
 0x151   :  { %1731 = vmatmul.bf16.vlgmr.msra.gmra.mxu0 %v7610_v23  ;;  %1759 = vmatmul.bf16.vlgmr.msrb.gmra.mxu2 %v7610_v23  ;;  %v4997_v23 = vld [vmem:[%s9521_s4 + $0x2c0] sm:$0xf]  ;;  %v6298_v57 = vld [vmem:[%s9522_s5 + $0x2d4] sm:$0xf0]  ;;  %v6296_v47 = vld [vmem:[%s9522_s5 + $0x2c4] sm:$0xf0] }
 0x152   :  { %2006 = vmatpush.bf16.msrb.mxu0 %v4958_v58  ;;  %2034 = vmatpush.bf16.msra.mxu2 %v4962_v63  ;;  %v1783_v58 = vld [vmem:[#allocation2 + $0x20] sm:$0xfc]  ;;  %v6258_v63 = vld [vmem:[%s9521_s4 + $0x294] sm:$0xf0]  ;;  %v5157_v9 = vld [vmem:[%s9522_s5 + $0x2c0] sm:$0xf] }
 0x153   :  { %1745 = vmatmul.bf16.vlgmr.msrb.gmra.mxu1 %v7618_v38  ;;  %1773 = vmatmul.bf16.vlgmr.msra.gmra.mxu3 %v7618_v38  ;;  %v6264_v38 = vld [vmem:[%s9521_s4 + $0x2c4] sm:$0xf0]  ;;  %v4974_v2 = vor.u32 %v6258_v63, %v4973_v41  ;;  %v5101_v63 = vld [vmem:[%s9522_s5 + $0x250] sm:$0xf]  ;;  %v6279_v10 = vld [vmem:[%s9522_s5 + $0x244] sm:$0xf]  ;;  %v5158_v52 = vor.u32 %v6296_v47, %v5157_v9 }
 0x154   :  { %2020 = vmatpush.bf16.msra.mxu1 %v5022_v39  ;;  %2048 = vmatpush.bf16.msrb.mxu3 %v5026_v51  ;;  %v4998_v45 = vor.u32 %v6264_v38, %v4997_v23  ;;  %v4922_v39 = vor.u32 %v6243_v6, %v4919_v29  ;;  %v6241_v51 = vld [vmem:[%s9521_s4 + $0x214] sm:$0xf]  ;;  %v5173_v6 = vld [vmem:[%s9522_s5 + $0x2e0] sm:$0xf]  ;;  %v6300_v29 = vld [vmem:[%s9522_s5 + $0x2e4] sm:$0xf0] }
 0x155   :  { %v6285_v23 = vld [vmem:[%s9522_s5 + $0x274] sm:$0xf]  ;;  %v5174_v41 = vor.u32 %v6300_v29, %v5173_v6  ;;  %v5149_v11 = vld [vmem:[%s9522_s5 + $0x2b0] sm:$0xf]  ;;  %v5087_v20 = vld [vmem:[%s9522_s5 + $0x238] sm:$0xf0] }
 0x156   :  { %2007 = vmatpush.bf16.msrb.mxu0 %v4950_v61  ;;  %2035 = vmatpush.bf16.msra.mxu2 %v4954_v21  ;;  %v4965_v61 = vld [vmem:[%s9521_s4 + $0x280] sm:$0xf]  ;;  %v1801_v21 = vrot.slane %v1783_v58, 2  ;;  %v1780_v38 = vld [vmem:[#allocation2 + $0x8] sm:$0xfc] }
 0x157   :  { %v1798_v37 = vrot.slane %v1780_v38, 2  ;;  %v5133_v6 = vld [vmem:[%s9522_s5 + $0x290] sm:$0xf]  ;;  %v6290_v29 = vld [vmem:[%s9522_s5 + $0x294] sm:$0xf0] }
 0x158   :  { %2021 = vmatpush.bf16.msra.mxu1 %v5014_v0  ;;  %2049 = vmatpush.bf16.msrb.mxu3 %v5018_v1  ;;  %v6256_v0 = vld [vmem:[%s9521_s4 + $0x284] sm:$0xf0]  ;;  %v4910_v1 = vor.u32 %v6242_v33, %v4909_v28  ;;  %v5175_v28 = vld [vmem:[%s9522_s5 + $0x2e8] sm:$0xf0] }
 0x159   :  { %v4966_v49 = vor.u32 %v6256_v0, %v4965_v61  ;;  %v1800_v58 = vsel %vm530_vm4, %v1798_v37, %v1799_v59  ;;  %v6297_v61 = vld [vmem:[%s9522_s5 + $0x2d4] sm:$0xf]  ;;  %v5167_v0 = vld [vmem:[%s9522_s5 + $0x2d8] sm:$0xf0]  ;;  %v6292_v37 = vld [vmem:[%s9522_s5 + $0x2a4] sm:$0xf0] }
 0x15a   :  { %2008 = vmatpush.bf16.msrb.mxu0 %v4942_v14  ;;  %2036 = vmatpush.bf16.msra.mxu2 %v4946_v5  ;;  %v4914_v14 = vor.u32 %v6241_v51, %v4911_v43  ;;  %v5181_v5 = vld [vmem:[%s9522_s5 + $0x2f0] sm:$0xf]  ;;  %v6282_v51 = vld [vmem:[%s9522_s5 + $0x254] sm:$0xf0]  ;;  %v5170_v3 = vor.u32 %v6297_v61, %v5167_v0 }
 0x15c   :  { %2022 = vmatpush.bf16.msra.mxu1 %v5006_v15  ;;  %2050 = vmatpush.bf16.msrb.mxu3 %v5010_v17  ;;  %v4978_v15 = vor.u32 %v6257_v34, %v4975_v13  ;;  %v6302_v17 = vld [vmem:[%s9522_s5 + $0x2f4] sm:$0xf0]  ;;  %v5165_v13 = vld [vmem:[%s9522_s5 + $0x2d0] sm:$0xf] }
 0x15d   :  { %v5166_v62 = vor.u32 %v6298_v57, %v5165_v13  ;;  %v6271_v13 = vld [vmem:[%s9522_s5 + $0x204] sm:$0xf]  ;;  %v5063_v57 = vld [vmem:[%s9522_s5 + $0x208] sm:$0xf0] }
 0x15e   :  { %2009 = vmatpush.bf16.msrb.mxu0 %v4934_v36  ;;  %2037 = vmatpush.bf16.msra.mxu2 %v4938_v4  ;;  %v1804_v36 = vrot.slane %v1784_v12, 2  ;;  %v5183_v4 = vld [vmem:[%s9522_s5 + $0x2f8] sm:$0xf0]  ;;  %v5095_v12 = vld [vmem:[%s9522_s5 + $0x248] sm:$0xf0] }
 0x15f   :  { %v5186_v42 = vor.u32 %v6301_v48, %v5183_v4  ;;  %v5077_v4 = vld [vmem:[%s9522_s5 + $0x220] sm:$0xf] }
 0x160   :  { %2023 = vmatpush.bf16.msra.mxu1 %v4998_v45  ;;  %2051 = vmatpush.bf16.msrb.mxu3 %v5002_v24  ;;  %v4902_v45 = vor.u32 %v6240_v56, %v4901_v60  ;;  %v1796_v24 = vrot.slane %v1781_v50, 2  ;;  %v1806_v44 = vsel %vm530_vm4, %v1804_v36, %v1805_v54  ;;  %v6281_v60 = vld [vmem:[%s9522_s5 + $0x254] sm:$0xf]  ;;  %v5103_v56 = vld [vmem:[%s9522_s5 + $0x258] sm:$0xf0]  ;;  %v5102_v50 = vor.u32 %v6282_v51, %v5101_v63 }
 0x161   :  { %v6293_v36 = vld [vmem:[%s9522_s5 + $0x2b4] sm:$0xf]  ;;  %v6275_v54 = vld [vmem:[%s9522_s5 + $0x224] sm:$0xf] }
 0x162   :  { %2010 = vmatpush.bf16.msrb.mxu0 %v4926_v40  ;;  %2038 = vmatpush.bf16.msra.mxu2 %v4930_v30  ;;  %v5182_v40 = vor.u32 %v6302_v17, %v5181_v5  ;;  %v6284_v30 = vld [vmem:[%s9522_s5 + $0x264] sm:$0xf0]  ;;  %v1797_v32 = vsel %vm530_vm4, %v1795_v19, %v1796_v24  ;;  %v5085_v5 = vld [vmem:[%s9522_s5 + $0x230] sm:$0xf]  ;;  %v6278_v17 = vld [vmem:[%s9522_s5 + $0x234] sm:$0xf0] }
 0x163   :  { %v6277_v19 = vld [vmem:[%s9522_s5 + $0x234] sm:$0xf]  ;;  %v6276_v24 = vld [vmem:[%s9522_s5 + $0x224] sm:$0xf0] }
 0x164   :  { %2024 = vmatpush.bf16.msra.mxu1 %v4990_v53  ;;  %2052 = vmatpush.bf16.msrb.mxu3 %v4994_v35  ;;  %v1803_v53 = vsel %vm530_vm4, %v1801_v21, %v1802_v27  ;;  %v5122_v35 = vor.u32 %v6285_v23, %v5119_v18  ;;  %v5093_v21 = vld [vmem:[%s9522_s5 + $0x240] sm:$0xf]  ;;  %v5098_v23 = vor.u32 %v6279_v10, %v5095_v12  ;;  %v6294_v18 = vld [vmem:[%s9522_s5 + $0x2b4] sm:$0xf0] }
 0x165   :  { %v8009_v33 = vpack.c.bf16 %v1803_v53, %v1797_v32  ;;  %v5150_v48 = vor.u32 %v6294_v18, %v5149_v11  ;;  %v5090_v27 = vor.u32 %v6277_v19, %v5087_v20  ;;  %v5143_v53 = vld [vmem:[%s9522_s5 + $0x2a8] sm:$0xf0]  ;;  %v5078_v59 = vor.u32 %v6276_v24, %v5077_v4  ;;  %v5071_v32 = vld [vmem:[%s9522_s5 + $0x218] sm:$0xf0] }
 0x166   :  { %2011 = vmatpush.bf16.msrb.mxu0 %v4918_v8  ;;  %2039 = vmatpush.bf16.msra.mxu2 %v4922_v39  ;;  %v5111_v8 = vld [vmem:[%s9522_s5 + $0x268] sm:$0xf0]  ;;  %v8012_v39 = vpack.c.bf16 %v1806_v44, %v1800_v58  ;;  %v5134_v58 = vor.u32 %v6290_v29, %v5133_v6 }
 0x167   :  { %v5114_v43 = vor.u32 %v6283_v7, %v5111_v8  ;;  %v6273_v7 = vld [vmem:[%s9522_s5 + $0x214] sm:$0xf] }
 0x168   :  { %2025 = vmatpush.bf16.msra.mxu1 %v4982_v46  ;;  %2053 = vmatpush.bf16.msrb.mxu3 %v4986_v55  ;;  %v6299_v46 = vld [vmem:[%s9522_s5 + $0x2e4] sm:$0xf]  ;;  %v5110_v55 = vor.u32 %v6284_v30, %v5109_v26  ;;  %v5069_v30 = vld [vmem:[%s9522_s5 + $0x210] sm:$0xf]  ;;  %v6289_v8 = vld [vmem:[%s9522_s5 + $0x294] sm:$0xf]  ;;  %v5074_v63 = vor.u32 %v6273_v7, %v5071_v32 }
 0x169   :  { %v5178_v34 = vor.u32 %v6299_v46, %v5175_v28  ;;  %v5135_v46 = vld [vmem:[%s9522_s5 + $0x298] sm:$0xf0] }
 0x16a   :  { %2012 = vmatpush.bf16.msrb.mxu0 %v4910_v1  ;;  %2040 = vmatpush.bf16.msra.mxu2 %v4914_v14  ;;  %v6280_v1 = vld [vmem:[%s9522_s5 + $0x244] sm:$0xf0]  ;;  %v6295_v14 = vld [vmem:[%s9522_s5 + $0x2c4] sm:$0xf]  ;;  %v5138_v51 = vor.u32 %v6289_v8, %v5135_v46 }
 0x16b   :  { %v5094_v16 = vor.u32 %v6280_v1, %v5093_v21 }
 0x16c   :  { %2026 = vmatpush.bf16.msra.mxu1 %v4974_v2  ;;  %2054 = vmatpush.bf16.msrb.mxu3 %v4978_v15  ;;  %v5106_v2 = vor.u32 %v6281_v60, %v5103_v56  ;;  %v5159_v15 = vld [vmem:[%s9522_s5 + $0x2c8] sm:$0xf0]  ;;  %v6287_v60 = vld [vmem:[%s9522_s5 + $0x284] sm:$0xf] }
 0x16d   :  { %v5162_v38 = vor.u32 %v6295_v14, %v5159_v15  ;;  %v5127_v56 = vld [vmem:[%s9522_s5 + $0x288] sm:$0xf0] }
 0x16e   :  { %2013 = vmatpush.bf16.msrb.mxu0 %v4902_v45  ;;  %2041 = vmatpush.bf16.msra.mxu2 %v4906_v22  ;;  %v5151_v45 = vld [vmem:[%s9522_s5 + $0x2b8] sm:$0xf0] }
 0x16f   :  { %v5154_v22 = vor.u32 %v6293_v36, %v5151_v45 }
 0x170   :  { %2027 = vmatpush.bf16.msra.mxu1 %v4966_v49  ;;  %2055 = vmatpush.bf16.msrb.mxu3 %v4970_v25  ;;  %v5086_v49 = vor.u32 %v6278_v17, %v5085_v5  ;;  %v5141_v25 = vld [vmem:[%s9522_s5 + $0x2a0] sm:$0xf] }
 0x171   :  { %2014 = vmatmul.bf16.vlgmr.msrb.gmra.mxu0 %v8009_v33  ;;  %2042 = vmatmul.bf16.vlgmr.msra.gmra.mxu2 %v8009_v33  ;;  %v5142_v26 = vor.u32 %v6292_v37, %v5141_v25 }
 0x172   :  { %2255 = vmatpush.bf16.msra.mxu0 %v5118_v31  ;;  %2283 = vmatpush.bf16.msrb.mxu2 %v5122_v35  ;;  %v5079_v31 = vld [vmem:[%s9522_s5 + $0x228] sm:$0xf0]  ;;  %v6274_v35 = vld [vmem:[%s9522_s5 + $0x214] sm:$0xf0] }
 0x173   :  { %2028 = vmatmul.bf16.vlgmr.msra.gmra.mxu1 %v8012_v39  ;;  %2056 = vmatmul.bf16.vlgmr.msrb.gmra.mxu3 %v8012_v39  ;;  %v5070_v28 = vor.u32 %v6274_v35, %v5069_v30 }
 0x174   :  { %2269 = vmatpush.bf16.msrb.mxu1 %v5182_v40  ;;  %2297 = vmatpush.bf16.msra.mxu3 %v5186_v42  ;;  %v6291_v40 = vld [vmem:[%s9522_s5 + $0x2a4] sm:$0xf]  ;;  %v5082_v42 = vor.u32 %v6275_v54, %v5079_v31 }
 0x175   :  { %v5146_v44 = vor.u32 %v6291_v40, %v5143_v53 }
 0x176   :  { %2256 = vmatpush.bf16.msra.mxu0 %v5110_v55  ;;  %2284 = vmatpush.bf16.msrb.mxu2 %v5114_v43  ;;  %v5061_v55 = vld [vmem:[%s9522_s5 + $0x200] sm:$0xf] }
 0x177   :  { %v5125_v43 = vld [vmem:[%s9522_s5 + $0x280] sm:$0xf] }
 0x178   :  { %2270 = vmatpush.bf16.msrb.mxu1 %v5174_v41  ;;  %2298 = vmatpush.bf16.msra.mxu3 %v5178_v34  ;;  %v6272_v41 = vld [vmem:[%s9522_s5 + $0x204] sm:$0xf0] }
 0x179   :  { %v6288_v34 = vld [vmem:[%s9522_s5 + $0x284] sm:$0xf0]  ;;  %v5062_v61 = vor.u32 %v6272_v41, %v5061_v55  ;;  %v5377_v55 = vld [vmem:[%s9524_s7 + $0x2e0] sm:$0xf]  ;;  %v6397_v41 = vld [vmem:[%s9524_s7 + $0x2ec] sm:$0xf0] }
 0x17a   :  { %2257 = vmatpush.bf16.msra.mxu0 %v5102_v50  ;;  %2285 = vmatpush.bf16.msrb.mxu2 %v5106_v2  ;;  %v5126_v0 = vor.u32 %v6288_v34, %v5125_v43  ;;  %v5066_v50 = vor.u32 %v6271_v13, %v5063_v57  ;;  %v5378_v34 = vor.u32 %v6397_v41, %v5377_v55  ;;  %v6429_v13 = vld [vmem:[%s9524_s7 + $0x3ec] sm:$0xf0]  ;;  %v6395_v57 = vld [vmem:[%s9524_s7 + $0x2e4] sm:$0xf]  ;;  %v5345_v55 = vld [vmem:[%s9524_s7 + $0x2a0] sm:$0xf] }
 0x17c   :  { %2271 = vmatpush.bf16.msrb.mxu1 %v5166_v62  ;;  %2299 = vmatpush.bf16.msra.mxu3 %v5170_v3  ;;  %v5130_v62 = vor.u32 %v6287_v60, %v5127_v56  ;;  %v5379_v60 = vld [vmem:[%s9524_s7 + $0x2f0] sm:$0xf0] }
 0x17e   :  { %2258 = vmatpush.bf16.msra.mxu0 %v5094_v16  ;;  %2286 = vmatpush.bf16.msrb.mxu2 %v5098_v23 }
 0x180   :  { %2272 = vmatpush.bf16.msrb.mxu1 %v5158_v52  ;;  %2300 = vmatpush.bf16.msra.mxu3 %v5162_v38 }
 0x182   :  { %2259 = vmatpush.bf16.msra.mxu0 %v5086_v49  ;;  %2287 = vmatpush.bf16.msrb.mxu2 %v5090_v27 }
 0x184   :  { %2273 = vmatpush.bf16.msrb.mxu1 %v5150_v48  ;;  %2301 = vmatpush.bf16.msra.mxu3 %v5154_v22 }
 0x186   :  { %2260 = vmatpush.bf16.msra.mxu0 %v5078_v59  ;;  %2288 = vmatpush.bf16.msrb.mxu2 %v5082_v42 }
 0x188   :  { %2274 = vmatpush.bf16.msrb.mxu1 %v5142_v26  ;;  %2302 = vmatpush.bf16.msra.mxu3 %v5146_v44 }
 0x18a   :  { %2261 = vmatpush.bf16.msra.mxu0 %v5070_v28  ;;  %2289 = vmatpush.bf16.msrb.mxu2 %v5074_v63  ;;  %v5505_v63 = vld [vmem:[%s9524_s7 + $0x3e0] sm:$0xf] }
 0x18c   :  { %2275 = vmatpush.bf16.msrb.mxu1 %v5134_v58  ;;  %2303 = vmatpush.bf16.msra.mxu3 %v5138_v51 }
 0x18e   :  { %2262 = vmatpush.bf16.msra.mxu0 %v5062_v61  ;;  %2290 = vmatpush.bf16.msrb.mxu2 %v5066_v50  ;;  %v1051_v21 = vpop.f32.mrf.mxu0  ;;  %v5382_v50 = vor.u32 %v6395_v57, %v5379_v60 }
 0x190   :  { %2276 = vmatpush.bf16.msrb.mxu1 %v5126_v0  ;;  %2304 = vmatpush.bf16.msra.mxu3 %v5130_v62  ;;  %v1065_v1 = vpop.f32.mrf.mxu1  ;;  %v5506_v0 = vor.u32 %v6429_v13, %v5505_v63  ;;  %v6427_v62 = vld [vmem:[%s9524_s7 + $0x3e4] sm:$0xf]  ;;  %v6421_v13 = vld [vmem:[%s9524_s7 + $0x3ac] sm:$0xf0] }
 0x191   :  { %2263 = vmatmul.bf16.vlgmr.msra.gmra.mxu0 %v8009_v33  ;;  %2291 = vmatmul.bf16.vlgmr.msrb.gmra.mxu2 %v8009_v33  ;;  %v1066_v6 = vadd.f32 %v1065_v1, %v1051_v21  ;;  %v5507_v21 = vld [vmem:[%s9524_s7 + $0x3f0] sm:$0xf0] }
 0x192   :  { %2958 = vmatpush.bf16.msrb.mxu0 %v5378_v34  ;;  %2984 = vmatpush.bf16.msra.mxu2 %v5382_v50  ;;  %v5473_v34 = vld [vmem:[%s9524_s7 + $0x3a0] sm:$0xf]  ;;  %v6419_v50 = vld [vmem:[%s9524_s7 + $0x3a4] sm:$0xf] }
 0x193   :  { %2277 = vmatmul.bf16.vlgmr.msrb.gmra.mxu1 %v8012_v39  ;;  %2305 = vmatmul.bf16.vlgmr.msra.gmra.mxu3 %v8012_v39 }
 0x194   :  { %v1079_v2 = vpop.f32.mrf.mxu2  ;;  %2971 = vmatpush.bf16.msra.mxu1 %v5506_v0  ;;  %v5347_v0 = vld [vmem:[%s9524_s7 + $0x2b0] sm:$0xf0] }
 0x196   :  { %v1093_v3 = vpop.f32.mrf.mxu3  ;;  %v1053_v9 = vpop.f32.mrf.mxu0 }
 0x197   :  { %v1094_v47 = vadd.f32 %v1093_v3, %v1079_v2 }
 0x198   :  { %v1067_v10 = vpop.f32.mrf.mxu1 }
 0x199   :  { %v1068_v12 = vadd.f32 %v1067_v10, %v1053_v9  ;;  %v5510_v9 = vor.u32 %v6427_v62, %v5507_v21 }
 0x19b   :  { %2997 = vmatpush.bf16.msrb.mxu3 %v5510_v9  ;;  %v5329_v9 = vld [vmem:[%s9524_s7 + $0x280] sm:$0xf] }
 0x19c   :  { %v1081_v14 = vpop.f32.mrf.mxu2 }
 0x19e   :  { %v1095_v15 = vpop.f32.mrf.mxu3  ;;  %v1300_v52 = vpop.f32.mrf.mxu0 }
 0x19f   :  { %v8166_v16 = vadd.f32 %v1095_v15, %v1081_v14 }
 0x1a0   :  { %v1314_v5 = vpop.f32.mrf.mxu1 }
 0x1a1   :  { %v1315_v44 = vadd.f32 %v1314_v5, %v1300_v52  ;;  %v8211_v5 = vld [vmem:[%s9523_s6] sm:$0x3] }
 0x1a4   :  { %v1328_v17 = vpop.f32.mrf.mxu2 }
 0x1a6   :  { %v1342_v23 = vpop.f32.mrf.mxu3  ;;  %v1302_v38 = vpop.f32.mrf.mxu0 }
 0x1a7   :  { %v1343_v51 = vadd.f32 %v1342_v23, %v1328_v17 }
 0x1a8   :  { %v1316_v33 = vpop.f32.mrf.mxu1 }
 0x1a9   :  { %v1317_v43 = vadd.f32 %v1316_v33, %v1302_v38 }
 0x1ac   :  { %v8168_v11 = vpop.f32.mrf.mxu2 }
 0x1ae   :  { %v8170_v39 = vpop.f32.mrf.mxu3  ;;  %v1516_v18 = vpop.f32.mrf.mxu0 }
 0x1af   :  { %v1517_v28 = vadd.f32 %v1516_v18, %v1066_v6  ;;  %v6425_v6 = vld [vmem:[%s9524_s7 + $0x3cc] sm:$0xf0] }
 0x1b0   :  { %v1530_v19 = vpop.f32.mrf.mxu1 }
 0x1b1   :  { %v1531_v10 = vadd.f32 %v1530_v19, %v1517_v28 }
 0x1b4   :  { %v1544_v20 = vpop.f32.mrf.mxu2 }
 0x1b5   :  { %v1545_v1 = vadd.f32 %v1544_v20, %v1094_v47 }
 0x1b6   :  { %v1558_v36 = vpop.f32.mrf.mxu3  ;;  %v1518_v45 = vpop.f32.mrf.mxu0 }
 0x1b7   :  { %v1519_v2 = vadd.f32 %v1518_v45, %v1068_v12  ;;  %v1559_v12 = vadd.f32 %v1558_v36, %v1545_v1  ;;  %v5361_v36 = vld [vmem:[%s9524_s7 + $0x2c0] sm:$0xf] }
 0x1b8   :  { %v1532_v49 = vpop.f32.mrf.mxu1 }
 0x1b9   :  { %v1533_v33 = vadd.f32 %v1532_v49, %v1519_v2  ;;  %v6393_v49 = vld [vmem:[%s9524_s7 + $0x2cc] sm:$0xf0] }
 0x1bc   :  { %v8172_v48 = vpop.f32.mrf.mxu2 }
 0x1be   :  { %v8174_v4 = vpop.f32.mrf.mxu3 }
 0x1ce   :  { %v1732_v24 = vpop.f32.mrf.mxu0 }
 0x1cf   :  { %v1733_v29 = vadd.f32 %v1732_v24, %v1315_v44  ;;  %v5362_v44 = vor.u32 %v6393_v49, %v5361_v36 }
 0x1d0   :  { %v1746_v27 = vpop.f32.mrf.mxu1 }
 0x1d1   :  { %v1747_v56 = vadd.f32 %v1746_v27, %v1733_v29  ;;  %v6391_v29 = vld [vmem:[%s9524_s7 + $0x2c4] sm:$0xf]  ;;  %2959 = vmatpush.bf16.msrb.mxu0 %v5362_v44 }
 0x1d4   :  { %v1760_v22 = vpop.f32.mrf.mxu2 }
 0x1d5   :  { %v1761_v3 = vadd.f32 %v1760_v22, %v1343_v51  ;;  %v2324_v22 = vperm.slane %v8211_v5, 0 }
 0x1d6   :  { %v1774_v25 = vpop.f32.mrf.mxu3  ;;  %v1734_v37 = vpop.f32.mrf.mxu0 }
 0x1d7   :  { %v1735_v14 = vadd.f32 %v1734_v37, %v1317_v43  ;;  %v1775_v18 = vadd.f32 %v1774_v25, %v1761_v3  ;;  %v5489_v25 = vld [vmem:[%s9524_s7 + $0x3c0] sm:$0xf]  ;;  %v6389_v43 = vld [vmem:[%s9524_s7 + $0x2ac] sm:$0xf0]  ;;  %v5475_v3 = vld [vmem:[%s9524_s7 + $0x3b0] sm:$0xf0] }
 0x1d8   :  { %v1748_v54 = vpop.f32.mrf.mxu1 }
 0x1d9   :  { %v1749_v24 = vadd.f32 %v1748_v54, %v1735_v14 }
 0x1dc   :  { %v8176_v31 = vpop.f32.mrf.mxu2 }
 0x1de   :  { %v8178_v40 = vpop.f32.mrf.mxu3 }
 0x1ee   :  { %v2015_v53 = vpop.f32.mrf.mxu0 }
 0x1f0   :  { %v2029_v59 = vpop.f32.mrf.mxu1 }
 0x1f1   :  { %v2030_v61 = vadd.f32 %v2029_v59, %v2015_v53  ;;  %v1345_v53 = vadd.f32 %v8170_v39, %v8168_v11  ;;  %v1547_v11 = vadd.f32 %v8172_v48, %v8166_v16  ;;  %v6423_v48 = vld [vmem:[%s9524_s7 + $0x3c4] sm:$0xf] }
 0x1f3   :  { %v2311_v17 = vadd.f32 %v2030_v61, %v1531_v10  ;;  %v1763_v39 = vadd.f32 %v8176_v31, %v1345_v53  ;;  %v5491_v31 = vld [vmem:[%s9524_s7 + $0x3d0] sm:$0xf0]  ;;  %v6387_v61 = vld [vmem:[%s9524_s7 + $0x2a4] sm:$0xf]  ;;  %v1561_v10 = vadd.f32 %v8174_v4, %v1547_v11  ;;  %v6417_v4 = vld [vmem:[%s9524_s7 + $0x38c] sm:$0xf0] }
 0x1f4   :  { %v2043_v26 = vpop.f32.mrf.mxu2  ;;  %v5494_v51 = vor.u32 %v6423_v48, %v5491_v31  ;;  %v5350_v2 = vor.u32 %v6387_v61, %v5347_v0  ;;  %v5313_v53 = vld [vmem:[%s9524_s7 + $0x260] sm:$0xf]  ;;  %v5443_v48 = vld [vmem:[%s9524_s7 + $0x370] sm:$0xf0] }
 0x1f5   :  { %v1777_v62 = vadd.f32 %v8178_v40, %v1763_v39  ;;  %v6385_v40 = vld [vmem:[%s9524_s7 + $0x28c] sm:$0xf0]  ;;  %v5299_v0 = vld [vmem:[%s9524_s7 + $0x250] sm:$0xf0] }
 0x1f6   :  { %v2057_v30 = vpop.f32.mrf.mxu3  ;;  %v2017_v35 = vpop.f32.mrf.mxu0  ;;  %2998 = vmatpush.bf16.msrb.mxu3 %v5494_v51  ;;  %v6377_v51 = vld [vmem:[%s9524_s7 + $0x24c] sm:$0xf0] }
 0x1f7   :  { %v2058_v52 = vadd.f32 %v2057_v30, %v2043_v26  ;;  %v2325_v30 = vperm.slane %v8211_v5, 1 }
 0x1f8   :  { %v2031_v42 = vpop.f32.mrf.mxu1 }
 0x1f9   :  { %v2032_v23 = vadd.f32 %v2031_v42, %v2017_v35  ;;  %v2312_v59 = vadd.f32 %v2058_v52, %v1559_v12  ;;  %v5457_v52 = vld [vmem:[%s9524_s7 + $0x380] sm:$0xf]  ;;  %v6383_v12 = vld [vmem:[%s9524_s7 + $0x284] sm:$0xf] }
 0x1fb   :  { %v2313_v35 = vadd.f32 %v2032_v23, %v1533_v33 }
 0x1fc   :  { %v8180_v7 = vpop.f32.mrf.mxu2 }
 0x1fe   :  { %v8182_v32 = vpop.f32.mrf.mxu3 }
 0x1ff   :  { %v2060_v41 = vadd.f32 %v8182_v32, %v8180_v7  ;;  %v5346_v32 = vor.u32 %v6389_v43, %v5345_v55  ;;  %v5425_v43 = vld [vmem:[%s9524_s7 + $0x340] sm:$0xf] }
 0x201   :  { %2960 = vmatpush.bf16.msrb.mxu0 %v5346_v32  ;;  %v2314_v33 = vadd.f32 %v2060_v41, %v1561_v10 }
 0x20e   :  { %v2264_v8 = vpop.f32.mrf.mxu0 }
 0x210   :  { %v2278_v46 = vpop.f32.mrf.mxu1 }
 0x211   :  { %v2279_v58 = vadd.f32 %v2278_v46, %v2264_v8  ;;  %v5363_v8 = vld [vmem:[%s9524_s7 + $0x2d0] sm:$0xf0] }
 0x212   :  { %v5366_v16 = vor.u32 %v6391_v29, %v5363_v8  ;;  %v5315_v29 = vld [vmem:[%s9524_s7 + $0x270] sm:$0xf0]  ;;  %v6411_v8 = vld [vmem:[%s9524_s7 + $0x364] sm:$0xf] }
 0x213   :  { %v2315_v15 = vadd.f32 %v2279_v58, %v1747_v56  ;;  %v5490_v58 = vor.u32 %v6425_v6, %v5489_v25  ;;  %v5474_v56 = vor.u32 %v6421_v13, %v5473_v34  ;;  %v6413_v25 = vld [vmem:[%s9524_s7 + $0x36c] sm:$0xf0]  ;;  %v6379_v6 = vld [vmem:[%s9524_s7 + $0x264] sm:$0xf] }
 0x214   :  { %v2292_v38 = vpop.f32.mrf.mxu2  ;;  %2985 = vmatpush.bf16.msra.mxu2 %v5366_v16  ;;  %v5318_v41 = vor.u32 %v6379_v6, %v5315_v29 }
 0x215   :  { %v2319_v27 = vmax.f32 %v2311_v17, %v2315_v15  ;;  %2972 = vmatpush.bf16.msra.mxu1 %v5490_v58  ;;  %v5478_v15 = vor.u32 %v6419_v50, %v5475_v3  ;;  %v6407_v50 = vld [vmem:[%s9524_s7 + $0x344] sm:$0xf]  ;;  %v5427_v3 = vld [vmem:[%s9524_s7 + $0x350] sm:$0xf0] }
 0x216   :  { %v2306_v47 = vpop.f32.mrf.mxu3  ;;  %v2266_v19 = vpop.f32.mrf.mxu0 }
 0x217   :  { %v2307_v20 = vadd.f32 %v2306_v47, %v2292_v38  ;;  %v2328_v46 = vadd.f32 %v2324_v22, %v2319_v27  ;;  %v5330_v47 = vor.u32 %v6385_v40, %v5329_v9  ;;  %2999 = vmatpush.bf16.msrb.mxu3 %v5478_v15  ;;  %v5281_v40 = vld [vmem:[%s9524_s7 + $0x220] sm:$0xf] }
 0x218   :  { %v2280_v45 = vpop.f32.mrf.mxu1  ;;  %2986 = vmatpush.bf16.msra.mxu2 %v5350_v2 }
 0x219   :  { %v2281_v37 = vadd.f32 %v2280_v45, %v2266_v19  ;;  %v2316_v26 = vadd.f32 %v2307_v20, %v1775_v18  ;;  %v2332_v14 = vmax.f32 %v2328_v46, 0.0  ;;  %2973 = vmatpush.bf16.msra.mxu1 %v5474_v56  ;;  %v5458_v18 = vor.u32 %v6417_v4, %v5457_v52  ;;  %v5331_v20 = vld [vmem:[%s9524_s7 + $0x290] sm:$0xf0]  ;;  %v6415_v19 = vld [vmem:[%s9524_s7 + $0x384] sm:$0xf]  ;;  %2961 = vmatpush.bf16.msrb.mxu0 %v5330_v47 }
 0x21a   :  { %v5459_v45 = vld [vmem:[%s9524_s7 + $0x390] sm:$0xf0]  ;;  %v5334_v39 = vor.u32 %v6383_v12, %v5331_v20  ;;  %v5446_v56 = vor.u32 %v6411_v8, %v5443_v48  ;;  %v5430_v47 = vor.u32 %v6407_v50, %v5427_v3  ;;  %v6373_v4 = vld [vmem:[%s9524_s7 + $0x22c] sm:$0xf0]  ;;  %v5409_v12 = vld [vmem:[%s9524_s7 + $0x320] sm:$0xf] }
 0x21b   :  { %v2317_v42 = vadd.f32 %v2281_v37, %v1749_v24  ;;  %v2320_v54 = vmax.f32 %v2312_v59, %v2316_v26  ;;  %v6381_v59 = vld [vmem:[%s9524_s7 + $0x26c] sm:$0xf0]  ;;  %v5441_v26 = vld [vmem:[%s9524_s7 + $0x360] sm:$0xf]  ;;  %v6367_v48 = vld [vmem:[%s9524_s7 + $0x204] sm:$0xf] }
 0x21c   :  { %v2294_v60 = vpop.f32.mrf.mxu2  ;;  %v5314_v44 = vor.u32 %v6381_v59, %v5313_v53  ;;  %2987 = vmatpush.bf16.msra.mxu2 %v5334_v39  ;;  %v5442_v55 = vor.u32 %v6413_v25, %v5441_v26  ;;  %v6369_v39 = vld [vmem:[%s9524_s7 + $0x20c] sm:$0xf0]  ;;  %v5393_v8 = vld [vmem:[%s9524_s7 + $0x300] sm:$0xf] }
 0x21d   :  { %v2321_v28 = vmax.f32 %v2313_v35, %v2317_v42  ;;  %v2329_v63 = vadd.f32 %v2325_v30, %v2320_v54  ;;  %v5462_v54 = vor.u32 %v6415_v19, %v5459_v45  ;;  %2974 = vmatpush.bf16.msra.mxu1 %v5458_v18 }
 0x21e   :  { %v2308_v7 = vpop.f32.mrf.mxu3  ;;  %2962 = vmatpush.bf16.msrb.mxu0 %v5314_v44 }
 0x21f   :  { %v2330_v57 = vadd.f32 %v2324_v22, %v2321_v28  ;;  %v2333_v21 = vmax.f32 %v2329_v63, 0.0  ;;  %v2309_v1 = vadd.f32 %v2308_v7, %v2294_v60  ;;  %3000 = vmatpush.bf16.msrb.mxu3 %v5462_v54  ;;  %v5297_v63 = vld [vmem:[%s9524_s7 + $0x240] sm:$0xf]  ;;  %v6375_v60 = vld [vmem:[%s9524_s7 + $0x244] sm:$0xf] }
 0x220   :  { %v5298_v61 = vor.u32 %v6377_v51, %v5297_v63  ;;  %2988 = vmatpush.bf16.msra.mxu2 %v5318_v41  ;;  %v5267_v63 = vld [vmem:[%s9524_s7 + $0x210] sm:$0xf0]  ;;  %v6399_v51 = vld [vmem:[%s9524_s7 + $0x304] sm:$0xf] }
 0x221   :  { %v2340_v17 = vrot.slane %v2333_v21, 6  ;;  %v8283_v23 = vmax.f32 %v2330_v57, 0.0  ;;  %v2318_v38 = vadd.f32 %v2309_v1, %v1777_v62  ;;  %v6409_v57 = vld [vmem:[%s9524_s7 + $0x34c] sm:$0xf0]  ;;  %2975 = vmatpush.bf16.msra.mxu1 %v5442_v55 }
 0x222   :  { %v5426_v15 = vor.u32 %v6409_v57, %v5425_v43  ;;  %2963 = vmatpush.bf16.msrb.mxu0 %v5298_v61  ;;  %v5385_v57 = vld [vmem:[%s9524_s7 + $0x2e8] sm:$0xf]  ;;  %v6398_v61 = vld [vmem:[%s9524_s7 + $0x2f4] sm:$0xf0] }
 0x223   :  { %v2342_v24 = vsel %vm522_vm1, %v2332_v14, %v2340_v17  ;;  %v2343_v27 = vsel %vm524_vm2, %v2332_v14, %v2340_v17  ;;  %v2345_v22 = vsel %vm527_vm3, %v2332_v14, %v2340_v17  ;;  %v2347_v37 = vsel %vm530_vm4, %v2340_v17, %v2332_v14  ;;  %3001 = vmatpush.bf16.msrb.mxu3 %v5446_v56 }
 0x224   :  { %v2344_v35 = vrot.slane %v2343_v27, 2  ;;  %v2346_v42 = vrot.slane %v2345_v22, 4  ;;  %v2348_v36 = vrot.slane %v2347_v37, 6  ;;  %v5187_v49 = vrot.slane %v2342_v24, 9  ;;  %v5283_v27 = vld [vmem:[%s9524_s7 + $0x230] sm:$0xf0] }
 0x225   :  { %v2322_v11 = vmax.f32 %v2314_v33, %v2318_v38  ;;  %v5302_v38 = vor.u32 %v6375_v60, %v5299_v0  ;;  %v6405_v33 = vld [vmem:[%s9524_s7 + $0x32c] sm:$0xf0]  ;;  %v6403_v22 = vld [vmem:[%s9524_s7 + $0x324] sm:$0xf]  ;;  %2976 = vmatpush.bf16.msra.mxu1 %v5426_v15  ;;  %v5513_v0 = vld [vmem:[%s9524_s7 + $0x3e8] sm:$0xf] }
 0x226   :  { %v5188_v46 = vrot.slane %v2344_v35, 9  ;;  %v5189_v28 = vrot.slane %v2346_v42, 9  ;;  %v5190_v58 = vrot.slane %v2348_v36, 9  ;;  %v2388_v16 = vmax.f32 %v2342_v24, %v5187_v49  ;;  %v6371_v24 = vld [vmem:[%s9524_s7 + $0x224] sm:$0xf] }
 0x227   :  { %v2331_v31 = vadd.f32 %v2325_v30, %v2322_v11  ;;  %2989 = vmatpush.bf16.msra.mxu2 %v5302_v38  ;;  %3002 = vmatpush.bf16.msrb.mxu3 %v5430_v47  ;;  %v5282_v11 = vor.u32 %v6373_v4, %v5281_v40  ;;  %v5410_v6 = vor.u32 %v6405_v33, %v5409_v12  ;;  %v5387_v15 = vld [vmem:[%s9524_s7 + $0x2f8] sm:$0xf0]  ;;  %v6428_v40 = vld [vmem:[%s9524_s7 + $0x3ec] sm:$0xf]  ;;  %v5369_v4 = vld [vmem:[%s9524_s7 + $0x2c8] sm:$0xf] }
 0x228   :  { %v2389_v34 = vmax.f32 %v2344_v35, %v5188_v46  ;;  %v2390_v13 = vmax.f32 %v2346_v42, %v5189_v28  ;;  %v2391_v5 = vmax.f32 %v2348_v36, %v5190_v58  ;;  %v2415_v30 = vperm.slane %v2388_v16, 0  ;;  %v5411_v35 = vld [vmem:[%s9524_s7 + $0x330] sm:$0xf0]  ;;  %v5265_v42 = vld [vmem:[%s9524_s7 + $0x200] sm:$0xf] }
 0x229   :  { %v2416_v7 = vperm.slane %v2388_v16, 2  ;;  %v2335_v32 = vmax.f32 %v2331_v31, 0.0  ;;  %v5286_v29 = vor.u32 %v6371_v24, %v5283_v27  ;;  %2964 = vmatpush.bf16.msrb.mxu0 %v5282_v11  ;;  %v5266_v58 = vor.u32 %v6369_v39, %v5265_v42  ;;  %v6401_v16 = vld [vmem:[%s9524_s7 + $0x30c] sm:$0xf0]  ;;  %2977 = vmatpush.bf16.msra.mxu1 %v5410_v6  ;;  %v5515_v47 = vld [vmem:[%s9524_s7 + $0x3f8] sm:$0xf0] }
 0x22a   :  { %v2417_v62 = vperm.slane %v2389_v34, 0  ;;  %v2418_v21 = vperm.slane %v2389_v34, 2  ;;  %v2419_v1 = vperm.slane %v2390_v13, 0  ;;  %v2420_v2 = vperm.slane %v2390_v13, 2  ;;  %v6394_v12 = vld [vmem:[%s9524_s7 + $0x2d4] sm:$0xf0] }
 0x22b   :  { %v2421_v9 = vperm.slane %v2391_v5, 0  ;;  %v2422_v10 = vperm.slane %v2391_v5, 2  ;;  %v2341_v14 = vrot.slane %v2335_v32, 6  ;;  %v5394_v41 = vor.u32 %v6401_v16, %v5393_v8  ;;  %2990 = vmatpush.bf16.msra.mxu2 %v5286_v29  ;;  %v6426_v24 = vld [vmem:[%s9524_s7 + $0x3d4] sm:$0xf0] }
 0x22c   :  { %v2431_v52 = vsel %vm697_vm5, %v2417_v62, %v2415_v30  ;;  %v2434_v17 = vsel %vm697_vm5, %v2418_v21, %v2416_v7  ;;  %v5270_v5 = vor.u32 %v6367_v48, %v5267_v63  ;;  %v5395_v30 = vld [vmem:[%s9524_s7 + $0x310] sm:$0xf0]  ;;  %v5386_v21 = vor.u32 %v6398_v61, %v5385_v57  ;;  %v6392_v27 = vld [vmem:[%s9524_s7 + $0x2cc] sm:$0xf]  ;;  %v5353_v42 = vld [vmem:[%s9524_s7 + $0x2a8] sm:$0xf] }
 0x22d   :  { %v2432_v18 = vsel %vm699_vm6, %v2419_v1, %v2431_v52  ;;  %v2435_v20 = vsel %vm699_vm6, %v2420_v2, %v2434_v17  ;;  %v2349_v19 = vsel %vm522_vm1, %v8283_v23, %v2341_v14  ;;  %v2350_v45 = vsel %vm524_vm2, %v8283_v23, %v2341_v14  ;;  %2965 = vmatpush.bf16.msrb.mxu0 %v5266_v58  ;;  %v6430_v1 = vld [vmem:[%s9524_s7 + $0x3f4] sm:$0xf0]  ;;  %v6396_v2 = vld [vmem:[%s9524_s7 + $0x2ec] sm:$0xf]  ;;  %v5483_v8 = vld [vmem:[%s9524_s7 + $0x3b8] sm:$0xf0] }
 0x22e   :  { %v2433_v37 = vsel %vm701_vm7, %v2421_v9, %v2432_v18  ;;  %v2436_v53 = vsel %vm701_vm7, %v2422_v10, %v2435_v20  ;;  %v2351_v59 = vrot.slane %v2350_v45, 2  ;;  %v2352_v26 = vsel %vm527_vm3, %v8283_v23, %v2341_v14  ;;  %2978 = vmatpush.bf16.msra.mxu1 %v5394_v41  ;;  %v5497_v45 = vld [vmem:[%s9524_s7 + $0x3c8] sm:$0xf]  ;;  %v6422_v11 = vld [vmem:[%s9524_s7 + $0x3b4] sm:$0xf0]  ;;  %vm8630_vm2 = vmor %vm522_vm1, %vm527_vm3 }
 0x22f   :  { %2447 = vst [vmem:[#allocation3] sm:$0x1e] %v2433_v37  ;;  %v2353_v36 = vrot.slane %v2352_v26, 4  ;;  %v2354_v49 = vsel %vm530_vm4, %v2341_v14, %v8283_v23  ;;  %v5191_v25 = vrot.slane %v2349_v19, 9  ;;  %v5414_v23 = vor.u32 %v6403_v22, %v5411_v35  ;;  %2991 = vmatpush.bf16.msra.mxu2 %v5270_v5  ;;  %v5499_v35 = vld [vmem:[%s9524_s7 + $0x3d8] sm:$0xf0] }
 0x230   :  { %2448 = vst [vmem:[#allocation3 + $0x8] sm:$0x1e] %v2436_v53  ;;  %v2355_v54 = vrot.slane %v2354_v49, 6  ;;  %v5192_v44 = vrot.slane %v2351_v59, 9  ;;  %v5398_v56 = vor.u32 %v6399_v51, %v5395_v30  ;;  %v5514_v38 = vor.u32 %v6430_v1, %v5513_v0  ;;  %v5371_v53 = vld [vmem:[%s9524_s7 + $0x2d8] sm:$0xf0] }
 0x231   :  { %v5193_v46 = vrot.slane %v2353_v36, 9  ;;  %v2392_v28 = vmax.f32 %v2349_v19, %v5191_v25  ;;  %3003 = vmatpush.bf16.msrb.mxu3 %v5414_v23  ;;  %3010 = vmatpush.bf16.msra.mxu0 %v5386_v21  ;;  %v5390_v20 = vor.u32 %v6396_v2, %v5387_v15  ;;  %v5518_v19 = vor.u32 %v6428_v40, %v5515_v47  ;;  %v6390_v49 = vld [vmem:[%s9524_s7 + $0x2b4] sm:$0xf0]  ;;  %v5481_v25 = vld [vmem:[%s9524_s7 + $0x3a8] sm:$0xf] }
 0x232   :  { %v5194_v31 = vrot.slane %v2355_v54, 9  ;;  %v2393_v55 = vmax.f32 %v2351_v59, %v5192_v44  ;;  %3023 = vmatpush.bf16.msrb.mxu1 %v5514_v38  ;;  %v5370_v22 = vor.u32 %v6394_v12, %v5369_v4  ;;  %v5498_v37 = vor.u32 %v6426_v24, %v5497_v45  ;;  %v6424_v59 = vld [vmem:[%s9524_s7 + $0x3cc] sm:$0xf]  ;;  %v5355_v44 = vld [vmem:[%s9524_s7 + $0x2b8] sm:$0xf0] }
 0x233   :  { %v2394_v43 = vmax.f32 %v2353_v36, %v5193_v46  ;;  %v2423_v34 = vperm.slane %v2392_v28, 0  ;;  %v2424_v13 = vperm.slane %v2392_v28, 2  ;;  %3036 = vmatpush.bf16.msrb.mxu2 %v5390_v20  ;;  %v5374_v26 = vor.u32 %v6392_v27, %v5371_v53  ;;  %v6420_v6 = vld [vmem:[%s9524_s7 + $0x3ac] sm:$0xf]  ;;  %v5337_v46 = vld [vmem:[%s9524_s7 + $0x288] sm:$0xf] }
 0x234   :  { %v2395_v60 = vmax.f32 %v2355_v54, %v5194_v31  ;;  %v2425_v7 = vperm.slane %v2393_v55, 0  ;;  %v2426_v32 = vperm.slane %v2393_v55, 2  ;;  %v5502_v36 = vor.u32 %v6424_v59, %v5499_v35  ;;  %v6388_v54 = vld [vmem:[%s9524_s7 + $0x2ac] sm:$0xf]  ;;  %v6386_v28 = vld [vmem:[%s9524_s7 + $0x294] sm:$0xf0] }
 0x235   :  { %v2427_v50 = vperm.slane %v2394_v43, 0  ;;  %v2428_v62 = vperm.slane %v2394_v43, 2  ;;  %3004 = vmatpush.bf16.msrb.mxu3 %v5398_v56  ;;  %3011 = vmatpush.bf16.msra.mxu0 %v5370_v22  ;;  %v5354_v39 = vor.u32 %v6390_v49, %v5353_v42  ;;  %v5482_v29 = vor.u32 %v6422_v11, %v5481_v25  ;;  %v5465_v16 = vld [vmem:[%s9524_s7 + $0x388] sm:$0xf]  ;;  %v6418_v48 = vld [vmem:[%s9524_s7 + $0x394] sm:$0xf0] }
 0x236   :  { %v2429_v3 = vperm.slane %v2395_v60, 0  ;;  %v2430_v9 = vperm.slane %v2395_v60, 2  ;;  %v2437_v10 = vsel %vm697_vm5, %v2425_v7, %v2423_v34  ;;  %v2440_v14 = vsel %vm697_vm5, %v2426_v32, %v2424_v13  ;;  %3024 = vmatpush.bf16.msrb.mxu1 %v5498_v37  ;;  %v6384_v31 = vld [vmem:[%s9524_s7 + $0x28c] sm:$0xf]  ;;  %v5339_v55 = vld [vmem:[%s9524_s7 + $0x298] sm:$0xf0] }
 0x237   :  { %v2438_v52 = vsel %vm699_vm6, %v2427_v50, %v2437_v10  ;;  %v2441_v17 = vsel %vm699_vm6, %v2428_v62, %v2440_v14  ;;  %3037 = vmatpush.bf16.msrb.mxu2 %v5374_v26  ;;  %v5358_v23 = vor.u32 %v6388_v54, %v5355_v44  ;;  %v5486_v58 = vor.u32 %v6420_v6, %v5483_v8  ;;  %v6416_v41 = vld [vmem:[%s9524_s7 + $0x38c] sm:$0xf]  ;;  %v5467_v63 = vld [vmem:[%s9524_s7 + $0x398] sm:$0xf0]  ;;  %v5321_v34 = vld [vmem:[%s9524_s7 + $0x268] sm:$0xf] }
 0x238   :  { %v2439_v33 = vsel %vm701_vm7, %v2429_v3, %v2438_v52  ;;  %v2442_v18 = vsel %vm701_vm7, %v2430_v9, %v2441_v17  ;;  %v5338_v51 = vor.u32 %v6386_v28, %v5337_v46  ;;  %v5466_v43 = vor.u32 %v6418_v48, %v5465_v16  ;;  %v6382_v13 = vld [vmem:[%s9524_s7 + $0x274] sm:$0xf0]  ;;  %v5449_v57 = vld [vmem:[%s9524_s7 + $0x368] sm:$0xf]  ;;  %v6380_v7 = vld [vmem:[%s9524_s7 + $0x26c] sm:$0xf] }
 0x239   :  { %2449 = vst [vmem:[#allocation3 + $0x10] sm:$0x1e] %v2439_v33  ;;  %3049 = vmatpush.bf16.msra.mxu3 %v5518_v19  ;;  %3012 = vmatpush.bf16.msra.mxu0 %v5354_v39  ;;  %v5342_v5 = vor.u32 %v6384_v31, %v5339_v55  ;;  %v5470_v30 = vor.u32 %v6416_v41, %v5467_v63  ;;  %v6414_v60 = vld [vmem:[%s9524_s7 + $0x374] sm:$0xf0]  ;;  %v5323_v32 = vld [vmem:[%s9524_s7 + $0x278] sm:$0xf0] }
 0x23a   :  { %2450 = vst [vmem:[#allocation3 + $0x18] sm:$0x1e] %v2442_v18  ;;  %3025 = vmatpush.bf16.msrb.mxu1 %v5482_v29  ;;  %v6412_v56 = vld [vmem:[%s9524_s7 + $0x36c] sm:$0xf]  ;;  %v5451_v61 = vld [vmem:[%s9524_s7 + $0x378] sm:$0xf0]  ;;  %v5322_v0 = vor.u32 %v6382_v13, %v5321_v34  ;;  %v5450_v50 = vor.u32 %v6414_v60, %v5449_v57  ;;  %v5326_v2 = vor.u32 %v6380_v7, %v5323_v32 }
 0x23b   :  { %3038 = vmatpush.bf16.msrb.mxu2 %v5358_v23  ;;  %v5305_v62 = vld [vmem:[%s9524_s7 + $0x248] sm:$0xf]  ;;  %v6378_v21 = vld [vmem:[%s9524_s7 + $0x254] sm:$0xf0]  ;;  %v5454_v3 = vor.u32 %v6412_v56, %v5451_v61  ;;  %v6376_v10 = vld [vmem:[%s9524_s7 + $0x24c] sm:$0xf] }
 0x23c   :  { %v5433_v1 = vld [vmem:[%s9524_s7 + $0x348] sm:$0xf]  ;;  %v6410_v9 = vld [vmem:[%s9524_s7 + $0x354] sm:$0xf0]  ;;  %v5307_v14 = vld [vmem:[%s9524_s7 + $0x258] sm:$0xf0]  ;;  %v5306_v17 = vor.u32 %v6378_v21, %v5305_v62 }
 0x23d   :  { %3050 = vmatpush.bf16.msra.mxu3 %v5502_v36  ;;  %3013 = vmatpush.bf16.msra.mxu0 %v5338_v51  ;;  %v6408_v15 = vld [vmem:[%s9524_s7 + $0x34c] sm:$0xf]  ;;  %v5435_v40 = vld [vmem:[%s9524_s7 + $0x358] sm:$0xf0]  ;;  %v5289_v52 = vld [vmem:[%s9524_s7 + $0x228] sm:$0xf]  ;;  %v5434_v12 = vor.u32 %v6410_v9, %v5433_v1  ;;  %v5310_v19 = vor.u32 %v6376_v10, %v5307_v14 }
 0x23e   :  { %3026 = vmatpush.bf16.msrb.mxu1 %v5466_v43  ;;  %v6374_v38 = vld [vmem:[%s9524_s7 + $0x234] sm:$0xf0]  ;;  %v5417_v47 = vld [vmem:[%s9524_s7 + $0x328] sm:$0xf]  ;;  %v6372_v33 = vld [vmem:[%s9524_s7 + $0x22c] sm:$0xf]  ;;  %v5438_v45 = vor.u32 %v6408_v15, %v5435_v40 }
 0x23f   :  { %3039 = vmatpush.bf16.msrb.mxu2 %v5342_v5  ;;  %v6406_v4 = vld [vmem:[%s9524_s7 + $0x334] sm:$0xf0]  ;;  %v5291_v18 = vld [vmem:[%s9524_s7 + $0x238] sm:$0xf0]  ;;  %v6404_v20 = vld [vmem:[%s9524_s7 + $0x32c] sm:$0xf]  ;;  %v5290_v35 = vor.u32 %v6374_v38, %v5289_v52 }
 0x240   :  { %v5419_v24 = vld [vmem:[%s9524_s7 + $0x338] sm:$0xf0]  ;;  %v5273_v27 = vld [vmem:[%s9524_s7 + $0x208] sm:$0xf]  ;;  %v6370_v22 = vld [vmem:[%s9524_s7 + $0x214] sm:$0xf0]  ;;  %v5418_v25 = vor.u32 %v6406_v4, %v5417_v47  ;;  %v5294_v11 = vor.u32 %v6372_v33, %v5291_v18 }
 0x241   :  { %3051 = vmatpush.bf16.msra.mxu3 %v5486_v58  ;;  %3014 = vmatpush.bf16.msra.mxu0 %v5322_v0  ;;  %v5401_v37 = vld [vmem:[%s9524_s7 + $0x308] sm:$0xf]  ;;  %v6402_v53 = vld [vmem:[%s9524_s7 + $0x314] sm:$0xf0]  ;;  %v2452_v59 = vld [vmem:[#allocation3 + $0x8] sm:$0xf]  ;;  %v5422_v39 = vor.u32 %v6404_v20, %v5419_v24  ;;  %v5274_v48 = vor.u32 %v6370_v22, %v5273_v27 }
 0x242   :  { %3027 = vmatpush.bf16.msrb.mxu1 %v5450_v50  ;;  %v2454_v26 = vld [vmem:[#allocation3 + $0x18] sm:$0xf]  ;;  %v2451_v42 = vld [vmem:[#allocation3] sm:$0xf]  ;;  %v2459_v36 = vrot.slane %v2452_v59, 4  ;;  %v5402_v41 = vor.u32 %v6402_v53, %v5401_v37  ;;  %vm4139_vm3 = vcmask 1041409  }
 0x243   :  { %3040 = vmatpush.bf16.msrb.mxu2 %v5326_v2  ;;  %v2460_v49 = vrot.slane %v2454_v26, 4  ;;  %v6368_v54 = vld [vmem:[%s9524_s7 + $0x20c] sm:$0xf]  ;;  %v2453_v44 = vld [vmem:[#allocation3 + $0x10] sm:$0xf] }
 0x244   :  { %v2538_v6 = vld [vmem:[#allocation3 + $0x8] sm:$0x1e]  ;;  %v2540_v29 = vld [vmem:[#allocation3 + $0x18] sm:$0x1e]  ;;  %v5275_v8 = vld [vmem:[%s9524_s7 + $0x218] sm:$0xf0]  ;;  %v2462_v28 = vsel %vm2461_vm13, %v2451_v42, %v2459_v36 }
 0x245   :  { %3052 = vmatpush.bf16.msra.mxu3 %v5470_v30  ;;  %3015 = vmatpush.bf16.msra.mxu0 %v5306_v17  ;;  %v6400_v46 = vld [vmem:[%s9524_s7 + $0x30c] sm:$0xf]  ;;  %v2463_v23 = vsel %vm2461_vm13, %v2453_v44, %v2460_v49  ;;  %v2545_v58 = vrot.slane %v2538_v6, 4  ;;  %v2546_v16 = vrot.slane %v2540_v29, 4  ;;  %v5403_v31 = vld [vmem:[%s9524_s7 + $0x318] sm:$0xf0]  ;;  %v5278_v5 = vor.u32 %v6368_v54, %v5275_v8 }
 0x246   :  { %3028 = vmatpush.bf16.msrb.mxu1 %v5434_v12  ;;  %2464 = vst [vmem:[#allocation1] ss:$2 sm:$0xff] %v2462_v28  ;;  %v2537_v55 = vld [vmem:[#allocation3] sm:$0x1e]  ;;  %v2539_v63 = vld [vmem:[#allocation3 + $0x10] sm:$0x1e]  ;;  %v5406_v30 = vor.u32 %v6400_v46, %v5403_v31 }
 0x247   :  { %3041 = vmatpush.bf16.msrb.mxu2 %v5310_v19  ;;  %2466 = vst [vmem:[#allocation1 + $0x1] ss:$2 sm:$0xff] %v2463_v23  ;;  %v2547_v51 = vsel %vm2461_vm13, %v2537_v55, %v2545_v58  ;;  %v2548_v43 = vsel %vm2461_vm13, %v2545_v58, %v2537_v55  ;;  %v2550_v34 = vsel %vm2461_vm13, %v2539_v63, %v2546_v16  ;;  %v3487_v57 = vld [vmem:[#allocation3 + $0x8] sm:$0x3c]  ;;  %v3489_v32 = vld [vmem:[#allocation3 + $0x18] sm:$0x3c] }
 0x248   :  { %v2551_v13 = vsel %vm2461_vm13, %v2546_v16, %v2539_v63  ;;  %v5195_v60 = vrot.slane %v2547_v51, 9  ;;  %v5196_v7 = vrot.slane %v2548_v43, 9  ;;  %v5197_v56 = vrot.slane %v2550_v34, 9  ;;  %v3488_v9 = vld [vmem:[#allocation3 + $0x10] sm:$0x3c] }
 0x249   :  { %3053 = vmatpush.bf16.msra.mxu3 %v5454_v3  ;;  %3016 = vmatpush.bf16.msra.mxu0 %v5290_v35  ;;  %v5198_v61 = vrot.slane %v2551_v13, 9  ;;  %v3494_v0 = vrot.slane %v3487_v57, 4  ;;  %v3495_v50 = vrot.slane %v3489_v32, 4  ;;  %v3486_v3 = vld [vmem:[#allocation3] sm:$0x3c] }
 0x24a   :  { %3029 = vmatpush.bf16.msrb.mxu1 %v5418_v25  ;;  %v2559_v1 = vsel %vm2555_vm0, %v5195_v60, %v5196_v7  ;;  %v5633_v12 = vld [vmem:[%s9524_s7 + $0xe0] sm:$0xf]  ;;  %v6333_v33 = vld [vmem:[%s9524_s7 + $0xec] sm:$0xf0]  ;;  %v6331_v19 = vld [vmem:[%s9524_s7 + $0xe4] sm:$0xf] }
 0x24b   :  { %3042 = vmatpush.bf16.msrb.mxu2 %v5294_v11  ;;  %v2563_v2 = vsel %vm2555_vm0, %v5197_v56, %v5198_v61  ;;  %v3496_v10 = vsel %vm2461_vm13, %v3486_v3, %v3494_v0  ;;  %v3497_v14 = vsel %vm2461_vm13, %v3494_v0, %v3486_v3  ;;  %v3499_v15 = vsel %vm2461_vm13, %v3488_v9, %v3495_v50  ;;  %v5761_v18 = vld [vmem:[%s9524_s7 + $0x1e0] sm:$0xf]  ;;  %v6365_v20 = vld [vmem:[%s9524_s7 + $0x1ec] sm:$0xf0]  ;;  %v6363_v24 = vld [vmem:[%s9524_s7 + $0x1e4] sm:$0xf] }
 0x24c   :  { %v3500_v40 = vsel %vm2461_vm13, %v3495_v50, %v3488_v9  ;;  %v5775_v52 = vrot.slane %v3496_v10, 10  ;;  %v5776_v17 = vrot.slane %v3497_v14, 10  ;;  %v5777_v47 = vrot.slane %v3499_v15, 10  ;;  %v5763_v27 = vld [vmem:[%s9524_s7 + $0x1f0] sm:$0xf0] }
 0x24d   :  { %3054 = vmatpush.bf16.msra.mxu3 %v5438_v45  ;;  %3017 = vmatpush.bf16.msra.mxu0 %v5274_v48  ;;  %v5778_v4 = vrot.slane %v3500_v40, 10  ;;  %v5635_v45 = vld [vmem:[%s9524_s7 + $0xf0] sm:$0xf0]  ;;  %v5634_v59 = vor.u32 %v6333_v33, %v5633_v12  ;;  %v5617_v26 = vld [vmem:[%s9524_s7 + $0xc0] sm:$0xf]  ;;  %v5762_v49 = vor.u32 %v6365_v20, %v5761_v18  ;;  %v5766_v54 = vor.u32 %v6363_v24, %v5763_v27 }
 0x24e   :  { %3030 = vmatpush.bf16.msrb.mxu1 %v5402_v41  ;;  %v8620_v62 = vld.sshfl [vmem:[#allocation1] sm:$0xff pattern:$0x75316420]  ;;  %v8622_v21 = vld.sshfl [vmem:[#allocation1 + $0x8] sm:$0xff pattern:$0x75316420]  ;;  %v3506_v53 = vsel %vm8630_vm2, %v5775_v52, %v5776_v17 }
 0x24f   :  { %3043 = vmatpush.bf16.msrb.mxu2 %v5278_v5  ;;  %2564 = vst [vmem:[#allocation1] ss:$2 sm:$0xff] %v2559_v1  ;;  %v3510_v36 = vsel %vm8630_vm2, %v5777_v47, %v5778_v4  ;;  %v6329_v25 = vld [vmem:[%s9524_s7 + $0xcc] sm:$0xf0]  ;;  %v5745_v11 = vld [vmem:[%s9524_s7 + $0x1c0] sm:$0xf] }
 0x250   :  { %2566 = vst [vmem:[#allocation1 + $0x1] ss:$2 sm:$0xff] %v2563_v2  ;;  %v6361_v44 = vld [vmem:[%s9524_s7 + $0x1cc] sm:$0xf0]  ;;  %v6327_v6 = vld [vmem:[%s9524_s7 + $0xc4] sm:$0xf]  ;;  %v5618_v28 = vor.u32 %v6329_v25, %v5617_v26 }
 0x251   :  { %3055 = vmatpush.bf16.msra.mxu3 %v5422_v39  ;;  %v5638_v39 = vor.u32 %v6331_v19, %v5635_v45  ;;  %v5619_v29 = vld [vmem:[%s9524_s7 + $0xd0] sm:$0xf0]  ;;  %v6359_v8 = vld [vmem:[%s9524_s7 + $0x1c4] sm:$0xf]  ;;  %v5746_v23 = vor.u32 %v6361_v44, %v5745_v11  ;;  %v5601_v58 = vld [vmem:[%s9524_s7 + $0xa0] sm:$0xf] }
 0x252   :  { %v5747_v46 = vld [vmem:[%s9524_s7 + $0x1d0] sm:$0xf0]  ;;  %v6325_v16 = vld [vmem:[%s9524_s7 + $0xac] sm:$0xf0]  ;;  %v5622_v48 = vor.u32 %v6327_v6, %v5619_v29  ;;  %v5729_v55 = vld [vmem:[%s9524_s7 + $0x1a0] sm:$0xf] }
 0x253   :  { %v5750_v31 = vor.u32 %v6359_v8, %v5747_v46  ;;  %v6357_v41 = vld [vmem:[%s9524_s7 + $0x1ac] sm:$0xf0]  ;;  %v6323_v63 = vld [vmem:[%s9524_s7 + $0xa4] sm:$0xf]  ;;  %v5603_v51 = vld [vmem:[%s9524_s7 + $0xb0] sm:$0xf0]  ;;  %v5602_v13 = vor.u32 %v6325_v16, %v5601_v58 }
 0x254   :  { %v6355_v43 = vld [vmem:[%s9524_s7 + $0x1a4] sm:$0xf]  ;;  %v5731_v34 = vld [vmem:[%s9524_s7 + $0x1b0] sm:$0xf0]  ;;  %v5730_v5 = vor.u32 %v6357_v41, %v5729_v55  ;;  %v6321_v57 = vld [vmem:[%s9524_s7 + $0x8c] sm:$0xf0]  ;;  %v5606_v60 = vor.u32 %v6323_v63, %v5603_v51 }
 0x255   :  { %3056 = vmatpush.bf16.msra.mxu3 %v5406_v30  ;;  %v5585_v30 = vld [vmem:[%s9524_s7 + $0x80] sm:$0xf]  ;;  %v5734_v7 = vor.u32 %v6355_v43, %v5731_v34  ;;  %v6353_v56 = vld [vmem:[%s9524_s7 + $0x18c] sm:$0xf0]  ;;  %v6319_v61 = vld [vmem:[%s9524_s7 + $0x84] sm:$0xf] }
 0x256   :  { %v5713_v32 = vld [vmem:[%s9524_s7 + $0x180] sm:$0xf]  ;;  %v5587_v0 = vld [vmem:[%s9524_s7 + $0x90] sm:$0xf0]  ;;  %v6351_v50 = vld [vmem:[%s9524_s7 + $0x184] sm:$0xf]  ;;  %v5586_v2 = vor.u32 %v6321_v57, %v5585_v30 }
 0x257   :  { %v2567_v22 = vld.sshfl [vmem:[#allocation1] sm:$0xff pattern:$0x75316420]  ;;  %v2568_v37 = vld.sshfl [vmem:[#allocation1 + $0x8] sm:$0xff pattern:$0x75316420]  ;;  %v5714_v3 = vor.u32 %v6353_v56, %v5713_v32  ;;  %v5590_v14 = vor.u32 %v6319_v61, %v5587_v0 }
 0x258   :  { %v8663_v35 = vpack.c.bf16 %v2567_v22, %v2567_v22  ;;  %v8665_v42 = vpack.c.bf16 %v2568_v37, %v2568_v37  ;;  %3511 = vst [vmem:[#allocation1] ss:$2 sm:$0xff] %v3506_v53  ;;  %v5715_v1 = vld [vmem:[%s9524_s7 + $0x190] sm:$0xf0]  ;;  %v5569_v9 = vld [vmem:[%s9524_s7 + $0x60] sm:$0xf] }
 0x259   :  { %3513 = vst [vmem:[#allocation1 + $0x1] ss:$2 sm:$0xff] %v3510_v36  ;;  %v6317_v10 = vld [vmem:[%s9524_s7 + $0x6c] sm:$0xf0]  ;;  %v5718_v15 = vor.u32 %v6351_v50, %v5715_v1  ;;  %v5697_v40 = vld [vmem:[%s9524_s7 + $0x160] sm:$0xf] }
 0x25a   :  { %2966 = vmatmul.bf16.vlgmr.msrb.gmra.mxu0 %v8663_v35  ;;  %2979 = vmatmul.bf16.vlgmr.msra.gmra.mxu1 %v8665_v42  ;;  %v6349_v52 = vld [vmem:[%s9524_s7 + $0x16c] sm:$0xf0]  ;;  %v6315_v17 = vld [vmem:[%s9524_s7 + $0x64] sm:$0xf]  ;;  %v5571_v38 = vld [vmem:[%s9524_s7 + $0x70] sm:$0xf0]  ;;  %v5570_v12 = vor.u32 %v6317_v10, %v5569_v9 }
 0x25b   :  { %2992 = vmatmul.bf16.vlgmr.msra.gmra.mxu2 %v8663_v35  ;;  %3005 = vmatmul.bf16.vlgmr.msrb.gmra.mxu3 %v8665_v42  ;;  %v6347_v47 = vld [vmem:[%s9524_s7 + $0x164] sm:$0xf]  ;;  %v5699_v4 = vld [vmem:[%s9524_s7 + $0x170] sm:$0xf0]  ;;  %v5698_v33 = vor.u32 %v6349_v52, %v5697_v40  ;;  %v5553_v18 = vld [vmem:[%s9524_s7 + $0x40] sm:$0xf]  ;;  %v5574_v19 = vor.u32 %v6315_v17, %v5571_v38 }
 0x25c   :  { %3382 = vmatpush.bf16.msrb.mxu0 %v5634_v59  ;;  %3395 = vmatpush.bf16.msra.mxu1 %v5762_v49  ;;  %v6313_v20 = vld [vmem:[%s9524_s7 + $0x4c] sm:$0xf0]  ;;  %v5702_v45 = vor.u32 %v6347_v47, %v5699_v4  ;;  %v5681_v24 = vld [vmem:[%s9524_s7 + $0x140] sm:$0xf]  ;;  %v6311_v22 = vld [vmem:[%s9524_s7 + $0x44] sm:$0xf]  ;;  %v8892_v47 = vpack.c.bf16 %v8620_v62, %v8620_v62  ;;  %v8896_v4 = vpack.c.bf16 %v8622_v21, %v8622_v21 }
 0x25d   :  { %3408 = vmatpush.bf16.msra.mxu2 %v5638_v39  ;;  %3421 = vmatpush.bf16.msrb.mxu3 %v5766_v54  ;;  %v6345_v27 = vld [vmem:[%s9524_s7 + $0x14c] sm:$0xf0]  ;;  %v5555_v37 = vld [vmem:[%s9524_s7 + $0x50] sm:$0xf0]  ;;  %v6343_v53 = vld [vmem:[%s9524_s7 + $0x144] sm:$0xf]  ;;  %v5554_v26 = vor.u32 %v6313_v20, %v5553_v18 }
 0x25e   :  { %v5683_v59 = vld [vmem:[%s9524_s7 + $0x150] sm:$0xf0]  ;;  %v5682_v36 = vor.u32 %v6345_v27, %v5681_v24  ;;  %v5537_v49 = vld [vmem:[%s9524_s7 + $0x20] sm:$0xf]  ;;  %v6309_v25 = vld [vmem:[%s9524_s7 + $0x2c] sm:$0xf0]  ;;  %v5558_v11 = vor.u32 %v6311_v22, %v5555_v37 }
 0x25f   :  { %v5686_v39 = vor.u32 %v6343_v53, %v5683_v59  ;;  %v6307_v54 = vld [vmem:[%s9524_s7 + $0x24] sm:$0xf]  ;;  %v5539_v44 = vld [vmem:[%s9524_s7 + $0x30] sm:$0xf0]  ;;  %v5521_v8 = vld [vmem:[%s9524_s7] sm:$0xf]  ;;  %v5538_v46 = vor.u32 %v6309_v25, %v5537_v49 }
 0x260   :  { %3383 = vmatpush.bf16.msrb.mxu0 %v5618_v28  ;;  %3396 = vmatpush.bf16.msra.mxu1 %v5746_v23  ;;  %v6339_v6 = vld [vmem:[%s9524_s7 + $0x124] sm:$0xf]  ;;  %v5667_v29 = vld [vmem:[%s9524_s7 + $0x130] sm:$0xf0]  ;;  %v6305_v23 = vld [vmem:[%s9524_s7 + $0xc] sm:$0xf0] }
 0x261   :  { %3409 = vmatpush.bf16.msra.mxu2 %v5622_v48  ;;  %3422 = vmatpush.bf16.msrb.mxu3 %v5750_v31  ;;  %v5649_v58 = vld [vmem:[%s9524_s7 + $0x100] sm:$0xf]  ;;  %v6337_v16 = vld [vmem:[%s9524_s7 + $0x10c] sm:$0xf0]  ;;  %v5542_v48 = vor.u32 %v6307_v54, %v5539_v44  ;;  %v5670_v31 = vor.u32 %v6339_v6, %v5667_v29  ;;  %v6303_v55 = vld [vmem:[%s9524_s7 + $0x4] sm:$0xf]  ;;  %v5522_v57 = vor.u32 %v6305_v23, %v5521_v8 }
 0x262   :  { %v5523_v41 = vld [vmem:[%s9524_s7 + $0x10] sm:$0xf0]  ;;  %v6335_v63 = vld [vmem:[%s9524_s7 + $0x104] sm:$0xf]  ;;  %v5641_v43 = vld [vmem:[%s9524_s7 + $0xe8] sm:$0xf] }
 0x263   :  { %v5651_v51 = vld [vmem:[%s9524_s7 + $0x110] sm:$0xf0]  ;;  %v6334_v34 = vld [vmem:[%s9524_s7 + $0xf4] sm:$0xf0]  ;;  %v6332_v30 = vld [vmem:[%s9524_s7 + $0xec] sm:$0xf]  ;;  %v5526_v61 = vor.u32 %v6303_v55, %v5523_v41 }
 0x264   :  { %3384 = vmatpush.bf16.msrb.mxu0 %v5602_v13  ;;  %3397 = vmatpush.bf16.msra.mxu1 %v5730_v5  ;;  %v5769_v13 = vld [vmem:[%s9524_s7 + $0x1e8] sm:$0xf]  ;;  %v6366_v5 = vld [vmem:[%s9524_s7 + $0x1f4] sm:$0xf0]  ;;  %v6364_v32 = vld [vmem:[%s9524_s7 + $0x1ec] sm:$0xf]  ;;  %v5654_v0 = vor.u32 %v6335_v63, %v5651_v51  ;;  %v5642_v50 = vor.u32 %v6334_v34, %v5641_v43 }
 0x265   :  { %3410 = vmatpush.bf16.msra.mxu2 %v5606_v60  ;;  %3423 = vmatpush.bf16.msrb.mxu3 %v5734_v7  ;;  %v5650_v60 = vor.u32 %v6337_v16, %v5649_v58  ;;  %v5643_v7 = vld [vmem:[%s9524_s7 + $0xf8] sm:$0xf0]  ;;  %v5770_v1 = vor.u32 %v6366_v5, %v5769_v13  ;;  %v6328_v40 = vld [vmem:[%s9524_s7 + $0xcc] sm:$0xf]  ;;  %v5609_v18 = vld [vmem:[%s9524_s7 + $0xa8] sm:$0xf] }
 0x266   :  { %v5771_v56 = vld [vmem:[%s9524_s7 + $0x1f8] sm:$0xf0]  ;;  %v5646_v9 = vor.u32 %v6332_v30, %v5643_v7  ;;  %v6360_v17 = vld [vmem:[%s9524_s7 + $0x1cc] sm:$0xf]  ;;  %v6326_v20 = vld [vmem:[%s9524_s7 + $0xb4] sm:$0xf0] }
 0x267   :  { %v5774_v10 = vor.u32 %v6364_v32, %v5771_v56  ;;  %v5627_v52 = vld [vmem:[%s9524_s7 + $0xd8] sm:$0xf0]  ;;  %v6358_v21 = vld [vmem:[%s9524_s7 + $0x1b4] sm:$0xf0]  ;;  %v6324_v24 = vld [vmem:[%s9524_s7 + $0xac] sm:$0xf]  ;;  %v5610_v53 = vor.u32 %v6326_v20, %v5609_v18 }
 0x268   :  { %3385 = vmatpush.bf16.msrb.mxu0 %v5586_v2  ;;  %3398 = vmatpush.bf16.msra.mxu1 %v5714_v3  ;;  %v5625_v2 = vld [vmem:[%s9524_s7 + $0xc8] sm:$0xf]  ;;  %v6330_v3 = vld [vmem:[%s9524_s7 + $0xd4] sm:$0xf0]  ;;  %v5755_v38 = vld [vmem:[%s9524_s7 + $0x1d8] sm:$0xf0]  ;;  %v5630_v62 = vor.u32 %v6328_v40, %v5627_v52 }
 0x269   :  { %3411 = vmatpush.bf16.msra.mxu2 %v5590_v14  ;;  %3424 = vmatpush.bf16.msrb.mxu3 %v5718_v15  ;;  %v5753_v14 = vld [vmem:[%s9524_s7 + $0x1c8] sm:$0xf]  ;;  %v6362_v15 = vld [vmem:[%s9524_s7 + $0x1d4] sm:$0xf0]  ;;  %v5611_v27 = vld [vmem:[%s9524_s7 + $0xb8] sm:$0xf0] }
 0x26a   :  { %3018 = vmatmul.bf16.vlgmr.msra.gmra.mxu0 %v8663_v35  ;;  %3031 = vmatmul.bf16.vlgmr.msrb.gmra.mxu1 %v8665_v42  ;;  %v6356_v22 = vld [vmem:[%s9524_s7 + $0x1ac] sm:$0xf]  ;;  %v5739_v37 = vld [vmem:[%s9524_s7 + $0x1b8] sm:$0xf0]  ;;  %v5614_v49 = vor.u32 %v6324_v24, %v5611_v27  ;;  %v5577_v8 = vld [vmem:[%s9524_s7 + $0x68] sm:$0xf] }
 0x26b   :  { %3044 = vmatmul.bf16.vlgmr.msrb.gmra.mxu2 %v8663_v35  ;;  %3057 = vmatmul.bf16.vlgmr.msra.gmra.mxu3 %v8665_v42  ;;  %v5665_v35 = vld [vmem:[%s9524_s7 + $0x120] sm:$0xf]  ;;  %v6341_v42 = vld [vmem:[%s9524_s7 + $0x12c] sm:$0xf0]  ;;  %v5742_v25 = vor.u32 %v6356_v22, %v5739_v37  ;;  %v6352_v54 = vld [vmem:[%s9524_s7 + $0x18c] sm:$0xf] }
 0x26c   :  { %3386 = vmatpush.bf16.msrb.mxu0 %v5570_v12  ;;  %3399 = vmatpush.bf16.msra.mxu1 %v5698_v33  ;;  %v5666_v28 = vor.u32 %v6341_v42, %v5665_v35  ;;  %v5626_v12 = vor.u32 %v6330_v3, %v5625_v2  ;;  %v5754_v33 = vor.u32 %v6362_v15, %v5753_v14  ;;  %v6320_v35 = vld [vmem:[%s9524_s7 + $0x8c] sm:$0xf]  ;;  %v5595_v42 = vld [vmem:[%s9524_s7 + $0x98] sm:$0xf0]  ;;  %v5705_v58 = vld [vmem:[%s9524_s7 + $0x168] sm:$0xf] }
 0x26d   :  { %3412 = vmatpush.bf16.msra.mxu2 %v5574_v19  ;;  %3425 = vmatpush.bf16.msrb.mxu3 %v5702_v45  ;;  %v5758_v19 = vor.u32 %v6360_v17, %v5755_v38  ;;  %v5737_v45 = vld [vmem:[%s9524_s7 + $0x1a8] sm:$0xf]  ;;  %v5723_v44 = vld [vmem:[%s9524_s7 + $0x198] sm:$0xf0]  ;;  %v6350_v16 = vld [vmem:[%s9524_s7 + $0x174] sm:$0xf0] }
 0x26e   :  { %v5738_v59 = vor.u32 %v6358_v21, %v5737_v45  ;;  %v5726_v23 = vor.u32 %v6352_v54, %v5723_v44  ;;  %v6348_v55 = vld [vmem:[%s9524_s7 + $0x16c] sm:$0xf]  ;;  %v5707_v41 = vld [vmem:[%s9524_s7 + $0x178] sm:$0xf0]  ;;  %v5706_v51 = vor.u32 %v6350_v16, %v5705_v58  ;;  %v5561_v43 = vld [vmem:[%s9524_s7 + $0x48] sm:$0xf] }
 0x26f   :  { %v6314_v34 = vld [vmem:[%s9524_s7 + $0x54] sm:$0xf0]  ;;  %v5710_v5 = vor.u32 %v6348_v55, %v5707_v41  ;;  %v5689_v30 = vld [vmem:[%s9524_s7 + $0x148] sm:$0xf]  ;;  %v5563_v7 = vld [vmem:[%s9524_s7 + $0x58] sm:$0xf0] }
 0x270   :  { %3387 = vmatpush.bf16.msrb.mxu0 %v5554_v26  ;;  %3400 = vmatpush.bf16.msra.mxu1 %v5682_v36  ;;  %v5593_v26 = vld [vmem:[%s9524_s7 + $0x88] sm:$0xf]  ;;  %v6322_v36 = vld [vmem:[%s9524_s7 + $0x94] sm:$0xf0]  ;;  %v6344_v32 = vld [vmem:[%s9524_s7 + $0x14c] sm:$0xf] }
 0x271   :  { %3413 = vmatpush.bf16.msra.mxu2 %v5558_v11  ;;  %3426 = vmatpush.bf16.msrb.mxu3 %v5686_v39  ;;  %v5721_v11 = vld [vmem:[%s9524_s7 + $0x188] sm:$0xf]  ;;  %v6354_v39 = vld [vmem:[%s9524_s7 + $0x194] sm:$0xf0]  ;;  %v5594_v6 = vor.u32 %v6322_v36, %v5593_v26  ;;  %v5691_v56 = vld [vmem:[%s9524_s7 + $0x158] sm:$0xf0] }
 0x272   :  { %v5722_v29 = vor.u32 %v6354_v39, %v5721_v11  ;;  %v5694_v3 = vor.u32 %v6344_v32, %v5691_v56  ;;  %v6308_v14 = vld [vmem:[%s9524_s7 + $0x2c] sm:$0xf]  ;;  %v5547_v15 = vld [vmem:[%s9524_s7 + $0x38] sm:$0xf0]  ;;  %v5529_v17 = vld [vmem:[%s9524_s7 + $0x8] sm:$0xf] }
 0x273   :  { %v6340_v40 = vld [vmem:[%s9524_s7 + $0x12c] sm:$0xf]  ;;  %v5675_v52 = vld [vmem:[%s9524_s7 + $0x138] sm:$0xf0]  ;;  %v5657_v18 = vld [vmem:[%s9524_s7 + $0x108] sm:$0xf] }
 0x274   :  { %3388 = vmatpush.bf16.msrb.mxu0 %v5538_v46  ;;  %3401 = vmatpush.bf16.msra.mxu1 %v5666_v28  ;;  %v6318_v46 = vld [vmem:[%s9524_s7 + $0x74] sm:$0xf0]  ;;  %v5598_v28 = vor.u32 %v6320_v35, %v5595_v42  ;;  %v6304_v45 = vld [vmem:[%s9524_s7 + $0xc] sm:$0xf]  ;;  %v5531_v21 = vld [vmem:[%s9524_s7 + $0x18] sm:$0xf0] }
 0x275   :  { %3414 = vmatpush.bf16.msra.mxu2 %v5542_v48  ;;  %3427 = vmatpush.bf16.msrb.mxu3 %v5670_v31  ;;  %v6316_v48 = vld [vmem:[%s9524_s7 + $0x6c] sm:$0xf]  ;;  %v5579_v31 = vld [vmem:[%s9524_s7 + $0x78] sm:$0xf0]  ;;  %v5578_v63 = vor.u32 %v6318_v46, %v5577_v8  ;;  %v6338_v20 = vld [vmem:[%s9524_s7 + $0x114] sm:$0xf0]  ;;  %v5534_v35 = vor.u32 %v6304_v45, %v5531_v21 }
 0x276   :  { %v5582_v13 = vor.u32 %v6316_v48, %v5579_v31  ;;  %v6336_v24 = vld [vmem:[%s9524_s7 + $0x10c] sm:$0xf]  ;;  %v5659_v27 = vld [vmem:[%s9524_s7 + $0x118] sm:$0xf0]  ;;  %v5957_v22 = vld [vmem:[%s9524_s7 + $0x4e0] sm:$0xf] }
 0x277   :  { %v6461_v37 = vld [vmem:[%s9524_s7 + $0x4ec] sm:$0xf0]  ;;  %v6459_v26 = vld [vmem:[%s9524_s7 + $0x4e4] sm:$0xf]  ;;  %v6087_v39 = vld [vmem:[%s9524_s7 + $0x5f0] sm:$0xf0]  ;;  %v5662_v42 = vor.u32 %v6336_v24, %v5659_v27 }
 0x278   :  { %3389 = vmatpush.bf16.msrb.mxu0 %v5522_v57  ;;  %3402 = vmatpush.bf16.msra.mxu1 %v5650_v60  ;;  %v6346_v57 = vld [vmem:[%s9524_s7 + $0x154] sm:$0xf0]  ;;  %v6312_v60 = vld [vmem:[%s9524_s7 + $0x4c] sm:$0xf]  ;;  %v6491_v11 = vld [vmem:[%s9524_s7 + $0x5e4] sm:$0xf]  ;;  %v5958_v54 = vor.u32 %v6461_v37, %v5957_v22 }
 0x279   :  { %3415 = vmatpush.bf16.msra.mxu2 %v5526_v61  ;;  %3428 = vmatpush.bf16.msrb.mxu3 %v5654_v0  ;;  %v5562_v61 = vor.u32 %v6314_v34, %v5561_v43  ;;  %v5690_v0 = vor.u32 %v6346_v57, %v5689_v30  ;;  %v5566_v2 = vor.u32 %v6312_v60, %v5563_v7  ;;  %v6455_v58 = vld [vmem:[%s9524_s7 + $0x4c4] sm:$0xf]  ;;  %v5943_v16 = vld [vmem:[%s9524_s7 + $0x4d0] sm:$0xf0]  ;;  %v5877_v24 = vld [vmem:[%s9524_s7 + $0x440] sm:$0xf] }
 0x27a   :  { %v6090_v46 = vor.u32 %v6491_v11, %v6087_v39  ;;  %v6487_v48 = vld [vmem:[%s9524_s7 + $0x5c4] sm:$0xf]  ;;  %v6071_v31 = vld [vmem:[%s9524_s7 + $0x5d0] sm:$0xf0]  ;;  %v5946_v43 = vor.u32 %v6455_v58, %v5943_v16  ;;  %v6441_v27 = vld [vmem:[%s9524_s7 + $0x44c] sm:$0xf0] }
 0x27b   :  { %3390 = vmatmul.bf16.vlgmr.msrb.gmra.mxu0 %v8892_v47  ;;  %3403 = vmatmul.bf16.vlgmr.msra.gmra.mxu1 %v8896_v4  ;;  %v6074_v34 = vor.u32 %v6487_v48, %v6071_v31  ;;  %v6451_v30 = vld [vmem:[%s9524_s7 + $0x4a4] sm:$0xf]  ;;  %v5927_v57 = vld [vmem:[%s9524_s7 + $0x4b0] sm:$0xf0]  ;;  %v5878_v11 = vor.u32 %v6441_v27, %v5877_v24  ;;  %v5845_v58 = vld [vmem:[%s9524_s7 + $0x400] sm:$0xf] }
 0x27c   :  { %3434 = vmatpush.bf16.msra.mxu0 %v5642_v50  ;;  %3447 = vmatpush.bf16.msrb.mxu1 %v5770_v1  ;;  %v5545_v50 = vld [vmem:[%s9524_s7 + $0x28] sm:$0xf]  ;;  %v6310_v1 = vld [vmem:[%s9524_s7 + $0x34] sm:$0xf0]  ;;  %v6483_v60 = vld [vmem:[%s9524_s7 + $0x5a4] sm:$0xf] }
 0x27d   :  { %3460 = vmatpush.bf16.msrb.mxu2 %v5646_v9  ;;  %3473 = vmatpush.bf16.msra.mxu3 %v5774_v10  ;;  %v5673_v9 = vld [vmem:[%s9524_s7 + $0x128] sm:$0xf]  ;;  %v6342_v10 = vld [vmem:[%s9524_s7 + $0x134] sm:$0xf0]  ;;  %v5546_v38 = vor.u32 %v6310_v1, %v5545_v50  ;;  %v6055_v7 = vld [vmem:[%s9524_s7 + $0x5b0] sm:$0xf0]  ;;  %v5930_v50 = vor.u32 %v6451_v30, %v5927_v57 }
 0x27e   :  { %3416 = vmatmul.bf16.vlgmr.msra.gmra.mxu2 %v8892_v47  ;;  %3429 = vmatmul.bf16.vlgmr.msrb.gmra.mxu3 %v8896_v4  ;;  %v6058_v1 = vor.u32 %v6483_v60, %v6055_v7  ;;  %v6433_v31 = vld [vmem:[%s9524_s7 + $0x40c] sm:$0xf0]  ;;  %v5965_v30 = vld [vmem:[%s9524_s7 + $0x4e8] sm:$0xf]  ;;  %v6462_v57 = vld [vmem:[%s9524_s7 + $0x4f4] sm:$0xf0] }
 0x27f   :  { %v6093_v60 = vld [vmem:[%s9524_s7 + $0x5e8] sm:$0xf]  ;;  %v6494_v7 = vld [vmem:[%s9524_s7 + $0x5f4] sm:$0xf0] }
 0x280   :  { %3435 = vmatpush.bf16.msra.mxu0 %v5626_v12  ;;  %3448 = vmatpush.bf16.msrb.mxu1 %v5754_v33  ;;  %v5674_v12 = vor.u32 %v6342_v10, %v5673_v9  ;;  %v6306_v33 = vld [vmem:[%s9524_s7 + $0x14] sm:$0xf0]  ;;  %v6479_v9 = vld [vmem:[%s9524_s7 + $0x584] sm:$0xf]  ;;  %v6039_v10 = vld [vmem:[%s9524_s7 + $0x590] sm:$0xf0] }
 0x281   :  { %3461 = vmatpush.bf16.msrb.mxu2 %v5630_v62  ;;  %3474 = vmatpush.bf16.msra.mxu3 %v5758_v19  ;;  %v5550_v62 = vor.u32 %v6308_v14, %v5547_v15  ;;  %v5678_v19 = vor.u32 %v6340_v40, %v5675_v52  ;;  %v5530_v36 = vor.u32 %v6306_v33, %v5529_v17  ;;  %v5893_v40 = vld [vmem:[%s9524_s7 + $0x460] sm:$0xf]  ;;  %v6445_v52 = vld [vmem:[%s9524_s7 + $0x46c] sm:$0xf0]  ;;  %v5933_v24 = vld [vmem:[%s9524_s7 + $0x4a8] sm:$0xf] }
 0x282   :  { %v6477_v33 = vld [vmem:[%s9524_s7 + $0x56c] sm:$0xf0]  ;;  %v5894_v45 = vor.u32 %v6445_v52, %v5893_v40  ;;  %v6454_v27 = vld [vmem:[%s9524_s7 + $0x4b4] sm:$0xf0] }
 0x284   :  { %3436 = vmatpush.bf16.msra.mxu0 %v5610_v53  ;;  %3449 = vmatpush.bf16.msrb.mxu1 %v5738_v59  ;;  %v6085_v53 = vld [vmem:[%s9524_s7 + $0x5e0] sm:$0xf]  ;;  %v6493_v59 = vld [vmem:[%s9524_s7 + $0x5ec] sm:$0xf0] }
 0x285   :  { %3462 = vmatpush.bf16.msrb.mxu2 %v5614_v49  ;;  %3475 = vmatpush.bf16.msra.mxu3 %v5742_v25  ;;  %v5658_v49 = vor.u32 %v6338_v20, %v5657_v18  ;;  %v5959_v25 = vld [vmem:[%s9524_s7 + $0x4f0] sm:$0xf0]  ;;  %v6086_v44 = vor.u32 %v6493_v59, %v6085_v53  ;;  %v6443_v18 = vld [vmem:[%s9524_s7 + $0x464] sm:$0xf]  ;;  %v6005_v53 = vld [vmem:[%s9524_s7 + $0x540] sm:$0xf] }
 0x286   :  { %v5962_v8 = vor.u32 %v6459_v26, %v5959_v25  ;;  %v5895_v20 = vld [vmem:[%s9524_s7 + $0x470] sm:$0xf0]  ;;  %v6473_v59 = vld [vmem:[%s9524_s7 + $0x54c] sm:$0xf0]  ;;  %v6439_v26 = vld [vmem:[%s9524_s7 + $0x444] sm:$0xf] }
 0x287   :  { %v5898_v22 = vor.u32 %v6443_v18, %v5895_v20  ;;  %v6007_v25 = vld [vmem:[%s9524_s7 + $0x550] sm:$0xf0]  ;;  %v6006_v39 = vor.u32 %v6473_v59, %v6005_v53  ;;  %v6488_v18 = vld [vmem:[%s9524_s7 + $0x5cc] sm:$0xf]  ;;  %v6079_v20 = vld [vmem:[%s9524_s7 + $0x5d8] sm:$0xf0] }
 0x288   :  { %3437 = vmatpush.bf16.msra.mxu0 %v5594_v6  ;;  %3450 = vmatpush.bf16.msrb.mxu1 %v5722_v29  ;;  %v5941_v6 = vld [vmem:[%s9524_s7 + $0x4c0] sm:$0xf]  ;;  %v6457_v29 = vld [vmem:[%s9524_s7 + $0x4cc] sm:$0xf0]  ;;  %v6061_v53 = vld [vmem:[%s9524_s7 + $0x5a8] sm:$0xf] }
 0x289   :  { %3463 = vmatpush.bf16.msrb.mxu2 %v5598_v28  ;;  %3476 = vmatpush.bf16.msra.mxu3 %v5726_v23  ;;  %v6069_v28 = vld [vmem:[%s9524_s7 + $0x5c0] sm:$0xf]  ;;  %v6489_v23 = vld [vmem:[%s9524_s7 + $0x5cc] sm:$0xf0]  ;;  %v5942_v55 = vor.u32 %v6457_v29, %v5941_v6  ;;  %v6486_v59 = vld [vmem:[%s9524_s7 + $0x5b4] sm:$0xf0] }
 0x28a   :  { %v6070_v41 = vor.u32 %v6489_v23, %v6069_v28  ;;  %v5989_v6 = vld [vmem:[%s9524_s7 + $0x520] sm:$0xf]  ;;  %v6469_v29 = vld [vmem:[%s9524_s7 + $0x52c] sm:$0xf0]  ;;  %v6467_v28 = vld [vmem:[%s9524_s7 + $0x524] sm:$0xf] }
 0x28b   :  { %v5991_v23 = vld [vmem:[%s9524_s7 + $0x530] sm:$0xf0]  ;;  %v5990_v48 = vor.u32 %v6469_v29, %v5989_v6  ;;  %v6045_v6 = vld [vmem:[%s9524_s7 + $0x588] sm:$0xf]  ;;  %v6482_v29 = vld [vmem:[%s9524_s7 + $0x594] sm:$0xf0] }
 0x28c   :  { %3438 = vmatpush.bf16.msra.mxu0 %v5578_v63  ;;  %3451 = vmatpush.bf16.msrb.mxu1 %v5706_v51  ;;  %v5925_v63 = vld [vmem:[%s9524_s7 + $0x4a0] sm:$0xf]  ;;  %v6453_v51 = vld [vmem:[%s9524_s7 + $0x4ac] sm:$0xf0] }
 0x28d   :  { %3464 = vmatpush.bf16.msrb.mxu2 %v5582_v13  ;;  %3477 = vmatpush.bf16.msra.mxu3 %v5710_v5  ;;  %v6053_v13 = vld [vmem:[%s9524_s7 + $0x5a0] sm:$0xf]  ;;  %v6485_v5 = vld [vmem:[%s9524_s7 + $0x5ac] sm:$0xf0]  ;;  %v5926_v32 = vor.u32 %v6453_v51, %v5925_v63  ;;  %v5994_v51 = vor.u32 %v6467_v28, %v5991_v23  ;;  %v6480_v28 = vld [vmem:[%s9524_s7 + $0x58c] sm:$0xf] }
 0x28e   :  { %v6054_v56 = vor.u32 %v6485_v5, %v6053_v13  ;;  %v6463_v13 = vld [vmem:[%s9524_s7 + $0x504] sm:$0xf]  ;;  %v5975_v5 = vld [vmem:[%s9524_s7 + $0x510] sm:$0xf0]  ;;  %v6047_v23 = vld [vmem:[%s9524_s7 + $0x598] sm:$0xf0] }
 0x290   :  { %3439 = vmatpush.bf16.msra.mxu0 %v5562_v61  ;;  %3452 = vmatpush.bf16.msrb.mxu1 %v5690_v0  ;;  %v5909_v61 = vld [vmem:[%s9524_s7 + $0x480] sm:$0xf]  ;;  %v6449_v0 = vld [vmem:[%s9524_s7 + $0x48c] sm:$0xf0] }
 0x291   :  { %3465 = vmatpush.bf16.msrb.mxu2 %v5566_v2  ;;  %3478 = vmatpush.bf16.msra.mxu3 %v5694_v3  ;;  %v6447_v2 = vld [vmem:[%s9524_s7 + $0x484] sm:$0xf]  ;;  %v5911_v3 = vld [vmem:[%s9524_s7 + $0x490] sm:$0xf0]  ;;  %v5910_v14 = vor.u32 %v6449_v0, %v5909_v61  ;;  %v5967_v0 = vld [vmem:[%s9524_s7 + $0x4f8] sm:$0xf0] }
 0x292   :  { %v5914_v17 = vor.u32 %v6447_v2, %v5911_v3  ;;  %v3514_v2 = vld.sshfl [vmem:[#allocation1] sm:$0xff pattern:$0x75316420]  ;;  %v3515_v3 = vld.sshfl [vmem:[#allocation1 + $0x8] sm:$0xff pattern:$0x75316420] }
 0x294   :  { %3440 = vmatpush.bf16.msra.mxu0 %v5546_v38  ;;  %3453 = vmatpush.bf16.msrb.mxu1 %v5674_v12  ;;  %v6042_v38 = vor.u32 %v6479_v9, %v6039_v10  ;;  %v6021_v12 = vld [vmem:[%s9524_s7 + $0x560] sm:$0xf]  ;;  %v5966_v9 = vor.u32 %v6462_v57, %v5965_v30  ;;  %v6094_v10 = vor.u32 %v6494_v7, %v6093_v60  ;;  %v5885_v60 = vld [vmem:[%s9524_s7 + $0x448] sm:$0xf]  ;;  %v6442_v7 = vld [vmem:[%s9524_s7 + $0x454] sm:$0xf0] }
 0x295   :  { %3466 = vmatpush.bf16.msrb.mxu2 %v5550_v62  ;;  %3479 = vmatpush.bf16.msra.mxu3 %v5678_v19  ;;  %v6475_v62 = vld [vmem:[%s9524_s7 + $0x564] sm:$0xf]  ;;  %v6023_v19 = vld [vmem:[%s9524_s7 + $0x570] sm:$0xf0]  ;;  %v6022_v21 = vor.u32 %v6477_v33, %v6021_v12  ;;  %v6456_v12 = vld [vmem:[%s9524_s7 + $0x4cc] sm:$0xf] }
 0x296   :  { %v6026_v37 = vor.u32 %v6475_v62, %v6023_v19  ;;  %v5951_v33 = vld [vmem:[%s9524_s7 + $0x4d8] sm:$0xf0]  ;;  %v9290_v62 = vpack.c.bf16 %v3514_v2, %v3514_v2  ;;  %v9292_v19 = vpack.c.bf16 %v3515_v3, %v3515_v3  ;;  %v5886_v2 = vor.u32 %v6442_v7, %v5885_v60 }
 0x298   :  { %3441 = vmatpush.bf16.msra.mxu0 %v5530_v36  ;;  %3454 = vmatpush.bf16.msrb.mxu1 %v5658_v49  ;;  %v5879_v36 = vld [vmem:[%s9524_s7 + $0x450] sm:$0xf0]  ;;  %v6471_v49 = vld [vmem:[%s9524_s7 + $0x544] sm:$0xf] }
 0x299   :  { %3467 = vmatpush.bf16.msrb.mxu2 %v5534_v35  ;;  %3480 = vmatpush.bf16.msra.mxu3 %v5662_v42  ;;  %v5861_v35 = vld [vmem:[%s9524_s7 + $0x420] sm:$0xf]  ;;  %v6437_v42 = vld [vmem:[%s9524_s7 + $0x42c] sm:$0xf0] }
 0x29a   :  { %v5862_v16 = vor.u32 %v6437_v42, %v5861_v35  ;;  %v5917_v35 = vld [vmem:[%s9524_s7 + $0x488] sm:$0xf]  ;;  %v6450_v42 = vld [vmem:[%s9524_s7 + $0x494] sm:$0xf0] }
 0x29b   :  { %3442 = vmatmul.bf16.vlgmr.msra.gmra.mxu0 %v8892_v47  ;;  %3455 = vmatmul.bf16.vlgmr.msrb.gmra.mxu1 %v8896_v4 }
 0x29c   :  { %3905 = vmatpush.bf16.msrb.mxu0 %v5958_v54  ;;  %3918 = vmatpush.bf16.msra.mxu1 %v6086_v44  ;;  %v5882_v54 = vor.u32 %v6439_v26, %v5879_v36  ;;  %v6010_v44 = vor.u32 %v6471_v49, %v6007_v25  ;;  %v6452_v26 = vld [vmem:[%s9524_s7 + $0x4ac] sm:$0xf]  ;;  %v5935_v36 = vld [vmem:[%s9524_s7 + $0x4b8] sm:$0xf0] }
 0x29d   :  { %3931 = vmatpush.bf16.msra.mxu2 %v5962_v8  ;;  %3944 = vmatpush.bf16.msrb.mxu3 %v6090_v46  ;;  %v6435_v8 = vld [vmem:[%s9524_s7 + $0x424] sm:$0xf]  ;;  %v5863_v46 = vld [vmem:[%s9524_s7 + $0x430] sm:$0xf0]  ;;  %v6484_v49 = vld [vmem:[%s9524_s7 + $0x5ac] sm:$0xf] }
 0x29e   :  { %3468 = vmatmul.bf16.vlgmr.msrb.gmra.mxu2 %v8892_v47  ;;  %3481 = vmatmul.bf16.vlgmr.msra.gmra.mxu3 %v8896_v4  ;;  %v6037_v47 = vld [vmem:[%s9524_s7 + $0x580] sm:$0xf]  ;;  %v6481_v4 = vld [vmem:[%s9524_s7 + $0x58c] sm:$0xf0]  ;;  %v5866_v63 = vor.u32 %v6435_v8, %v5863_v46  ;;  %v6063_v25 = vld [vmem:[%s9524_s7 + $0x5b8] sm:$0xf0] }
 0x29f   :  { %v6038_v15 = vor.u32 %v6481_v4, %v6037_v47  ;;  %v5978_v4 = vor.u32 %v6463_v13, %v5975_v5  ;;  %v6448_v8 = vld [vmem:[%s9524_s7 + $0x48c] sm:$0xf]  ;;  %v5919_v46 = vld [vmem:[%s9524_s7 + $0x498] sm:$0xf0] }
 0x2a0   :  { %3906 = vmatpush.bf16.msrb.mxu0 %v5942_v55  ;;  %3919 = vmatpush.bf16.msra.mxu1 %v6070_v41  ;;  %v5973_v55 = vld [vmem:[%s9524_s7 + $0x500] sm:$0xf]  ;;  %v6465_v41 = vld [vmem:[%s9524_s7 + $0x50c] sm:$0xf0]  ;;  %v6476_v13 = vld [vmem:[%s9524_s7 + $0x56c] sm:$0xf] }
 0x2a1   :  { %3932 = vmatpush.bf16.msra.mxu2 %v5946_v43  ;;  %3945 = vmatpush.bf16.msrb.mxu3 %v6074_v34  ;;  %v6431_v43 = vld [vmem:[%s9524_s7 + $0x404] sm:$0xf]  ;;  %v5847_v34 = vld [vmem:[%s9524_s7 + $0x410] sm:$0xf0]  ;;  %v5974_v61 = vor.u32 %v6465_v41, %v5973_v55  ;;  %v5922_v55 = vor.u32 %v6448_v8, %v5919_v46  ;;  %v6050_v41 = vor.u32 %v6480_v28, %v6047_v23  ;;  %v6031_v5 = vld [vmem:[%s9524_s7 + $0x578] sm:$0xf0] }
 0x2a2   :  { %v5850_v47 = vor.u32 %v6431_v43, %v5847_v34  ;;  %v6444_v43 = vld [vmem:[%s9524_s7 + $0x46c] sm:$0xf]  ;;  %v5903_v34 = vld [vmem:[%s9524_s7 + $0x478] sm:$0xf0] }
 0x2a4   :  { %3907 = vmatpush.bf16.msrb.mxu0 %v5926_v32  ;;  %3920 = vmatpush.bf16.msra.mxu1 %v6054_v56  ;;  %v6460_v32 = vld [vmem:[%s9524_s7 + $0x4ec] sm:$0xf]  ;;  %v5846_v56 = vor.u32 %v6433_v31, %v5845_v58  ;;  %v5918_v58 = vor.u32 %v6450_v42, %v5917_v35  ;;  %v6446_v31 = vld [vmem:[%s9524_s7 + $0x474] sm:$0xf0] }
 0x2a5   :  { %3933 = vmatpush.bf16.msra.mxu2 %v5930_v50  ;;  %3946 = vmatpush.bf16.msrb.mxu3 %v6058_v1  ;;  %v6492_v50 = vld [vmem:[%s9524_s7 + $0x5ec] sm:$0xf]  ;;  %v6095_v1 = vld [vmem:[%s9524_s7 + $0x5f8] sm:$0xf0]  ;;  %v5970_v40 = vor.u32 %v6460_v32, %v5967_v0  ;;  %v5906_v32 = vor.u32 %v6444_v43, %v5903_v34  ;;  %v6474_v0 = vld [vmem:[%s9524_s7 + $0x554] sm:$0xf0] }
 0x2a6   :  { %v6098_v52 = vor.u32 %v6492_v50, %v6095_v1  ;;  %v6440_v50 = vld [vmem:[%s9524_s7 + $0x44c] sm:$0xf]  ;;  %v5887_v1 = vld [vmem:[%s9524_s7 + $0x458] sm:$0xf0] }
 0x2a8   :  { %3908 = vmatpush.bf16.msrb.mxu0 %v5910_v14  ;;  %3921 = vmatpush.bf16.msra.mxu1 %v6038_v15  ;;  %v5949_v14 = vld [vmem:[%s9524_s7 + $0x4c8] sm:$0xf]  ;;  %v6458_v15 = vld [vmem:[%s9524_s7 + $0x4d4] sm:$0xf0] }
 0x2a9   :  { %3934 = vmatpush.bf16.msra.mxu2 %v5914_v17  ;;  %3947 = vmatpush.bf16.msrb.mxu3 %v6042_v38  ;;  %v6077_v17 = vld [vmem:[%s9524_s7 + $0x5c8] sm:$0xf]  ;;  %v6490_v38 = vld [vmem:[%s9524_s7 + $0x5d4] sm:$0xf0] }
 0x2ac   :  { %3909 = vmatpush.bf16.msrb.mxu0 %v5894_v45  ;;  %3922 = vmatpush.bf16.msra.mxu1 %v6022_v21  ;;  %v5950_v45 = vor.u32 %v6458_v15, %v5949_v14  ;;  %v6078_v21 = vor.u32 %v6490_v38, %v6077_v17  ;;  %v5890_v14 = vor.u32 %v6440_v50, %v5887_v1  ;;  %v6436_v17 = vld [vmem:[%s9524_s7 + $0x42c] sm:$0xf]  ;;  %v5871_v38 = vld [vmem:[%s9524_s7 + $0x438] sm:$0xf0] }
 0x2ad   :  { %3935 = vmatpush.bf16.msra.mxu2 %v5898_v22  ;;  %3948 = vmatpush.bf16.msrb.mxu3 %v6026_v37  ;;  %v5954_v22 = vor.u32 %v6456_v12, %v5951_v33  ;;  %v6082_v37 = vor.u32 %v6488_v18, %v6079_v20  ;;  %v6468_v12 = vld [vmem:[%s9524_s7 + $0x52c] sm:$0xf]  ;;  %v5999_v33 = vld [vmem:[%s9524_s7 + $0x538] sm:$0xf0] }
 0x2b0   :  { %3910 = vmatpush.bf16.msrb.mxu0 %v5878_v11  ;;  %3923 = vmatpush.bf16.msra.mxu1 %v6006_v39  ;;  %v5934_v11 = vor.u32 %v6454_v27, %v5933_v24  ;;  %v6062_v39 = vor.u32 %v6486_v59, %v6061_v53  ;;  %v5874_v24 = vor.u32 %v6436_v17, %v5871_v38  ;;  %v6432_v53 = vld [vmem:[%s9524_s7 + $0x40c] sm:$0xf]  ;;  %v5855_v59 = vld [vmem:[%s9524_s7 + $0x418] sm:$0xf0]  ;;  %v9451_v38 = vld [vmem:[%s9525_s8] sm:$0xf] }
 0x2b1   :  { %3936 = vmatpush.bf16.msra.mxu2 %v5882_v54  ;;  %3949 = vmatpush.bf16.msrb.mxu3 %v6010_v44  ;;  %v5938_v54 = vor.u32 %v6452_v26, %v5935_v36  ;;  %v6066_v44 = vor.u32 %v6484_v49, %v6063_v25  ;;  %v6002_v27 = vor.u32 %v6468_v12, %v5999_v33  ;;  %v6464_v26 = vld [vmem:[%s9524_s7 + $0x50c] sm:$0xf]  ;;  %v5983_v36 = vld [vmem:[%s9524_s7 + $0x518] sm:$0xf0] }
 0x2b4   :  { %3911 = vmatpush.bf16.msrb.mxu0 %v5862_v16  ;;  %3924 = vmatpush.bf16.msra.mxu1 %v5990_v48  ;;  %v6046_v16 = vor.u32 %v6482_v29, %v6045_v6  ;;  %v5901_v48 = vld [vmem:[%s9524_s7 + $0x468] sm:$0xf] }
 0x2b5   :  { %3937 = vmatpush.bf16.msra.mxu2 %v5866_v63  ;;  %3950 = vmatpush.bf16.msrb.mxu3 %v5994_v51  ;;  %v6029_v63 = vld [vmem:[%s9524_s7 + $0x568] sm:$0xf]  ;;  %v6478_v51 = vld [vmem:[%s9524_s7 + $0x574] sm:$0xf0]  ;;  %v5902_v30 = vor.u32 %v6446_v31, %v5901_v48 }
 0x2b6   :  { %v6030_v57 = vor.u32 %v6478_v51, %v6029_v63 }
 0x2b8   :  { %3912 = vmatpush.bf16.msrb.mxu0 %v5846_v56  ;;  %3925 = vmatpush.bf16.msra.mxu1 %v5974_v61  ;;  %v6034_v56 = vor.u32 %v6476_v13, %v6031_v5  ;;  %v6013_v61 = vld [vmem:[%s9524_s7 + $0x548] sm:$0xf] }
 0x2b9   :  { %3938 = vmatpush.bf16.msra.mxu2 %v5850_v47  ;;  %3951 = vmatpush.bf16.msrb.mxu3 %v5978_v4  ;;  %v6472_v47 = vld [vmem:[%s9524_s7 + $0x54c] sm:$0xf]  ;;  %v6015_v4 = vld [vmem:[%s9524_s7 + $0x558] sm:$0xf0]  ;;  %v6014_v3 = vor.u32 %v6474_v0, %v6013_v61 }
 0x2ba   :  { %v6018_v15 = vor.u32 %v6472_v47, %v6015_v4 }
 0x2bb   :  { %3913 = vmatmul.bf16.vlgmr.msrb.gmra.mxu0 %v9290_v62  ;;  %3926 = vmatmul.bf16.vlgmr.msra.gmra.mxu1 %v9292_v19 }
 0x2bc   :  { %3957 = vmatpush.bf16.msra.mxu0 %v5966_v9  ;;  %3970 = vmatpush.bf16.msrb.mxu1 %v6094_v10  ;;  %v5869_v9 = vld [vmem:[%s9524_s7 + $0x428] sm:$0xf]  ;;  %v6438_v10 = vld [vmem:[%s9524_s7 + $0x434] sm:$0xf0] }
 0x2bd   :  { %3983 = vmatpush.bf16.msrb.mxu2 %v5970_v40  ;;  %3996 = vmatpush.bf16.msra.mxu3 %v6098_v52  ;;  %v5997_v40 = vld [vmem:[%s9524_s7 + $0x528] sm:$0xf]  ;;  %v6470_v52 = vld [vmem:[%s9524_s7 + $0x534] sm:$0xf0]  ;;  %v5870_v18 = vor.u32 %v6438_v10, %v5869_v9 }
 0x2be   :  { %3939 = vmatmul.bf16.vlgmr.msra.gmra.mxu2 %v9290_v62  ;;  %3952 = vmatmul.bf16.vlgmr.msrb.gmra.mxu3 %v9292_v19  ;;  %v5998_v20 = vor.u32 %v6470_v52, %v5997_v40 }
 0x2c0   :  { %3958 = vmatpush.bf16.msra.mxu0 %v5950_v45  ;;  %3971 = vmatpush.bf16.msrb.mxu1 %v6078_v21  ;;  %v5853_v45 = vld [vmem:[%s9524_s7 + $0x408] sm:$0xf]  ;;  %v6434_v21 = vld [vmem:[%s9524_s7 + $0x414] sm:$0xf0] }
 0x2c1   :  { %3984 = vmatpush.bf16.msrb.mxu2 %v5954_v22  ;;  %3997 = vmatpush.bf16.msra.mxu3 %v6082_v37  ;;  %v5981_v22 = vld [vmem:[%s9524_s7 + $0x508] sm:$0xf]  ;;  %v6466_v37 = vld [vmem:[%s9524_s7 + $0x514] sm:$0xf0]  ;;  %v5854_v49 = vor.u32 %v6434_v21, %v5853_v45  ;;  %v4016_v21 = vperm.slane %v9451_v38, 1 }
 0x2c2   :  { %v5982_v25 = vor.u32 %v6466_v37, %v5981_v22 }
 0x2c4   :  { %3959 = vmatpush.bf16.msra.mxu0 %v5934_v11  ;;  %3972 = vmatpush.bf16.msrb.mxu1 %v6062_v39  ;;  %v5858_v11 = vor.u32 %v6432_v53, %v5855_v59  ;;  %v5986_v39 = vor.u32 %v6464_v26, %v5983_v36 }
 0x2c5   :  { %3985 = vmatpush.bf16.msrb.mxu2 %v5938_v54  ;;  %3998 = vmatpush.bf16.msra.mxu3 %v6066_v44 }
 0x2c8   :  { %3960 = vmatpush.bf16.msra.mxu0 %v5918_v58  ;;  %3973 = vmatpush.bf16.msrb.mxu1 %v6046_v16 }
 0x2c9   :  { %3986 = vmatpush.bf16.msrb.mxu2 %v5922_v55  ;;  %3999 = vmatpush.bf16.msra.mxu3 %v6050_v41 }
 0x2cc   :  { %3961 = vmatpush.bf16.msra.mxu0 %v5902_v30  ;;  %3974 = vmatpush.bf16.msrb.mxu1 %v6030_v57 }
 0x2cd   :  { %3987 = vmatpush.bf16.msrb.mxu2 %v5906_v32  ;;  %4000 = vmatpush.bf16.msra.mxu3 %v6034_v56 }
 0x2d0   :  { %3962 = vmatpush.bf16.msra.mxu0 %v5886_v2  ;;  %3975 = vmatpush.bf16.msrb.mxu1 %v6014_v3 }
 0x2d1   :  { %3988 = vmatpush.bf16.msrb.mxu2 %v5890_v14  ;;  %4001 = vmatpush.bf16.msra.mxu3 %v6018_v15 }
 0x2d4   :  { %3963 = vmatpush.bf16.msra.mxu0 %v5870_v18  ;;  %3976 = vmatpush.bf16.msrb.mxu1 %v5998_v20  ;;  %v4015_v20 = vperm.slane %v9451_v38, 0 }
 0x2d5   :  { %3989 = vmatpush.bf16.msrb.mxu2 %v5874_v24  ;;  %4002 = vmatpush.bf16.msra.mxu3 %v6002_v27 }
 0x2d7   :  { %v2967_v35 = vpop.f32.mrf.mxu0  ;;  %v2980_v42 = vpop.f32.mrf.mxu1 }
 0x2d8   :  { %3964 = vmatpush.bf16.msra.mxu0 %v5854_v49  ;;  %3977 = vmatpush.bf16.msrb.mxu1 %v5982_v25  ;;  %v2981_v54 = vadd.f32 %v2980_v42, %v2967_v35  ;;  %v4130_v35 = vld [vmem:[%s9526_s9 + $0x78] sm:$0xff]  ;;  %v4129_v42 = vld [vmem:[%s9526_s9 + $0x70] sm:$0xff] }
 0x2d9   :  { %3990 = vmatpush.bf16.msrb.mxu2 %v5858_v11  ;;  %4003 = vmatpush.bf16.msra.mxu3 %v5986_v39 }
 0x2db   :  { %3965 = vmatmul.bf16.vlgmr.msra.gmra.mxu0 %v9290_v62  ;;  %3978 = vmatmul.bf16.vlgmr.msrb.gmra.mxu1 %v9292_v19 }
 0x2dc   :  { %3991 = vmatmul.bf16.vlgmr.msrb.gmra.mxu2 %v9290_v62  ;;  %4004 = vmatmul.bf16.vlgmr.msra.gmra.mxu3 %v9292_v19 }
 0x2dd   :  { %4142 = vmatpush.msrb.mxu0 %v4130_v35 }
 0x2de   :  { %v2993_v44 = vpop.f32.mrf.mxu2  ;;  %v3006_v6 = vpop.f32.mrf.mxu3 }
 0x2df   :  { %v3007_v29 = vadd.f32 %v3006_v6, %v2993_v44  ;;  %v2969_v8 = vpop.f32.mrf.mxu0  ;;  %v2982_v46 = vpop.f32.mrf.mxu1  ;;  %4143 = vmatpush.msrb.mxu0 %v4129_v42  ;;  %v4127_v44 = vld [vmem:[%s9526_s9 + $0x60] sm:$0xff]  ;;  %v4126_v6 = vld [vmem:[%s9526_s9 + $0x58] sm:$0xff] }
 0x2e6   :  { %v2995_v28 = vpop.f32.mrf.mxu2  ;;  %v3008_v23 = vpop.f32.mrf.mxu3 }
 0x2e7   :  { %v3019_v58 = vpop.f32.mrf.mxu0  ;;  %v3032_v16 = vpop.f32.mrf.mxu1  ;;  %v4124_v28 = vld [vmem:[%s9526_s9 + $0x48] sm:$0xff] }
 0x2e8   :  { %v3033_v48 = vadd.f32 %v3032_v16, %v3019_v58  ;;  %v4123_v16 = vld [vmem:[%s9526_s9 + $0x40] sm:$0xff] }
 0x2ee   :  { %v3045_v31 = vpop.f32.mrf.mxu2  ;;  %v3058_v55 = vpop.f32.mrf.mxu3 }
 0x2ef   :  { %v9446_v41 = vadd.f32 %v3058_v55, %v3045_v31  ;;  %v3021_v62 = vpop.f32.mrf.mxu0  ;;  %v3034_v63 = vpop.f32.mrf.mxu1  ;;  %v4122_v55 = vld [vmem:[%s9526_s9 + $0x38] sm:$0xff] }
 0x2f6   :  { %v3047_v19 = vpop.f32.mrf.mxu2  ;;  %v3060_v51 = vpop.f32.mrf.mxu3 }
 0x2f8   :  { %v3391_v43 = vpop.f32.mrf.mxu0  ;;  %v3404_v34 = vpop.f32.mrf.mxu1 }
 0x2f9   :  { %v3392_v13 = vadd.f32 %v3391_v43, %v2981_v54  ;;  %v4128_v54 = vld [vmem:[%s9526_s9 + $0x68] sm:$0xff] }
 0x2fa   :  { %4144 = vmatpush.msrb.mxu0 %v4128_v54 }
 0x2fb   :  { %v3405_v5 = vadd.f32 %v3404_v34, %v3392_v13  ;;  %v4017_v34 = vperm.slane %v9451_v38, 2 }
 0x2fc   :  { %4145 = vmatpush.msrb.mxu0 %v4127_v44 }
 0x2fe   :  { %4146 = vmatpush.msrb.mxu0 %v4126_v6 }
 0x300   :  { %v3393_v7 = vpop.f32.mrf.mxu0  ;;  %v3406_v32 = vpop.f32.mrf.mxu1 }
 0x301   :  { %v3417_v30 = vpop.f32.mrf.mxu2  ;;  %v3430_v57 = vpop.f32.mrf.mxu3  ;;  %v4120_v7 = vld [vmem:[%s9526_s9 + $0x28] sm:$0xff] }
 0x302   :  { %v3418_v60 = vadd.f32 %v3417_v30, %v3007_v29  ;;  %v4125_v29 = vld [vmem:[%s9526_s9 + $0x50] sm:$0xff] }
 0x303   :  { %4147 = vmatpush.msrb.mxu0 %v4125_v29 }
 0x304   :  { %v3431_v56 = vadd.f32 %v3430_v57, %v3418_v60 }
 0x305   :  { %4148 = vmatpush.msrb.mxu0 %v4124_v28 }
 0x307   :  { %4149 = vmatpush.msrb.mxu0 %v4123_v16 }
 0x309   :  { %v3419_v61 = vpop.f32.mrf.mxu2  ;;  %v3432_v0 = vpop.f32.mrf.mxu3  ;;  %4150 = vmatpush.msrb.mxu0 %v4122_v55 }
 0x30a   :  { %v4119_v0 = vld [vmem:[%s9526_s9 + $0x20] sm:$0xff] }
 0x318   :  { %v3443_v50 = vpop.f32.mrf.mxu0  ;;  %v3456_v1 = vpop.f32.mrf.mxu1 }
 0x319   :  { %v3444_v47 = vadd.f32 %v3443_v50, %v3033_v48 }
 0x31b   :  { %v3457_v4 = vadd.f32 %v3456_v1, %v3444_v47 }
 0x320   :  { %v3445_v9 = vpop.f32.mrf.mxu0  ;;  %v3458_v10 = vpop.f32.mrf.mxu1 }
 0x321   :  { %v3469_v2 = vpop.f32.mrf.mxu2  ;;  %v3482_v3 = vpop.f32.mrf.mxu3 }
 0x322   :  { %v3470_v58 = vadd.f32 %v3469_v2, %v9446_v41  ;;  %v4121_v41 = vld [vmem:[%s9526_s9 + $0x30] sm:$0xff]  ;;  %v4118_v2 = vld [vmem:[%s9526_s9 + $0x18] sm:$0xff] }
 0x323   :  { %4151 = vmatpush.msrb.mxu0 %v4121_v41 }
 0x324   :  { %v3483_v63 = vadd.f32 %v3482_v3, %v3470_v58 }
 0x325   :  { %4152 = vmatpush.msrb.mxu0 %v4120_v7 }
 0x327   :  { %4153 = vmatpush.msrb.mxu0 %v4119_v0 }
 0x329   :  { %v3471_v14 = vpop.f32.mrf.mxu2  ;;  %v3484_v15 = vpop.f32.mrf.mxu3  ;;  %4154 = vmatpush.msrb.mxu0 %v4118_v2 }
 0x338   :  { %v3914_v40 = vpop.f32.mrf.mxu0  ;;  %v3927_v52 = vpop.f32.mrf.mxu1 }
 0x339   :  { %v3928_v17 = vadd.f32 %v3927_v52, %v3914_v40  ;;  %v4117_v40 = vld [vmem:[%s9526_s9 + $0x10] sm:$0xff] }
 0x33a   :  { %4155 = vmatpush.msrb.mxu0 %v4117_v40 }
 0x33b   :  { %v4009_v18 = vadd.f32 %v3928_v17, %v3405_v5  ;;  %v4018_v5 = vperm.slane %v9451_v38, 3 }
 0x33d   :  { %v4023_v37 = vadd.f32 %v4015_v20, %v4009_v18 }
 0x33f   :  { %v4027_v49 = vmax.f32 %v4023_v37, 0.0 }
 0x340   :  { %v3916_v24 = vpop.f32.mrf.mxu0  ;;  %v3929_v27 = vpop.f32.mrf.mxu1 }
 0x341   :  { %v3940_v12 = vpop.f32.mrf.mxu2  ;;  %v3953_v33 = vpop.f32.mrf.mxu3  ;;  %v4115_v27 = vld [vmem:[%s9526_s9] sm:$0xff] }
 0x342   :  { %v3954_v45 = vadd.f32 %v3953_v33, %v3940_v12  ;;  %v4116_v33 = vld [vmem:[%s9526_s9 + $0x8] sm:$0xff] }
 0x343   :  { %4156 = vmatpush.msrb.mxu0 %v4116_v33 }
 0x344   :  { %v4010_v22 = vadd.f32 %v3954_v45, %v3431_v56 }
 0x345   :  { %4157 = vmatpush.msrb.mxu0 %v4115_v27 }
 0x346   :  { %v4024_v53 = vadd.f32 %v4016_v21, %v4010_v22 }
 0x348   :  { %v4028_v59 = vmax.f32 %v4024_v53, 0.0 }
 0x349   :  { %v3942_v26 = vpop.f32.mrf.mxu2  ;;  %v3955_v36 = vpop.f32.mrf.mxu3 }
 0x34a   :  { %v4035_v25 = vrot.slane %v4028_v59, 4 }
 0x34c   :  { %v4037_v11 = vsel %vm2461_vm13, %v4027_v49, %v4035_v25  ;;  %v4039_v39 = vsel %vm2461_vm13, %v4035_v25, %v4027_v49 }
 0x34d   :  { %v4040_v23 = vrot.slane %v4039_v39, 4  ;;  %v6099_v31 = vrot.slane %v4037_v11, 9  ;;  %v6103_v61 = vrot.slane %v4037_v11, 10  ;;  %v6107_v10 = vrot.slane %v4037_v11, 11 }
 0x34f   :  { %v6101_v62 = vrot.slane %v4040_v23, 9  ;;  %v4059_v60 = vadd.f32 %v6099_v31, %v4037_v11  ;;  %v6105_v50 = vrot.slane %v4040_v23, 10  ;;  %v6109_v52 = vrot.slane %v4040_v23, 11 }
 0x351   :  { %v4061_v32 = vadd.f32 %v6101_v62, %v4040_v23 }
 0x353   :  { %v4077_v9 = vadd.f32 %v6105_v50, %v4061_v32 }
 0x355   :  { %v4093_v45 = vadd.f32 %v6109_v52, %v4077_v9 }
 0x357   :  { %v4098_v26 = vrot.slane %v4093_v45, 4 }
 0x358   :  { %v3966_v8 = vpop.f32.mrf.mxu0  ;;  %v3979_v46 = vpop.f32.mrf.mxu1 }
 0x359   :  { %v3980_v48 = vadd.f32 %v3979_v46, %v3966_v8  ;;  %v4102_v6 = vadd.f32 %v4098_v26, %v4093_v45 }
 0x35b   :  { %v4011_v43 = vadd.f32 %v3980_v48, %v3457_v4  ;;  %v4075_v4 = vadd.f32 %v6103_v61, %v4059_v60 }
 0x35d   :  { %v4025_v1 = vadd.f32 %v4017_v34, %v4011_v43  ;;  %v4091_v12 = vadd.f32 %v6107_v10, %v4075_v4 }
 0x35f   :  { %v3992_v19 = vpop.f32.mrf.mxu2  ;;  %v4005_v51 = vpop.f32.mrf.mxu3  ;;  %v4029_v17 = vmax.f32 %v4025_v1, 0.0  ;;  %v4097_v59 = vrot.slane %v4091_v12, 4 }
 0x360   :  { %v4006_v13 = vadd.f32 %v4005_v51, %v3992_v19  ;;  %v3968_v30 = vpop.f32.mrf.mxu0  ;;  %v3981_v57 = vpop.f32.mrf.mxu1 }
 0x361   :  { %v4101_v54 = vadd.f32 %v4097_v59, %v4091_v12 }
 0x362   :  { %v4012_v56 = vadd.f32 %v4006_v13, %v3483_v63  ;;  %v6501_v63 = vld [vmem:[%s9527_s10] ss:$0 sm:$0xff]  ;;  %s6533_s10 = smov [#allocation4]  }
 0x363   :  { %s4200_s14 = sshll.u32 %s6533_s10, 4  ;;  %s4201_s14 = int_to_ptr.vmem [resolvable:$true] %s4200_s14 }
 0x364   :  { %v4026_v47 = vadd.f32 %v4018_v5, %v4012_v56 }
 0x366   :  { %v4030_v3 = vmax.f32 %v4026_v47, 0.0 }
 0x367   :  { %v3994_v14 = vpop.f32.mrf.mxu2  ;;  %v4007_v15 = vpop.f32.mrf.mxu3 }
 0x368   :  { %v4036_v38 = vrot.slane %v4030_v3, 4 }
 0x36a   :  { %v4038_v18 = vsel %vm2461_vm13, %v4029_v17, %v4036_v38  ;;  %v4041_v20 = vsel %vm2461_vm13, %v4036_v38, %v4029_v17 }
 0x36b   :  { %v4042_v21 = vrot.slane %v4041_v20, 4  ;;  %v6100_v24 = vrot.slane %v4038_v18, 9  ;;  %v6104_v53 = vrot.slane %v4038_v18, 10  ;;  %v6108_v11 = vrot.slane %v4038_v18, 11 }
 0x36d   :  { %v6102_v22 = vrot.slane %v4042_v21, 9  ;;  %v4060_v37 = vadd.f32 %v6100_v24, %v4038_v18  ;;  %v6106_v49 = vrot.slane %v4042_v21, 10  ;;  %v6110_v35 = vrot.slane %v4042_v21, 11 }
 0x36f   :  { %v4062_v36 = vadd.f32 %v6102_v22, %v4042_v21  ;;  %v4076_v25 = vadd.f32 %v6104_v53, %v4060_v37 }
 0x371   :  { %v4078_v39 = vadd.f32 %v6106_v49, %v4062_v36  ;;  %v4092_v42 = vadd.f32 %v6108_v11, %v4076_v25 }
 0x373   :  { %v4094_v44 = vadd.f32 %v6110_v35, %v4078_v39  ;;  %v4103_v29 = vadd.f32 %v4101_v54, %v4092_v42  ;;  %v4107_v8 = vrot.slane %v4092_v42, 4 }
 0x375   :  { %v4104_v46 = vadd.f32 %v4102_v6, %v4094_v44  ;;  %v4108_v28 = vrot.slane %v4094_v44, 4  ;;  %v4111_v23 = vadd.f32 %v4107_v8, %v4103_v29 }
 0x377   :  { %v4112_v58 = vadd.f32 %v4108_v28, %v4104_v46  ;;  %v4113_v16 = vmul.f32 0.0625, %v4111_v23 }
 0x379   :  { %v4114_v48 = vmul.f32 0.0625, %v4112_v58  ;;  %v4137_v31 = vperm.slane %v4113_v16, 0 }
 0x37b   :  { %v4138_v55 = vperm.slane %v4114_v48, 0 }
 0x37d   :  { %v4140_v62 = vsel %vm4139_vm3, %v4138_v55, %v4137_v31 }
 0x37e   :  { %4158 = vmatmul.f32.vlgmr.msrb.gmra.mxu0 %v4140_v62 }
 0x3fb   :  { %v4159_v19 = vpop.f32.mrf.mxu0 }
 0x3fc   :  { %v4160_v51 = vadd.f32 %v6501_v63, %v4159_v19 }
 0x3fe   :  { %v4162_v41 = vmul.f32 %v4160_v51, %v4160_v51 }
 0x400   :  { %v4163_v43 = vsel %vm522_vm1, %v4162_v41, 0.0 }
 0x401   :  { %4164 = vadd.xlane.f32.xlu0 %v4163_v43 }
 0x474   :  { %v4165_v34 = vpop.xlane.xlu0 %4164 }
 0x475   :  { %6502 = vrsqrt.f32 %v4165_v34  ;;  %vm4173_vm4 = vcmp.eq.f32.partialorder %v4165_v34, inf  ;;  %v4176_v56 = vand.u32 2147483648, %v4165_v34  ;;  %vm4175_vm5 = vcmp.eq.f32.partialorder %v4165_v34, 0.0 }
 0x47b   :  { %v6503_v13 = vpop.eup %6502 }
 0x47c   :  { %v4167_v5 = vmul.f32 %v6503_v13, %v4165_v34 }
 0x47e   :  { %v4168_v30 = vmul.f32 %v6503_v13, %v4167_v5 }
 0x480   :  { %v4169_v57 = vmul.f32 0.5, %v4168_v30 }
 0x482   :  { %v4170_v60 = vsub.f32 1.5, %v4169_v57 }
 0x484   :  { %v4171_v7 = vmul.f32 %v6503_v13, %v4170_v60 }
 0x486   :  { %v4172_v32 = vmul.f32 %v4171_v7, %v4165_v34 }
 0x488   :  { %v4174_v61 = vsel %vm4173_vm4, %v4165_v34, %v4172_v32 }
 0x489   :  { %v4177_v0 = vsel %vm4175_vm5, %v4176_v56, %v4174_v61 }
 0x48a   :  { %v4178_v50 = vmax.f32 %v4177_v0, 1e-12 }
 0x48c   :  { %6504 = vrcp.f32 %v4178_v50  ;;  %v4190_v2 = vand.u32 2147483648, %v4178_v50  ;;  %v4188_v9 = vand.u32 2147483647, %v4178_v50  ;;  %vm4184_vm6 = vweird.f32 %v4178_v50 }
 0x48e   :  { %v4191_v14 = vor.u32 1.1754944e-38, %v4190_v2  ;;  %vm4189_vm8 = vcmp.eq.f32.partialorder %v4188_v9, 8.507059e+37 }
 0x492   :  { %v6505_v1 = vpop.eup %6504 }
 0x493   :  { %v4180_v47 = vmul.f32 %v6505_v1, %v4178_v50  ;;  %vm4185_vm1 = vweird.f32 %v6505_v1 }
 0x494   :  { %vm4186_vm7 = vmor %vm4184_vm6, %vm4185_vm1 }
 0x495   :  { %v4181_v4 = vsub.f32 1.0, %v4180_v47 }
 0x497   :  { %v4182_v3 = vmul.f32 %v6505_v1, %v4181_v4 }
 0x499   :  { %v4183_v10 = vadd.f32 %v6505_v1, %v4182_v3 }
 0x49b   :  { %v4187_v15 = vsel %vm4186_vm7, %v6505_v1, %v4183_v10 }
 0x49c   :  { %v4192_v40 = vsel %vm4189_vm8, %v4191_v14, %v4187_v15 }
 0x49d   :  { %v4193_v52 = vmul.f32 %v4192_v40, %v4160_v51 }
 0x49f   :  { %4194 = vst [vmem:[#allocation4] sm:$0x3] %v4193_v52 }
 0x4a0   :  { %4205 = dma.vmem_to_hbm [thread:$0]  %s4201_s14, 32, %s4203_s17, [#allocation5]  }
 0x4a1   :  { %6530 = dma.done.wait [#allocation5], 32  }
 0x4a2   :  { %6531 = vsyncadd [#allocation5], 4294967264 }
 0x4a3   :  { %4210 = vsyncpa [#allocation5], 1 }

</bundles_post_ra>
